<compile_context>
chip_gen: v5e
topology: v5e:2x2
jax: 0.10.0
libtpu: 0.0.40
codegen_flags: <defaults>
</compile_context>

<pallas_src>
import math
import functools

import jax
import jax.numpy as jnp
from jax import lax
from jax.experimental import pallas as pl
from jax.experimental.pallas import tpu as pltpu


# ---------------------------------------------------------------------------
# Fused kernel: 3x3 conv + ReLU + 1x1 heads + paired softmax, one row strip
# per grid step.
# ---------------------------------------------------------------------------
def _rpn_fused_kernel(x_ref, wck_ref, bc_ref, wh_ref, bh_ref,
                      feat_ref, score_ref, prob_ref, bbox_ref):
    # x_ref:     (1, H+2, W+2, Cin) bf16  zero-padded NHWC image (whole image,
    #                                     re-used by every strip of this image)
    # wck_ref:   (MID, 9*Cin)      bf16   im2col'd 3x3 weight, taps (dy,dx) row-major
    # bc_ref:    (MID, 1)          f32
    # wh_ref:    (6A, MID)         bf16   [score ; bbox] 1x1 head weights (transposed)
    # bh_ref:    (6A, 1)           f32
    # feat_ref:  (1, MID, tile_h*W) f32   NCHW-flat ReLU(conv) strip
    # score_ref: (1, 2A,  tile_h*W) f32
    # prob_ref:  (1, 2A,  tile_h*W) f32
    # bbox_ref:  (1, 4A,  tile_h*W) f32
    W = x_ref.shape[2] - 2
    Cin = x_ref.shape[3]
    hw_t = feat_ref.shape[2]
    tile_h = hw_t // W
    A2 = score_ref.shape[1]
    A = A2 // 2

    # Rows of the padded image covered by this strip (incl. the 1-px halo).
    row0 = pl.multiple_of(pl.program_id(1) * tile_h, tile_h)
    xs = x_ref[0, pl.ds(row0, tile_h + 2), :, :]          # (tile_h+2, W+2, Cin)

    # im2col: build one (tile_h*W, 9*Cin) LHS -> a single deep-K MXU matmul
    # (no 9x read-modify-write of a big f32 accumulator).
    cols = []
    for dy in range(3):
        for dx in range(3):
            cols.append(xs[dy:dy + tile_h, dx:dx + W, :].reshape(hw_t, Cin))
    patches = jnp.concatenate(cols, axis=-1)              # (hw_t, 9*Cin) bf16

    # 3x3 conv + bias + ReLU; output produced channel-major (NCHW-flat) so the
    # store is lane-dense and no output transpose is ever needed.
    featT = lax.dot_general(
        wck_ref[...], patches,
        dimension_numbers=(((1,), (1,)), ((), ())),
        preferred_element_type=jnp.float32)               # (MID, hw_t)
    featT = jnp.maximum(featT + bc_ref[...], 0.0)
    feat_ref[0] = featT.astype(feat_ref.dtype)

    # Fused 1x1 heads: one (6A, MID) x (MID, hw_t) matmul for score + bbox.
    heads = lax.dot_general(
        wh_ref[...], featT.astype(jnp.bfloat16),
        dimension_numbers=(((1,), (0,)), ((), ())),
        preferred_element_type=jnp.float32) + bh_ref[...]  # (6A, hw_t)
    score = heads[:A2]                                     # (2A, hw_t)
    score_ref[0] = score.astype(score_ref.dtype)
    bbox_ref[0] = heads[A2:].astype(bbox_ref.dtype)

    # torch: view(N,2,-1,W) + softmax(dim=1)  <=>  pairwise softmax of channel
    # c (bg, c<A) with channel c+A (fg).  Sigmoid form: one exp + one approx
    # reciprocal (EUP), no max / second exp / lane concatenate.
    bg = score[:A]
    fg = score[A:]
    p_fg = pl.reciprocal(1.0 + jnp.exp(bg - fg), approx=True)
    prob = jnp.concatenate([1.0 - p_fg, p_fg], axis=0)     # (2A, hw_t)
    prob_ref[0] = prob.astype(prob_ref.dtype)


# ---------------------------------------------------------------------------
# Wrapper
# ---------------------------------------------------------------------------
@functools.partial(jax.jit, static_argnames=("tile_h",))
def rpn_forward(features_nchw, params, tile_h=8):
    """RPN conv-head forward. NCHW in, NCHW out (feat, score, prob, bbox)."""
    N, Cin, H, W = features_nchw.shape
    MID = params["w_rpn"].shape[-1]
    A = params["w_score"].shape[-1] // 2

    # Keep the flat-spatial lane axis legal (multiple of 128 or the full extent).
    if H % tile_h != 0 or (tile_h * W) % 128 != 0:
        tile_h = H
    n_strips = H // tile_h
    hw_t = tile_h * W

    # NCHW -> NHWC + 1-px zero halo + bf16 cast in one fused XLA copy; from here
    # on the Pallas kernel does all the compute without re-touching HBM.
    x = jnp.pad(jnp.transpose(features_nchw, (0, 2, 3, 1)).astype(jnp.bfloat16),
                ((0, 0), (1, 1), (1, 1), (0, 0)))

    # Kernel-side weight layouts (tiny one-off transposes).
    wck = jnp.transpose(params["w_rpn"], (2, 0, 1)).reshape(MID, 9 * Cin)
    wck = wck.astype(jnp.bfloat16)                              # (MID, 9*Cin)
    bc = params["b_rpn"].reshape(MID, 1).astype(jnp.float32)
    wh = jnp.concatenate([params["w_score"].T, params["w_bbox"].T], axis=0)
    wh = wh.astype(jnp.bfloat16)                                # (6A, MID)
    bh = jnp.concatenate([params["b_score"], params["b_bbox"]])
    bh = bh.reshape(6 * A, 1).astype(jnp.float32)

    feat_f, score_f, prob_f, bbox_f = pl.pallas_call(
        _rpn_fused_kernel,
        out_shape=(
            jax.ShapeDtypeStruct((N, MID, H * W), jnp.float32),
            jax.ShapeDtypeStruct((N, 2 * A, H * W), jnp.float32),
            jax.ShapeDtypeStruct((N, 2 * A, H * W), jnp.float32),
            jax.ShapeDtypeStruct((N, 4 * A, H * W), jnp.float32),
        ),
        grid=(N, n_strips),
        in_specs=[
            # Whole padded image; block index ignores the strip axis, so the
            # input DMA happens once per image and is reused by every strip.
            pl.BlockSpec((1, H + 2, W + 2, Cin), lambda n, h: (n, 0, 0, 0)),
            pl.BlockSpec((MID, 9 * Cin), lambda n, h: (0, 0)),
            pl.BlockSpec((MID, 1), lambda n, h: (0, 0)),
            pl.BlockSpec((6 * A, MID), lambda n, h: (0, 0)),
            pl.BlockSpec((6 * A, 1), lambda n, h: (0, 0)),
        ],
        out_specs=(
            pl.BlockSpec((1, MID, hw_t), lambda n, h: (n, 0, h)),
            pl.BlockSpec((1, 2 * A, hw_t), lambda n, h: (n, 0, h)),
            pl.BlockSpec((1, 2 * A, hw_t), lambda n, h: (n, 0, h)),
            pl.BlockSpec((1, 4 * A, hw_t), lambda n, h: (n, 0, h)),
        ),
        compiler_params=pltpu.CompilerParams(
            dimension_semantics=("parallel", "parallel"),
            vmem_limit_bytes=32 * 1024 * 1024),
    )(x, wck, bc, wh, bh)

    # Outputs are already NCHW-flat (C, H*W): NCHW is a free reshape.
    return (feat_f.reshape(N, MID, H, W),
            score_f.reshape(N, 2 * A, H, W),
            prob_f.reshape(N, 2 * A, H, W),
            bbox_f.reshape(N, 4 * A, H, W))


# ---------------------------------------------------------------------------
# Pure-JAX f32 reference (for correctness check)
# ---------------------------------------------------------------------------
def rpn_forward_ref(features_nchw, params):
    hi = lax.Precision.HIGHEST
    x = jnp.transpose(features_nchw, (0, 2, 3, 1)).astype(jnp.float32)
    w9 = params["w_rpn"]
    Cin, MID = w9.shape[1], w9.shape[2]
    w_hwio = w9.reshape(3, 3, Cin, MID)
    conv = lax.conv_general_dilated(
        x, w_hwio, (1, 1), "SAME",
        dimension_numbers=("NHWC", "HWIO", "NHWC"),
        precision=hi) + params["b_rpn"]
    feat = jnp.maximum(conv, 0.0)
    score = jnp.einsum("nhwc,co->nhwo", feat, params["w_score"],
                       precision=hi) + params["b_score"]
    bbox = jnp.einsum("nhwc,co->nhwo", feat, params["w_bbox"],
                      precision=hi) + params["b_bbox"]
    to_nchw = lambda t: jnp.transpose(t, (0, 3, 1, 2))
    score_nchw = to_nchw(score)
    N, C2A, H, W = score_nchw.shape
    prob_nchw = jax.nn.softmax(
        score_nchw.reshape(N, 2, -1, W), axis=1).reshape(N, C2A, H, W)
    return (to_nchw(feat), score_nchw, prob_nchw, to_nchw(bbox))


# ---------------------------------------------------------------------------
# Deterministic parameter init (mirrors the module's normal(0, sqrt(2/n)))
# ---------------------------------------------------------------------------
def init_params(key, in_channel, mid_channel, A):
    k_rpn, k_score, k_bbox = jax.random.split(key, 3)
    params = {}
    std = math.sqrt(2.0 / (3 * 3 * mid_channel))        # rpn_conv: n = 3*3*512
    params["w_rpn"] = (jax.random.normal(k_rpn, (9, in_channel, mid_channel),
                                         jnp.float32) * std)
    params["b_rpn"] = jnp.zeros((mid_channel,), jnp.float32)
    std = math.sqrt(2.0 / (2 * A))                      # score_conv: n = 1*1*2A
    params["w_score"] = (jax.random.normal(k_score, (mid_channel, 2 * A),
                                           jnp.float32) * std)
    params["b_score"] = jnp.zeros((2 * A,), jnp.float32)
    std = math.sqrt(2.0 / (4 * A))                      # bbox_conv: n = 1*1*4A
    params["w_bbox"] = (jax.random.normal(k_bbox, (mid_channel, 4 * A),
                                          jnp.float32) * std)
    params["b_bbox"] = jnp.zeros((4 * A,), jnp.float32)
    return params


if __name__ == "__main__":
    # Small shapes consistent with the module (feat map of a 256x256 image at
    # stride 16): N=2, Cin=16, H=W=16; 3 scales x 3 ratios => A=9; MID=512.
    N, Cin, H, W = 2, 16, 16, 16
    MID = 512                       # hardcoded in the module (rpn_conv out)
    A = 3 * 3                       # len(ANCHOR_SCALES) * len(ANCHOR_RATIOS)

    key = jax.random.PRNGKey(0)
    k_x, k_p = jax.random.split(key)
    features = jax.random.normal(k_x, (N, Cin, H, W), jnp.float32)  # NCHW
    params = init_params(k_p, Cin, MID, A)

    outs = jax.block_until_ready(rpn_forward(features, params, tile_h=8))
    refs = jax.block_until_ready(rpn_forward_ref(features, params))

    names = ("rpn_conv_feature", "rpn_cls_score", "rpn_cls_prob", "rpn_bbox_pred")
    for name, o, r in zip(names, outs, refs):
        assert o.shape == r.shape, (name, o.shape, r.shape)
        # bf16 MXU inputs with f32 accumulation vs. a pure-f32 reference.
        assert jnp.allclose(o, r, atol=5e-2, rtol=5e-2), (
            name, float(jnp.max(jnp.abs(o - r))))
    print("KERNEL_OK")
</pallas_src>

<mosaic_0001>
module attributes {stable_mosaic.version = 11 : i64} {
  func.func @_rpn_fused_kernel(%arg0: i32, %arg1: i32, %arg2: memref<1x18x18x16xbf16, #tpu.memory_space<vmem>>, %arg3: memref<512x144xbf16, #tpu.memory_space<vmem>>, %arg4: memref<512x1xf32, #tpu.memory_space<vmem>>, %arg5: memref<54x512xbf16, #tpu.memory_space<vmem>>, %arg6: memref<54x1xf32, #tpu.memory_space<vmem>>, %arg7: memref<1x512x128xf32, #tpu.memory_space<vmem>>, %arg8: memref<1x18x128xf32, #tpu.memory_space<vmem>>, %arg9: memref<1x18x128xf32, #tpu.memory_space<vmem>>, %arg10: memref<1x36x128xf32, #tpu.memory_space<vmem>>) attributes {dimension_semantics = [#tpu.dimension_semantics<parallel>, #tpu.dimension_semantics<parallel>], iteration_bounds = array<i64: 2, 2>, scalar_prefetch = 0 : i64, scratch_operands = 0 : i64, tpu.core_type = #tpu.core_type<tc>, window_params = [{transform_indices = @transform_0, window_bounds = array<i64: 1, 18, 18, 16>}, {pipeline_mode = #tpu.pipeline_mode<synchronous>, transform_indices = @transform_1, window_bounds = array<i64: 512, 144>}, {pipeline_mode = #tpu.pipeline_mode<synchronous>, transform_indices = @transform_2, window_bounds = array<i64: 512, 1>}, {pipeline_mode = #tpu.pipeline_mode<synchronous>, transform_indices = @transform_3, window_bounds = array<i64: 54, 512>}, {pipeline_mode = #tpu.pipeline_mode<synchronous>, transform_indices = @transform_4, window_bounds = array<i64: 54, 1>}, {transform_indices = @transform_5, window_bounds = array<i64: 1, 512, 128>}, {transform_indices = @transform_6, window_bounds = array<i64: 1, 18, 128>}, {transform_indices = @transform_7, window_bounds = array<i64: 1, 18, 128>}, {transform_indices = @transform_8, window_bounds = array<i64: 1, 36, 128>}]} {
    %c8_i32 = arith.constant 8 : i32
    %0 = arith.muli %arg1, %c8_i32 : i32
    %1 = tpu.assume_multiple %0, 8 : i32
    %c0 = arith.constant 0 : index
    %2 = arith.index_cast %1 : i32 to index
    %c0_0 = arith.constant 0 : index
    %c0_1 = arith.constant 0 : index
    %3 = vector.load %arg2[%c0, %2, %c0_0, %c0_1] : memref<1x18x18x16xbf16, #tpu.memory_space<vmem>>, vector<1x10x18x16xbf16>
    %4 = vector.shape_cast %3 : vector<1x10x18x16xbf16> to vector<10x18x16xbf16>
    %5 = vector.extract_strided_slice %4 {offsets = [0, 0, 0], sizes = [8, 16, 16], strides = [1, 1, 1]} : vector<10x18x16xbf16> to vector<8x16x16xbf16>
    %6 = vector.shape_cast %5 : vector<8x16x16xbf16> to vector<128x16xbf16>
    %7 = vector.extract_strided_slice %4 {offsets = [0, 1, 0], sizes = [8, 16, 16], strides = [1, 1, 1]} : vector<10x18x16xbf16> to vector<8x16x16xbf16>
    %8 = vector.shape_cast %7 : vector<8x16x16xbf16> to vector<128x16xbf16>
    %9 = vector.extract_strided_slice %4 {offsets = [0, 2, 0], sizes = [8, 16, 16], strides = [1, 1, 1]} : vector<10x18x16xbf16> to vector<8x16x16xbf16>
    %10 = vector.shape_cast %9 : vector<8x16x16xbf16> to vector<128x16xbf16>
    %11 = vector.extract_strided_slice %4 {offsets = [1, 0, 0], sizes = [8, 16, 16], strides = [1, 1, 1]} : vector<10x18x16xbf16> to vector<8x16x16xbf16>
    %12 = vector.shape_cast %11 : vector<8x16x16xbf16> to vector<128x16xbf16>
    %13 = vector.extract_strided_slice %4 {offsets = [1, 1, 0], sizes = [8, 16, 16], strides = [1, 1, 1]} : vector<10x18x16xbf16> to vector<8x16x16xbf16>
    %14 = vector.shape_cast %13 : vector<8x16x16xbf16> to vector<128x16xbf16>
    %15 = vector.extract_strided_slice %4 {offsets = [1, 2, 0], sizes = [8, 16, 16], strides = [1, 1, 1]} : vector<10x18x16xbf16> to vector<8x16x16xbf16>
    %16 = vector.shape_cast %15 : vector<8x16x16xbf16> to vector<128x16xbf16>
    %17 = vector.extract_strided_slice %4 {offsets = [2, 0, 0], sizes = [8, 16, 16], strides = [1, 1, 1]} : vector<10x18x16xbf16> to vector<8x16x16xbf16>
    %18 = vector.shape_cast %17 : vector<8x16x16xbf16> to vector<128x16xbf16>
    %19 = vector.extract_strided_slice %4 {offsets = [2, 1, 0], sizes = [8, 16, 16], strides = [1, 1, 1]} : vector<10x18x16xbf16> to vector<8x16x16xbf16>
    %20 = vector.shape_cast %19 : vector<8x16x16xbf16> to vector<128x16xbf16>
    %21 = vector.extract_strided_slice %4 {offsets = [2, 2, 0], sizes = [8, 16, 16], strides = [1, 1, 1]} : vector<10x18x16xbf16> to vector<8x16x16xbf16>
    %22 = vector.shape_cast %21 : vector<8x16x16xbf16> to vector<128x16xbf16>
    %23 = tpu.concatenate %6, %8, %10, %12, %14, %16, %18, %20, %22 in 1 : vector<128x16xbf16>, vector<128x16xbf16>, vector<128x16xbf16>, vector<128x16xbf16>, vector<128x16xbf16>, vector<128x16xbf16>, vector<128x16xbf16>, vector<128x16xbf16>, vector<128x16xbf16> -> vector<128x144xbf16>
    %c0_2 = arith.constant 0 : index
    %c0_3 = arith.constant 0 : index
    %24 = vector.load %arg3[%c0_2, %c0_3] : memref<512x144xbf16, #tpu.memory_space<vmem>>, vector<512x144xbf16>
    %cst = arith.constant dense<0.000000e+00> : vector<512x128xf32>
    %25 = tpu.matmul %24, %23, %cst {dimension_numbers = #tpu.dot_dimension_numbers<[1], [1], [0], [0], [0, 0, 1, 0], [], []>} : vector<512x144xbf16>, vector<128x144xbf16>, vector<512x128xf32> -> vector<512x128xf32>
    %c0_4 = arith.constant 0 : index
    %c0_5 = arith.constant 0 : index
    %26 = vector.load %arg4[%c0_4, %c0_5] : memref<512x1xf32, #tpu.memory_space<vmem>>, vector<512x1xf32>
    %27 = vector.broadcast %26 : vector<512x1xf32> to vector<512x128xf32>
    %28 = arith.addf %25, %27 : vector<512x128xf32>
    %cst_6 = arith.constant 0.000000e+00 : f32
    %29 = vector.broadcast %cst_6 : f32 to vector<512x128xf32>
    %30 = arith.maximumf %28, %29 : vector<512x128xf32>
    %c0_7 = arith.constant 0 : index
    %c0_8 = arith.constant 0 : index
    %c0_9 = arith.constant 0 : index
    %31 = vector.load %arg7[%c0_7, %c0_8, %c0_9] : memref<1x512x128xf32, #tpu.memory_space<vmem>>, vector<1x512x128xf32>
    %32 = vector.shape_cast %31 : vector<1x512x128xf32> to vector<512x128xf32>
    %33 = vector.shape_cast %30 : vector<512x128xf32> to vector<1x512x128xf32>
    tpu.vector_store %arg7[%c0_7, %c0_8, %c0_9], %33 {strides = array<i32>} : memref<1x512x128xf32, #tpu.memory_space<vmem>>, vector<1x512x128xf32>,
    %c0_10 = arith.constant 0 : index
    %c0_11 = arith.constant 0 : index
    %34 = vector.load %arg5[%c0_10, %c0_11] : memref<54x512xbf16, #tpu.memory_space<vmem>>, vector<54x512xbf16>
    %35 = arith.truncf %30 : vector<512x128xf32> to vector<512x128xbf16>
    %cst_12 = arith.constant dense<0.000000e+00> : vector<54x128xf32>
    %36 = tpu.matmul %34, %35, %cst_12 {dimension_numbers = #tpu.dot_dimension_numbers<[1], [0], [0], [1], [0, 0, 1, 1], [], []>} : vector<54x512xbf16>, vector<512x128xbf16>, vector<54x128xf32> -> vector<54x128xf32>
    %c0_13 = arith.constant 0 : index
    %c0_14 = arith.constant 0 : index
    %37 = vector.load %arg6[%c0_13, %c0_14] : memref<54x1xf32, #tpu.memory_space<vmem>>, vector<54x1xf32>
    %38 = vector.broadcast %37 : vector<54x1xf32> to vector<54x128xf32>
    %39 = arith.addf %36, %38 : vector<54x128xf32>
    %40 = vector.extract_strided_slice %39 {offsets = [0, 0], sizes = [18, 128], strides = [1, 1]} : vector<54x128xf32> to vector<18x128xf32>
    %c0_15 = arith.constant 0 : index
    %c0_16 = arith.constant 0 : index
    %c0_17 = arith.constant 0 : index
    %41 = vector.load %arg8[%c0_15, %c0_16, %c0_17] : memref<1x18x128xf32, #tpu.memory_space<vmem>>, vector<1x18x128xf32>
    %42 = vector.shape_cast %41 : vector<1x18x128xf32> to vector<18x128xf32>
    %43 = vector.shape_cast %40 : vector<18x128xf32> to vector<1x18x128xf32>
    tpu.vector_store %arg8[%c0_15, %c0_16, %c0_17], %43 {strides = array<i32>} : memref<1x18x128xf32, #tpu.memory_space<vmem>>, vector<1x18x128xf32>,
    %44 = vector.extract_strided_slice %39 {offsets = [18, 0], sizes = [36, 128], strides = [1, 1]} : vector<54x128xf32> to vector<36x128xf32>
    %c0_18 = arith.constant 0 : index
    %c0_19 = arith.constant 0 : index
    %c0_20 = arith.constant 0 : index
    %45 = vector.load %arg10[%c0_18, %c0_19, %c0_20] : memref<1x36x128xf32, #tpu.memory_space<vmem>>, vector<1x36x128xf32>
    %46 = vector.shape_cast %45 : vector<1x36x128xf32> to vector<36x128xf32>
    %47 = vector.shape_cast %44 : vector<36x128xf32> to vector<1x36x128xf32>
    tpu.vector_store %arg10[%c0_18, %c0_19, %c0_20], %47 {strides = array<i32>} : memref<1x36x128xf32, #tpu.memory_space<vmem>>, vector<1x36x128xf32>,
    %48 = vector.extract_strided_slice %40 {offsets = [0, 0], sizes = [9, 128], strides = [1, 1]} : vector<18x128xf32> to vector<9x128xf32>
    %49 = vector.extract_strided_slice %40 {offsets = [9, 0], sizes = [9, 128], strides = [1, 1]} : vector<18x128xf32> to vector<9x128xf32>
    %50 = arith.subf %48, %49 : vector<9x128xf32>
    %51 = math.exp %50 : vector<9x128xf32>
    %cst_21 = arith.constant 1.000000e+00 : f32
    %52 = vector.broadcast %cst_21 : f32 to vector<9x128xf32>
    %53 = arith.addf %52, %51 : vector<9x128xf32>
    %54 = tpu.reciprocal %53 {approx = true} : vector<9x128xf32> -> vector<9x128xf32>
    %cst_22 = arith.constant 1.000000e+00 : f32
    %55 = vector.broadcast %cst_22 : f32 to vector<9x128xf32>
    %56 = arith.subf %55, %54 : vector<9x128xf32>
    %57 = tpu.concatenate %56, %54 in 0 : vector<9x128xf32>, vector<9x128xf32> -> vector<18x128xf32>
    %c0_23 = arith.constant 0 : index
    %c0_24 = arith.constant 0 : index
    %c0_25 = arith.constant 0 : index
    %58 = vector.load %arg9[%c0_23, %c0_24, %c0_25] : memref<1x18x128xf32, #tpu.memory_space<vmem>>, vector<1x18x128xf32>
    %59 = vector.shape_cast %58 : vector<1x18x128xf32> to vector<18x128xf32>
    %60 = vector.shape_cast %57 : vector<18x128xf32> to vector<1x18x128xf32>
    tpu.vector_store %arg9[%c0_23, %c0_24, %c0_25], %60 {strides = array<i32>} : memref<1x18x128xf32, #tpu.memory_space<vmem>>, vector<1x18x128xf32>,
    return
  }
  func.func @transform_0(%arg0: i32, %arg1: i32) -> (i32, i32, i32, i32) {
    %c0_i32 = arith.constant 0 : i32
    %c0_i32_0 = arith.constant 0 : i32
    %c0_i32_1 = arith.constant 0 : i32
    %c0_i32_2 = arith.constant 0 : i32
    return %arg0, %c0_i32, %c0_i32_0, %c0_i32_1 : i32, i32, i32, i32
  }
  func.func @transform_1(%arg0: i32, %arg1: i32) -> (i32, i32) {
    %c0_i32 = arith.constant 0 : i32
    %c0_i32_0 = arith.constant 0 : i32
    %c0_i32_1 = arith.constant 0 : i32
    return %c0_i32, %c0_i32_0 : i32, i32
  }
  func.func @transform_2(%arg0: i32, %arg1: i32) -> (i32, i32) {
    %c0_i32 = arith.constant 0 : i32
    %c0_i32_0 = arith.constant 0 : i32
    %c0_i32_1 = arith.constant 0 : i32
    return %c0_i32, %c0_i32_0 : i32, i32
  }
  func.func @transform_3(%arg0: i32, %arg1: i32) -> (i32, i32) {
    %c0_i32 = arith.constant 0 : i32
    %c0_i32_0 = arith.constant 0 : i32
    %c0_i32_1 = arith.constant 0 : i32
    return %c0_i32, %c0_i32_0 : i32, i32
  }
  func.func @transform_4(%arg0: i32, %arg1: i32) -> (i32, i32) {
    %c0_i32 = arith.constant 0 : i32
    %c0_i32_0 = arith.constant 0 : i32
    %c0_i32_1 = arith.constant 0 : i32
    return %c0_i32, %c0_i32_0 : i32, i32
  }
  func.func @transform_5(%arg0: i32, %arg1: i32) -> (i32, i32, i32) {
    %c0_i32 = arith.constant 0 : i32
    %c0_i32_0 = arith.constant 0 : i32
    return %arg0, %c0_i32, %arg1 : i32, i32, i32
  }
  func.func @transform_6(%arg0: i32, %arg1: i32) -> (i32, i32, i32) {
    %c0_i32 = arith.constant 0 : i32
    %c0_i32_0 = arith.constant 0 : i32
    return %arg0, %c0_i32, %arg1 : i32, i32, i32
  }
  func.func @transform_7(%arg0: i32, %arg1: i32) -> (i32, i32, i32) {
    %c0_i32 = arith.constant 0 : i32
    %c0_i32_0 = arith.constant 0 : i32
    return %arg0, %c0_i32, %arg1 : i32, i32, i32
  }
  func.func @transform_8(%arg0: i32, %arg1: i32) -> (i32, i32, i32) {
    %c0_i32 = arith.constant 0 : i32
    %c0_i32_0 = arith.constant 0 : i32
    return %arg0, %c0_i32, %arg1 : i32, i32, i32
  }
}

</mosaic_0001>

<bundles_post_ra>
// kernel: rpn_forward.1
= control target key start
LH: loop header
LB: loop body
LE: loop exit
PB: predicated region body
PF: predicated region fallthrough
CT: control target
= control target key end

     0   :  { %s4005_s27 = smov 0   ;;  %s4007_s28 = smov 0   ;;  %s5977_s0 = inlined_call_operand.vmem [shape: bf16[2,18,18,16], index: 0, kind: input, shape index: {}]   ;;  %s5978_s1 = inlined_call_operand.vmem [shape: bf16[512,144], index: 1, kind: input, shape index: {}]   ;;  %s5979_s2 = inlined_call_operand.vmem [shape: f32[512,1], index: 2, kind: input, shape index: {}]   ;;  %s5980_s3 = inlined_call_operand.vmem [shape: bf16[54,512], index: 3, kind: input, shape index: {}]   ;;  %s5981_s4 = inlined_call_operand.vmem [shape: f32[54,1], index: 4, kind: input, shape index: {}]   ;;  %s5982_s5 = inlined_call_operand.vmem [shape: f32[2,512,256], index: 5, kind: output, shape index: {0}]   ;;  %s5983_s6 = inlined_call_operand.vmem [shape: f32[2,18,256], index: 6, kind: output, shape index: {1}]   ;;  %s5984_s7 = inlined_call_operand.vmem [shape: f32[2,18,256], index: 7, kind: output, shape index: {2}]   ;;  %s5985_s8 = inlined_call_operand.vmem [shape: f32[2,36,256], index: 8, kind: output, shape index: {3}]  }
   0x1   :  { %s4009_s29 = smov 0   ;;  %s4011_s30 = smov 0  }
   0x2   :  { %s4013_s9 = smov 0   ;;  %s4015_s10 = smov 0  }
   0x3   :  { %s4017_s11 = smov 0  }
   0x4 LB: > { %s28_s12 = sadd.s32 1, %s3942_s9  ;;  %s31_s13 = sadd.s32 1, %s3946_s10  ;;  %s3950_s11 = sphi %s4017_s11, %s19_s11   ;;  %s3946_s10 = sphi %s4015_s10, %s6052_s10   ;;  %s3942_s9 = sphi %s4013_s9, %s6051_s9   ;;  %s3938_s30 = sphi %s4011_s30, %s6050_s30   ;;  %s3934_s29 = sphi %s4009_s29, %s6049_s29   ;;  %s3930_s28 = sphi %s4007_s28, %s6048_s28   ;;  %s3926_s27 = sphi %s4005_s27, %s6047_s27  }
   0x5   : > { %p29_p0 = scmp.ge.s32.totalorder %s28_s12, 2  ;;  %s3308_s14 = sadd.s32 4294967295, %s3950_s11  }
   0x6   : > { %p160_p1 = scmp.ne.s32.totalorder %s3930_s28, %s3926_s27  ;;  %p161_p2 = scmp.eq.s32.totalorder %s3308_s14, 3 }
   0x7   : > { %s6054_s12 = smov (%p29_p0, %s28_s12), 0  ;;  %s6056_s13 = smov (!%p29_p0, %s31_s13), %s3946_s10 }
   0x8   : > { %s146_s15 = ssub.s32 %s3942_s9, %s6054_s12  ;;  %p33_p3 = scmp.ge.s32.totalorder %s6056_s13, 2 }
   0x9   : > { %p3312_p4 = scmp.ge.s32.totalorder %s3950_s11, 1  ;;  %p4051_p5 = por %p161_p2, %p160_p1 }
   0xa   : > { %p289_p6 = scmp.lt.s32.totalorder %s3950_s11, 5  ;;  %s6058_s13 = smov (%p33_p3, %s6056_s13), 0 }
   0xb   : > { %s145_s17 = ssub.s32 %s3946_s10, %s6058_s13  ;;  %s150_s19 = sadd.s32 1, %s3930_s28 }
   0xc   : > { %p290_p7 = pnand %p3312_p4, %p289_p6  ;;  %s147_s18 = sor.u32 %s146_s15, %s145_s17 }
   0xd   : > { %p148_p8 = scmp.eq.s32.totalorder %s147_s18, 0 }
   0xe   : > { %293 = sbr.rel (%p290_p7) target bundleno = 1016 (0x3f8), region = 40 }
   0xf   : > { %s4062_s20 = scalar_select %p148_p8, %s3930_s28, %s150_s19  }
  0x13   : > { %p334_p9 = scmp.lt.s32.totalorder %s3938_s30, 1  ;;  %s3712_s22 = smul.u32 96, %s3934_s29  ;;  %vm592_vm0 = vcmask 1042432   ;;  %vm593_vm1 = vcmask 1046532   ;;  %vm373_vm3 = vsmask.f32 3328 }
  0x14   : > { %vm4072_vm2 = vmor %vm592_vm0, %vm593_vm1  ;;  %s3952_s15 = smov 48   ;;  %vm374_vm4 = vsmask.f32 7440  ;;  %s3953_s17 = smov 96   ;;  %vm921_vm6 = vcmask 130048   ;;  %vm946_vm7 = vcmask 261120  }
  0x15   : > { %s335_s21 = scalar_select %p334_p9, %s3938_s30, 1  ;;  %vm4106_vm5 = vmor %vm373_vm3, %vm374_vm4  ;;  %vm963_vm8 = vcmask 392192   ;;  %vm980_vm9 = vcmask 523264   ;;  %vm997_vm10 = vcmask 654336   ;;  %vm1014_vm11 = vcmask 785408  }
  0x16   : > { %s3954_s18 = smov 32   ;;  %s3955_s19 = smov 16   ;;  %vm1031_vm12 = vcmask 916480   ;;  %vm2662_vm13 = vcmask 1046528   ;;  %vm2682_vm14 = vcmask 1040384  }
  0x17   : > { %s3817_s23 = smul.u32 216, %s335_s21  ;;  %s3956_s21 = smov 64  }
  0x18   : > { %s4944_s25 = sand.u32 1, %s3926_s27  }
  0x19   : > { %s338_s26 = scalar_lea.vmem %s5977_s0, %s3817_s23  ;;  %s3958_s23 = smov 80  }
  0x1a   : > { %s4070_s14 = scalar_lea.vmem %s338_s26, %s3712_s22  ;;  %s3957_s22 = smov 112  }
  0x1b   : > { %v364_v1 = vld [vmem:[%s4070_s14 + $0x54] sm:$0xf]  ;;  %v365_v2 = vld [vmem:[%s4070_s14 + $0x58] sm:$0xf]  ;;  %v366_v3 = vld [vmem:[%s4070_s14 + $0x5c] sm:$0x1] }
  0x1c   : > { %v3325_v4 = vrot.slane %v364_v1, 9  ;;  %v646_v5 = vrot.slane %v365_v2, 5  ;;  %v649_v6 = vrot.slane %v366_v3, 5  ;;  %v4080_v7 = vld [vmem:[%s4070_s14 + $0x60] sm:$0xff]  ;;  %v545_v8 = vshrl.u32 %v364_v1, 16  ;;  %v3722_v27 = vld [vmem:[%s4070_s14 + $0x6c] sm:$0xff] }
  0x1d   : > { %v548_v9 = vshll.u32 %v364_v1, 16  ;;  %v554_v10 = vshll.u32 %v365_v2, 16  ;;  %v558_v11 = vshrl.u32 %v365_v2, 16  ;;  %v564_v12 = vshll.u32 %v366_v3, 16  ;;  %v4083_v13 = vld [vmem:[%s4070_s14 + $0x60] sm:$0xf]  ;;  %840 = vrot.lane.b32.xlu1 %v4080_v7, %s3952_s15  ;;  %897 = vrot.lane.b32.xlu2 %v3722_v27, %s3953_s17 }
  0x1e   : > { %v647_v14 = vsel %vm4072_vm2, %v3325_v4, %v646_v5  ;;  %v648_v15 = vrot.slane %v646_v5, 4  ;;  %v547_v16 = vrot.slane %v545_v8, 4  ;;  %v4090_v17 = vld [vmem:[%s4070_s14 + $0x64] sm:$0xf]  ;;  %v4093_v22 = vld [vmem:[%s4070_s14 + $0x68] sm:$0x1] }
  0x1f   : > { %v797_v18 = vunpack.c.l.b16 %v647_v14  ;;  %v550_v19 = vrot.slane %v548_v9, 5  ;;  %v556_v20 = vrot.slane %v554_v10, 5  ;;  %v560_v21 = vrot.slane %v558_v11, 4  ;;  %v4102_v32 = vld [vmem:[%s4070_s14 + $0x6c] sm:$0xf]  ;;  %s3313_s26 = sshll.u32 %s4944_s25, 9 }
  0x20   : > { %v650_v23 = vsel %vm4072_vm2, %v648_v15, %v649_v6  ;;  %v566_v24 = vrot.slane %v564_v12, 5  ;;  %v652_v25 = vshrl.u32 %v4083_v13, 16  ;;  %v655_v26 = vshll.u32 %v4083_v13, 16  ;;  %v4113_v38 = vld [vmem:[%s4070_s14 + $0x70] sm:$0xf] }
  0x21   : > { %v798_v28 = vunpack.c.l.b16 %v650_v23  ;;  %v551_v29 = vor.u32 %v550_v19, %v547_v16  ;;  %v561_v30 = vor.u32 %v560_v21, %v556_v20  ;;  %v661_v31 = vshll.u32 %v4090_v17, 16  ;;  %v4126_v49 = vld [vmem:[%s4070_s14 + $0x74] sm:$0x1]  ;;  %v4131_v56 = vld [vmem:[%s4070_s14 + $0x48] sm:$0xf] }
  0x22   : > { %v654_v34 = vrot.slane %v652_v25, 4  ;;  %v657_v35 = vrot.slane %v655_v26, 5  ;;  %v665_v36 = vshrl.u32 %v4090_v17, 16  ;;  %v671_v37 = vshll.u32 %v4093_v22, 16  ;;  %v362_v61 = vld [vmem:[%s4070_s14 + $0x4c] sm:$0xf] }
  0x23   : > { %v4116_v39 = vpack.c.b16 %v798_v28, %v797_v18  ;;  %v552_v40 = vrot.slane %v551_v29, 4  ;;  %v562_v41 = vrot.slane %v561_v30, 4  ;;  %v663_v42 = vrot.slane %v661_v31, 5  ;;  %v363_v6 = vld [vmem:[%s4070_s14 + $0x50] sm:$0x1] }
  0x24   : > { %v658_v43 = vor.u32 %v657_v35, %v654_v34  ;;  %v667_v44 = vrot.slane %v665_v36, 4  ;;  %v673_v45 = vrot.slane %v671_v37, 5  ;;  %v686_v46 = vshrl.u32 %v4102_v32, 16 }
  0x25   : > { %821 = vrot.lane.b32.xlu0 %v4116_v39, %s3954_s18  ;;  %v557_v47 = vsel %vm4106_vm5, %v552_v40, %v556_v20  ;;  %v567_v48 = vsel %vm4106_vm5, %v562_v41, %v566_v24  ;;  %v689_v50 = vshll.u32 %v4102_v32, 16  ;;  %v695_v51 = vshll.u32 %v4113_v38, 16 }
  0x26   : > { %v757_v52 = vunpack.c.l.b16 %v557_v47  ;;  %v758_v53 = vunpack.c.l.b16 %v567_v48  ;;  %v659_v54 = vrot.slane %v658_v43, 4  ;;  %v668_v55 = vor.u32 %v667_v44, %v663_v42 }
  0x27   : > { %v688_v57 = vrot.slane %v686_v46, 4  ;;  %v691_v58 = vrot.slane %v689_v50, 5  ;;  %v697_v59 = vrot.slane %v695_v51, 5  ;;  %v699_v60 = vshrl.u32 %v4113_v38, 16 }
  0x28   : > { %v4135_v62 = vpack.c.b16 %v758_v53, %v757_v52  ;;  %v664_v63 = vsel %vm4106_vm5, %v659_v54, %v663_v42  ;;  %v669_v1 = vrot.slane %v668_v55, 4  ;;  %v705_v2 = vshll.u32 %v4126_v49, 16  ;;  %v359_v55 = vld [vmem:[%s4070_s14 + $0x40] sm:$0xf] }
  0x29   : > { %v842_v3 = vunpack.c.l.b16 %v664_v63  ;;  %v692_v4 = vor.u32 %v691_v58, %v688_v57  ;;  %v701_v5 = vrot.slane %v699_v60, 4  ;;  %v521_v8 = vshrl.u32 %v4131_v56, 16 }
  0x2a   : > { %v674_v9 = vsel %vm4106_vm5, %v669_v1, %v673_v45  ;;  %v707_v10 = vrot.slane %v705_v2, 5  ;;  %v524_v11 = vshll.u32 %v4131_v56, 16  ;;  %v530_v12 = vshll.u32 %v362_v61, 16  ;;  %v358_v2 = vld [vmem:[%s4070_s14 + $0x3c] sm:$0xf] }
  0x2b   : > { %v843_v14 = vunpack.c.l.b16 %v674_v9  ;;  %v693_v15 = vrot.slane %v692_v4, 4  ;;  %v702_v16 = vor.u32 %v701_v5, %v697_v59  ;;  %v523_v18 = vrot.slane %v521_v8, 4 }
  0x2c   : > { %v526_v19 = vrot.slane %v524_v11, 5  ;;  %v532_v20 = vrot.slane %v530_v12, 5  ;;  %v534_v21 = vshrl.u32 %v362_v61, 16  ;;  %v540_v23 = vshll.u32 %v363_v6, 16  ;;  %v355_v12 = vld [vmem:[%s4070_s14 + $0x30] sm:$0xf] }
  0x2d   : > { %781 = vrot.lane.b32.xlu0 %v4135_v62, %s3955_s19  ;;  %v4147_v24 = vpack.c.b16 %v843_v14, %v842_v3  ;;  %v698_v25 = vsel %vm4106_vm5, %v693_v15, %v697_v59  ;;  %v703_v26 = vrot.slane %v702_v16, 4  ;;  %v3326_v27 = vrot.slane %v4083_v13, 9  ;;  %v360_v3 = vld [vmem:[%s4070_s14 + $0x44] sm:$0x1]  ;;  %v356_v16 = vld [vmem:[%s4070_s14 + $0x34] sm:$0xf] }
  0x2e   : > { %v899_v28 = vunpack.c.l.b16 %v698_v25  ;;  %v527_v29 = vor.u32 %v526_v19, %v523_v18  ;;  %v536_v30 = vrot.slane %v534_v21, 4  ;;  %v680_v34 = vrot.slane %v4090_v17, 5 }
  0x2f   : > { %859 = vrot.lane.b32.xlu1 %v4147_v24, %s3956_s21  ;;  %v708_v31 = vsel %vm4106_vm5, %v703_v26, %v707_v10  ;;  %v683_v35 = vrot.slane %v4093_v22, 5  ;;  %v542_v41 = vrot.slane %v540_v23, 5  ;;  %v3324_v43 = vrot.slane %v4131_v56, 9 }
  0x30   : > { %v900_v36 = vunpack.c.l.b16 %v708_v31  ;;  %v528_v37 = vrot.slane %v527_v29, 4  ;;  %v537_v40 = vor.u32 %v536_v30, %v532_v20  ;;  %v681_v13 = vsel %vm4072_vm2, %v3326_v27, %v680_v34 }
  0x31   : > { %v682_v42 = vrot.slane %v680_v34, 4  ;;  %v861_v47 = vunpack.c.l.b16 %v681_v13  ;;  %v639_v51 = vrot.slane %v362_v61, 5  ;;  %v642_v53 = vrot.slane %v363_v6, 5  ;;  %v4182_v61 = vld [vmem:[%s4070_s14 + $0x54] sm:$0xff] }
  0x32   : > { %v901_v44 = vpack.c.b16 %v900_v36, %v899_v28  ;;  %v533_v45 = vsel %vm4106_vm5, %v528_v37, %v532_v20  ;;  %v538_v46 = vrot.slane %v537_v40, 4  ;;  %v632_v63 = vrot.slane %v359_v55, 5 }
  0x33   : > { %v755_v17 = vunpack.c.l.b16 %v533_v45  ;;  %v684_v22 = vsel %vm4072_vm2, %v682_v42, %v683_v35  ;;  %v640_v56 = vsel %vm4072_vm2, %v3324_v43, %v639_v51  ;;  %v641_v57 = vrot.slane %v639_v51, 4  ;;  %v357_v45 = vld [vmem:[%s4070_s14 + $0x38] sm:$0x1] }
  0x34   : > { %v543_v48 = vsel %vm4106_vm5, %v538_v46, %v542_v41  ;;  %v862_v50 = vunpack.c.l.b16 %v684_v22  ;;  %v795_v60 = vunpack.c.l.b16 %v640_v56  ;;  %v497_v5 = vshrl.u32 %v358_v2, 16 }
  0x35   : > { %916 = vrot.lane.b32.xlu0 %v901_v44, %s3957_s22  ;;  %v756_v52 = vunpack.c.l.b16 %v543_v48  ;;  %v643_v59 = vsel %vm4072_vm2, %v641_v57, %v642_v53  ;;  %v500_v6 = vshll.u32 %v358_v2, 16  ;;  %v3323_v8 = vrot.slane %v358_v2, 9  ;;  %v352_v2 = vld [vmem:[%s4070_s14 + $0x24] sm:$0xf] }
  0x36   : > { %v4168_v54 = vpack.c.b16 %v862_v50, %v861_v47  ;;  %v796_v1 = vunpack.c.l.b16 %v643_v59  ;;  %v634_v9 = vrot.slane %v632_v63, 4  ;;  %v635_v10 = vrot.slane %v360_v3, 5 }
  0x37   : > { %v4173_v58 = vpack.c.b16 %v756_v52, %v755_v17  ;;  %v506_v11 = vshll.u32 %v359_v55, 16  ;;  %v499_v14 = vrot.slane %v497_v5, 4  ;;  %v502_v15 = vrot.slane %v500_v6, 5  ;;  %v4218_v52 = vld [vmem:[%s4070_s14 + $0x48] sm:$0xff] }
  0x38   : > { %878 = vrot.lane.b32.xlu2 %v4168_v54, %s3958_s23  ;;  %v4186_v4 = vpack.c.b16 %v796_v1, %v795_v60  ;;  %v510_v19 = vshrl.u32 %v359_v55, 16  ;;  %v516_v20 = vshll.u32 %v360_v3, 16  ;;  %v633_v23 = vsel %vm4072_vm2, %v3323_v8, %v632_v63  ;;  %v353_v3 = vld [vmem:[%s4070_s14 + $0x28] sm:$0xf] }
  0x39   : > { %779 = vrot.lane.b32.xlu1 %v4173_v58, %s3955_s19  ;;  %v508_v18 = vrot.slane %v506_v11, 5  ;;  %v503_v21 = vor.u32 %v502_v15, %v499_v14  ;;  %v636_v25 = vsel %vm4072_vm2, %v634_v9, %v635_v10  ;;  %v473_v26 = vshrl.u32 %v355_v12, 16 }
  0x3a   : > { %v512_v27 = vrot.slane %v510_v19, 4  ;;  %v476_v28 = vshll.u32 %v355_v12, 16  ;;  %v482_v29 = vshll.u32 %v356_v16, 16  ;;  %v486_v30 = vshrl.u32 %v356_v16, 16 }
  0x3b   : > { %v504_v31 = vrot.slane %v503_v21, 4  ;;  %v518_v35 = vrot.slane %v516_v20, 5  ;;  %v793_v36 = vunpack.c.l.b16 %v633_v23  ;;  %v794_v37 = vunpack.c.l.b16 %v636_v25  ;;  %v354_v25 = vld [vmem:[%s4070_s14 + $0x2c] sm:$0x1] }
  0x3c   : > { %v513_v34 = vor.u32 %v512_v27, %v508_v18  ;;  %v475_v13 = vrot.slane %v473_v26, 4  ;;  %v478_v42 = vrot.slane %v476_v28, 5  ;;  %v484_v43 = vrot.slane %v482_v29, 5 }
  0x3d   : > { %838 = vrot.lane.b32.xlu0 %v4182_v61, %s3952_s15  ;;  %v509_v40 = vsel %vm4106_vm5, %v504_v31, %v508_v18  ;;  %v488_v44 = vrot.slane %v486_v30, 4  ;;  %v4211_v17 = vpack.c.b16 %v794_v37, %v793_v36  ;;  %v492_v50 = vshll.u32 %v357_v45, 16 }
  0x3e   : > { %v514_v41 = vrot.slane %v513_v34, 4  ;;  %v753_v47 = vunpack.c.l.b16 %v509_v40  ;;  %v479_v22 = vor.u32 %v478_v42, %v475_v13  ;;  %v625_v57 = vrot.slane %v356_v16, 5 }
  0x3f   : > { %v489_v48 = vor.u32 %v488_v44, %v484_v43  ;;  %v494_v56 = vrot.slane %v492_v50, 5  ;;  %v3322_v59 = vrot.slane %v355_v12, 9  ;;  %v628_v1 = vrot.slane %v357_v45, 5  ;;  %v349_v45 = vld [vmem:[%s4070_s14 + $0x18] sm:$0xf] }
  0x40   : > { %819 = vrot.lane.b32.xlu2 %v4186_v4, %s3954_s18  ;;  %v519_v46 = vsel %vm4106_vm5, %v514_v41, %v518_v35  ;;  %v480_v53 = vrot.slane %v479_v22, 4  ;;  %v627_v63 = vrot.slane %v625_v57, 4  ;;  %v449_v9 = vshrl.u32 %v352_v2, 16  ;;  %v4252_v35 = vld [vmem:[%s4070_s14 + $0x3c] sm:$0xff] }
  0x41   : > { %857 = vrot.lane.b32.xlu1 %v4135_v62, %s3956_s21  ;;  %v490_v55 = vrot.slane %v489_v48, 4  ;;  %v626_v5 = vsel %vm4072_vm2, %v3322_v59, %v625_v57  ;;  %v452_v10 = vshll.u32 %v352_v2, 16  ;;  %v458_v12 = vshll.u32 %v353_v3, 16  ;;  %v351_v59 = vld [vmem:[%s4070_s14 + $0x20] sm:$0x1] }
  0x42   : > { %v629_v11 = vsel %vm4072_vm2, %v627_v63, %v628_v1  ;;  %v462_v14 = vshrl.u32 %v353_v3, 16  ;;  %v791_v15 = vunpack.c.l.b16 %v626_v5  ;;  %v451_v19 = vrot.slane %v449_v9, 4  ;;  %v347_v9 = vld [vmem:[%s4070_s14 + $0x10] sm:$0xf] }
  0x43   : > { %v495_v60 = vsel %vm4106_vm5, %v490_v55, %v494_v56  ;;  %v792_v18 = vunpack.c.l.b16 %v629_v11  ;;  %v454_v20 = vrot.slane %v452_v10, 5  ;;  %v460_v21 = vrot.slane %v458_v12, 5  ;;  %v4275_v55 = vld [vmem:[%s4070_s14 + $0x30] sm:$0xff] }
  0x44   : > { %v752_v8 = vunpack.c.l.b16 %v495_v60  ;;  %v464_v23 = vrot.slane %v462_v14, 4  ;;  %v468_v29 = vshll.u32 %v354_v25, 16  ;;  %v618_v37 = vrot.slane %v353_v3, 5 }
  0x45   : > { %895 = vrot.lane.b32.xlu0 %v4080_v7, %s3953_s17  ;;  %v754_v7 = vunpack.c.l.b16 %v519_v46  ;;  %v4245_v26 = vpack.c.b16 %v792_v18, %v791_v15  ;;  %v455_v27 = vor.u32 %v454_v20, %v451_v19  ;;  %v3321_v13 = vrot.slane %v352_v2, 9  ;;  %v350_v46 = vld [vmem:[%s4070_s14 + $0x1c] sm:$0xf] }
  0x46   : > { %v465_v28 = vor.u32 %v464_v23, %v460_v21  ;;  %v470_v34 = vrot.slane %v468_v29, 5  ;;  %v620_v42 = vrot.slane %v618_v37, 4  ;;  %v425_v22 = vshrl.u32 %v349_v45, 16 }
  0x47   : > { %v4213_v51 = vpack.c.b16 %v754_v7, %v753_v47  ;;  %v456_v30 = vrot.slane %v455_v27, 4  ;;  %v619_v47 = vsel %vm4072_vm2, %v3321_v13, %v618_v37  ;;  %v428_v48 = vshll.u32 %v349_v45, 16 }
  0x48   : > { %876 = vrot.lane.b32.xlu2 %v4116_v39, %s3958_s23  ;;  %v466_v31 = vrot.slane %v465_v28, 4  ;;  %v434_v50 = vshll.u32 %v350_v46, 16  ;;  %v789_v56 = vunpack.c.l.b16 %v619_v47  ;;  %v3320_v2 = vrot.slane %v349_v45, 9 }
  0x49   : > { %914 = vrot.lane.b32.xlu1 %v4147_v24, %s3957_s22  ;;  %v485_v24 = vsel %vm4106_vm5, %v480_v53, %v484_v43  ;;  %v461_v36 = vsel %vm4106_vm5, %v456_v30, %v460_v21  ;;  %v621_v43 = vrot.slane %v354_v25, 5  ;;  %v438_v53 = vshrl.u32 %v350_v46, 16 }
  0x4a   : > { %v751_v6 = vunpack.c.l.b16 %v485_v24  ;;  %v749_v40 = vunpack.c.l.b16 %v461_v36  ;;  %v427_v24 = vrot.slane %v425_v22, 4  ;;  %v430_v60 = vrot.slane %v428_v48, 5  ;;  %v4314_v22 = vld [vmem:[%s4070_s14 + $0x24] sm:$0xff] }
  0x4b   : > { %v622_v7 = vsel %vm4072_vm2, %v620_v42, %v621_v43  ;;  %v436_v63 = vrot.slane %v434_v50, 5  ;;  %v440_v1 = vrot.slane %v438_v53, 4  ;;  %v614_v5 = vrot.slane %v351_v59, 5 }
  0x4c   : > { %v4240_v16 = vpack.c.b16 %v752_v8, %v751_v6  ;;  %v790_v57 = vunpack.c.l.b16 %v622_v7  ;;  %v346_v8 = vld [vmem:[%s4070_s14 + $0xc] sm:$0xf]  ;;  %v431_v10 = vor.u32 %v430_v60, %v427_v24  ;;  %v444_v12 = vshll.u32 %v351_v59, 16  ;;  %v4327_v60 = vld [vmem:[%s4070_s14] sm:$0xf] }
  0x4d   : > { %817 = vrot.lane.b32.xlu0 %v4211_v17, %s3954_s18  ;;  %v441_v11 = vor.u32 %v440_v1, %v436_v63  ;;  %v401_v18 = vshrl.u32 %v346_v8, 16  ;;  %v404_v19 = vshll.u32 %v346_v8, 16  ;;  %v410_v20 = vshll.u32 %v347_v9, 16 }
  0x4e   : > { %v4282_v6 = vpack.c.b16 %v790_v57, %v789_v56  ;;  %v414_v21 = vshrl.u32 %v347_v9, 16  ;;  %v432_v23 = vrot.slane %v431_v10, 4  ;;  %v446_v27 = vrot.slane %v444_v12, 5 }
  0x4f   : > { %v442_v25 = vrot.slane %v441_v11, 4  ;;  %v403_v30 = vrot.slane %v401_v18, 4  ;;  %v604_v47 = vrot.slane %v347_v9, 5  ;;  %v380_v9 = vshll.u32 %v4327_v60, 16 }
  0x50   : > { %777 = vrot.lane.b32.xlu2 %v4213_v51, %s3955_s19  ;;  %v416_v36 = vrot.slane %v414_v21, 4  ;;  %v437_v37 = vsel %vm4106_vm5, %v432_v23, %v436_v63  ;;  %v4330_v63 = vld [vmem:[%s4070_s14 + $0x4] sm:$0xf] }
  0x51   : > { %836 = vrot.lane.b32.xlu1 %v4218_v52, %s3952_s15  ;;  %v386_v10 = vshll.u32 %v4330_v63, 16  ;;  %v390_v11 = vshrl.u32 %v4330_v63, 16 }
  0x53   : > { %v392_v21 = vrot.slane %v390_v11, 4 }
  0x55   : > { %874 = vrot.lane.b32.xlu0 %v4186_v4, %s3958_s23 }
  0x58   : > { %855 = vrot.lane.b32.xlu2 %v4173_v58, %s3956_s21 }
  0x59   : > { %893 = vrot.lane.b32.xlu1 %v4182_v61, %s3953_s17 }
  0x5d   : > { %775 = vrot.lane.b32.xlu0 %v4240_v16, %s3955_s19 }
  0x60   : > { %912 = vrot.lane.b32.xlu2 %v4135_v62, %s3957_s22  ;;  %v471_v62 = vsel %vm4106_vm5, %v466_v31, %v470_v34  ;;  %v406_v31 = vrot.slane %v404_v19, 5  ;;  %v412_v34 = vrot.slane %v410_v20, 5  ;;  %v382_v19 = vrot.slane %v380_v9, 5 }
  0x61   : > { %815 = vrot.lane.b32.xlu1 %v4245_v26, %s3954_s18  ;;  %v750_v41 = vunpack.c.l.b16 %v471_v62  ;;  %v447_v62 = vsel %vm4106_vm5, %v442_v25, %v446_v27  ;;  %v388_v20 = vrot.slane %v386_v10, 5  ;;  %v345_v25 = vld [vmem:[%s4070_s14 + $0x8] sm:$0x1] }
  0x62   : > { %v748_v13 = vunpack.c.l.b16 %v447_v62  ;;  %v407_v43 = vor.u32 %v406_v31, %v403_v30  ;;  %v417_v45 = vor.u32 %v416_v36, %v412_v34  ;;  %v396_v30 = vshll.u32 %v345_v25, 16 }
  0x63   : > { %v4266_v44 = vpack.c.b16 %v750_v41, %v749_v40  ;;  %v348_v40 = vld [vmem:[%s4070_s14 + $0x14] sm:$0x1]  ;;  %v747_v41 = vunpack.c.l.b16 %v437_v37 }
  0x64   : > { %v408_v48 = vrot.slane %v407_v43, 4  ;;  %v418_v50 = vrot.slane %v417_v45, 4  ;;  %v607_v56 = vrot.slane %v348_v40, 5  ;;  %v398_v62 = vrot.slane %v396_v30, 5 }
  0x65   : > { %853 = vrot.lane.b32.xlu0 %v4213_v51, %s3956_s21  ;;  %v4309_v7 = vpack.c.b16 %v748_v13, %v747_v41  ;;  %v4358_v41 = vld [vmem:[%s4070_s14 + $0x18] sm:$0xff] }
  0x66   : > { %v413_v59 = vsel %vm4106_vm5, %v408_v48, %v412_v34 }
  0x67   : > { %v745_v1 = vunpack.c.l.b16 %v413_v59 }
  0x68   : > { %834 = vrot.lane.b32.xlu2 %v4252_v35, %s3952_s15 }
  0x69   : > { %872 = vrot.lane.b32.xlu1 %v4211_v17, %s3958_s23 }
  0x6d   : > { %910 = vrot.lane.b32.xlu0 %v4173_v58, %s3957_s22  ;;  %v611_v58 = vrot.slane %v350_v46, 5  ;;  %v420_v46 = vshll.u32 %v348_v40, 16 }
  0x6f   : > { %v613_v3 = vrot.slane %v611_v58, 4  ;;  %v612_v14 = vsel %vm4072_vm2, %v3320_v2, %v611_v58  ;;  %v422_v53 = vrot.slane %v420_v46, 5  ;;  %v3319_v58 = vrot.slane %v346_v8, 9 }
  0x70   : > { %891 = vrot.lane.b32.xlu2 %v4218_v52, %s3953_s17  ;;  %v787_v28 = vunpack.c.l.b16 %v612_v14  ;;  %v377_v8 = vshrl.u32 %v4327_v60, 16 }
  0x71   : > { %773 = vrot.lane.b32.xlu1 %v4266_v44, %s3955_s19  ;;  %v615_v15 = vsel %vm4072_vm2, %v613_v3, %v614_v5  ;;  %v423_v24 = vsel %vm4106_vm5, %v418_v50, %v422_v53  ;;  %v605_v3 = vsel %vm4072_vm2, %v3319_v58, %v604_v47  ;;  %v3318_v53 = vrot.slane %v4327_v60, 9 }
  0x72   : > { %v788_v29 = vunpack.c.l.b16 %v615_v15  ;;  %v746_v2 = vunpack.c.l.b16 %v423_v24  ;;  %v785_v14 = vunpack.c.l.b16 %v605_v3  ;;  %v379_v18 = vrot.slane %v377_v8, 4 }
  0x74   : > { %v4307_v42 = vpack.c.b16 %v788_v29, %v787_v28  ;;  %v4342_v12 = vpack.c.b16 %v746_v2, %v745_v1  ;;  %v383_v28 = vor.u32 %v382_v19, %v379_v18  ;;  %v393_v29 = vor.u32 %v392_v21, %v388_v20 }
  0x75   : > { %832 = vrot.lane.b32.xlu0 %v4275_v55, %s3952_s15 }
  0x76   : > { %v384_v36 = vrot.slane %v383_v28, 4  ;;  %v394_v37 = vrot.slane %v393_v29, 4 }
  0x77   : > { %v4318_v57 = vpop.permute.xlu2 %897 }
  0x78   : > { %813 = vrot.lane.b32.xlu2 %v4282_v6, %s3954_s18  ;;  %v389_v13 = vsel %vm4106_vm5, %v384_v36, %v388_v20  ;;  %v399_v43 = vsel %vm4106_vm5, %v394_v37, %v398_v62 }
  0x79   : > { %851 = vrot.lane.b32.xlu1 %v4240_v16, %s3956_s21  ;;  %v744_v48 = vunpack.c.l.b16 %v399_v43 }
  0x7d   : > { %889 = vrot.lane.b32.xlu0 %v4252_v35, %s3953_s17 }
  0x80   : > { %870 = vrot.lane.b32.xlu2 %v4245_v26, %s3958_s23 }
  0x81   : > { %908 = vrot.lane.b32.xlu1 %v4213_v51, %s3957_s22  ;;  %v606_v51 = vrot.slane %v604_v47, 4  ;;  %v743_v47 = vunpack.c.l.b16 %v389_v13  ;;  %v3327_v13 = vrot.slane %v4102_v32, 9 }
  0x83   : > { %v608_v5 = vsel %vm4072_vm2, %v606_v51, %v607_v56  ;;  %v600_v51 = vrot.slane %v345_v25, 5 }
  0x84   : > { %v786_v15 = vunpack.c.l.b16 %v608_v5 }
  0x85   : > { %811 = vrot.lane.b32.xlu0 %v4307_v42, %s3954_s18 }
  0x86   : > { %v4351_v27 = vpack.c.b16 %v786_v15, %v785_v14 }
  0x88   : > { %771 = vrot.lane.b32.xlu2 %v4309_v7, %s3955_s19 }
  0x89   : > { %830 = vrot.lane.b32.xlu1 %v4314_v22, %s3952_s15 }
  0x8d   : > { %868 = vrot.lane.b32.xlu0 %v4282_v6, %s3958_s23 }
  0x8f   : > { %v841_v34 = vpop.permute.xlu1 %840 }
  0x90   : > { %849 = vrot.lane.b32.xlu2 %v4266_v44, %s3956_s21 }
  0x91   : > { %887 = vrot.lane.b32.xlu1 %v4275_v55, %s3953_s17 }
  0x92   : > { %v879_v23 = vpop.permute.xlu2 %878 }
  0x95   : > { %769 = vrot.lane.b32.xlu0 %v4342_v12, %s3955_s19 }
  0x97   : > { %v822_v31 = vpop.permute.xlu0 %821 }
  0x98   : > { %906 = vrot.lane.b32.xlu2 %v4240_v16, %s3957_s22  ;;  %v597_v16 = vrot.slane %v4330_v63, 5  ;;  %v759_v63 = vpack.c.b16 %v744_v48, %v743_v47 }
  0x99   : > { %809 = vrot.lane.b32.xlu1 %v4351_v27, %s3954_s18 }
  0x9a   : > { %v820_v40 = vpop.permute.xlu2 %819  ;;  %v599_v58 = vrot.slane %v597_v16, 4  ;;  %v598_v1 = vsel %vm4072_vm2, %v3318_v53, %v597_v16  ;;  %v717_v16 = vrot.slane %v4126_v49, 5 }
  0x9b   : > { %v783_v8 = vunpack.c.l.b16 %v598_v1 }
  0x9c   : > { %v601_v60 = vsel %vm4072_vm2, %v599_v58, %v600_v51 }
  0x9d   : > { %847 = vrot.lane.b32.xlu0 %v4309_v7, %s3956_s21  ;;  %v784_v9 = vunpack.c.l.b16 %v601_v60 }
  0x9f   : > { %v782_v45 = vpop.permute.xlu0 %781  ;;  %v799_v14 = vpack.c.b16 %v784_v9, %v783_v8 }
  0xa0   : > { %v945_v46 = vsel %vm921_vm6, %v4182_v61, %v782_v45  ;;  %828 = vrot.lane.b32.xlu2 %v4358_v41, %s3952_s15 }
  0xa1   : > { %866 = vrot.lane.b32.xlu1 %v4307_v42, %s3958_s23  ;;  %v962_v33 = vsel %vm946_vm7, %v945_v46, %v822_v31  ;;  %v860_v50 = vpop.permute.xlu1 %859 }
  0xa2   : > { %v979_v56 = vsel %vm963_vm8, %v962_v33, %v841_v34  ;;  %v877_v59 = vpop.permute.xlu2 %876 }
  0xa3   : > { %v996_v61 = vsel %vm980_vm9, %v979_v56, %v860_v50 }
  0xa4   : > { %v1013_v24 = vsel %vm997_vm10, %v996_v61, %v879_v23 }
  0xa5   : > { %904 = vrot.lane.b32.xlu0 %v4266_v44, %s3957_s22  ;;  %v1030_v3 = vsel %vm1014_vm11, %v1013_v24, %v4318_v57  ;;  %v4391_v44 = vld [vmem:[%s4070_s14 + $0xc] sm:$0xff]  ;;  %v1907_v24 = vsel %vm921_vm6, %v4168_v54, 0 }
  0xa7   : > { %v917_v2 = vpop.permute.xlu0 %916 }
  0xa8   : > { %v1054_v5 = vsel %vm1031_vm12, %v1030_v3, %v917_v2  ;;  %885 = vrot.lane.b32.xlu2 %v4314_v22, %s3953_s17 }
  0xa9   : > { %767 = vrot.lane.b32.xlu1 %v759_v63, %s3955_s19  ;;  %1912 = vmatpush.bf16.xpose.msra.mxu0 %v1054_v5 }
  0xaa   : > { %3799 = vmatpush.bf16.xpose.msra.mxu2 %v1054_v5  ;;  %v778_v10 = vpop.permute.xlu2 %777 }
  0xab   : > { %v780_v11 = vpop.permute.xlu1 %779  ;;  %v939_v31 = vsel %vm921_vm6, %v4252_v35, %v778_v10 }
  0xac   : > { %v942_v57 = vsel %vm921_vm6, %v4218_v52, %v780_v11 }
  0xad   : > { %826 = vrot.lane.b32.xlu0 %v4391_v44, %s3952_s15  ;;  %v960_v18 = vsel %vm946_vm7, %v942_v57, %v820_v40  ;;  %s4979_s15 = scalar_lea.vmem [#allocation2], %s3313_s26  ;;  %s3815_s26 = smul.u32 24, %s4944_s25 }
  0xaf   : > { %v839_v15 = vpop.permute.xlu0 %838 }
  0xb0   : > { %807 = vrot.lane.b32.xlu2 %v799_v14, %s3954_s18  ;;  %v977_v19 = vsel %vm963_vm8, %v960_v18, %v839_v15  ;;  %v1901_v14 = vsel %vm921_vm6, %v4186_v4, 0 }
  0xb1   : > { %845 = vrot.lane.b32.xlu1 %v4342_v12, %s3956_s21 }
  0xb2   : > { %v856_v20 = vpop.permute.xlu2 %855 }
  0xb3   : > { %v858_v21 = vpop.permute.xlu1 %857 }
  0xb4   : > { %v994_v23 = vsel %vm980_vm9, %v977_v19, %v858_v21  ;;  %v1898_v21 = vsel %vm921_vm6, %v4211_v17, 0 }
  0xb5   : > { %883 = vrot.lane.b32.xlu0 %v4358_v41, %s3953_s17  ;;  %v1011_v52 = vsel %vm997_vm10, %v994_v23, %v877_v59 }
  0xb7   : > { %v896_v25 = vpop.permute.xlu0 %895 }
  0xb8   : > { %864 = vrot.lane.b32.xlu2 %v4351_v27, %s3958_s23  ;;  %v1028_v12 = vsel %vm1014_vm11, %v1011_v52, %v896_v25  ;;  %s3816_s23 = smul.u32 40, %s4944_s25  ;;  %s3705_s25 = sshll.u32 (%p4051_p5), %s3938_s30, 7 }
  0xb9   : > { %902 = vrot.lane.b32.xlu1 %v4309_v7, %s3957_s22  ;;  %v714_v7 = vrot.slane %v4113_v38, 5  ;;  %s5760_s22 = scalar_lea.vmem [#allocation3], %s3815_s26  ;;  %s2712_s17 = sadd.s32 (%p4051_p5), %s3934_s29, %s3705_s25 }
  0xba   : > { %v913_v28 = vpop.permute.xlu2 %912  ;;  %s5768_s24 = scalar_lea.vmem [#allocation5], %s3816_s23  ;;  %s3706_s18 = sshll.u32 (%p4051_p5), %s2712_s17, 3 }
  0xbb   : > { %v915_v29 = vpop.permute.xlu1 %914  ;;  %v716_v43 = vrot.slane %v714_v7, 4  ;;  %v715_v35 = vsel %vm4072_vm2, %v3327_v13, %v714_v7  ;;  %v1889_v13 = vsel %vm921_vm6, %v4307_v42, 0  ;;  %s5796_s21 = scalar_lea.vmem (%p4051_p5), %s5982_s5, %s3706_s18 }
  0xbc   : > { %v1051_v30 = vsel %vm1031_vm12, %v1028_v12, %v915_v29  ;;  %v918_v48 = vunpack.c.l.b16 %v715_v35  ;;  %v3372_v35 = vld [vmem:[%s5978_s1 + $0x8] sm:$0xf0] }
  0xbd   : > { %1913 = vmatpush.bf16.xpose.msra.mxu0 %v1051_v30  ;;  %3800 = vmatpush.bf16.xpose.msra.mxu2 %v1051_v30  ;;  %v718_v47 = vsel %vm4072_vm2, %v716_v43, %v717_v16 }
  0xbe   : > { %v919_v33 = vunpack.c.l.b16 %v718_v47 }
  0xbf   : > { %v818_v34 = vpop.permute.xlu0 %817 }
  0xc0   : > { %v958_v36 = vsel %vm946_vm7, %v939_v31, %v818_v34  ;;  %v920_v32 = vpack.c.b16 %v919_v33, %v918_v48 }
  0xc2   : > { %v835_v37 = vpop.permute.xlu2 %834  ;;  %v1910_v49 = vsel %vm921_vm6, %v920_v32, 0  ;;  %v3532_v32 = vld [vmem:[%s5978_s1 + $0x148] sm:$0xf0] }
  0xc3   : > { %v837_v62 = vpop.permute.xlu1 %836  ;;  %2081 = vmatpush.bf16.xpose.msra.mxu1 %v1910_v49  ;;  %3807 = vmatpush.bf16.xpose.msra.mxu3 %v1910_v49 }
  0xc4   : > { %v975_v27 = vsel %vm963_vm8, %v958_v36, %v837_v62 }
  0xc5   : > { %v992_v45 = vsel %vm980_vm9, %v975_v27, %v856_v20 }
  0xc7   : > { %v875_v40 = vpop.permute.xlu0 %874 }
  0xc8   : > { %v1009_v46 = vsel %vm997_vm10, %v992_v45, %v875_v40 }
  0xca   : > { %v892_v38 = vpop.permute.xlu2 %891 }
  0xcb   : > { %v894_v50 = vpop.permute.xlu1 %893  ;;  %2082 = vmatpush.bf16.xpose.msra.mxu1 %v1907_v24  ;;  %3808 = vmatpush.bf16.xpose.msra.mxu3 %v1907_v24  ;;  %v3713_v24 = vld [vmem:[%s4070_s14] sm:$0xff]  ;;  %s5780_s14 = scalar_lea.vmem [#allocation4], %s3815_s26 }
  0xcc   : > { %v1026_v53 = vsel %vm1014_vm11, %v1009_v46, %v894_v50  ;;  %v3723_v46 = vld [vmem:[%s5978_s1 + $0x4] sm:$0xf] }
  0xcd   : > { %v1048_v58 = vsel %vm1031_vm12, %v1026_v53, %v913_v28  ;;  %v1895_v28 = vsel %vm921_vm6, %v4245_v26, 0  ;;  %v3375_v47 = vor.u32 %v3723_v46, %v3372_v35  ;;  %v3763_v53 = vld [vmem:[%s5978_s1 + $0x144] sm:$0xf]  ;;  %v1133_v46 = vld [vmem:[%s5979_s2 + $0x68] sm:$0xff]  ;;  %v3378_v35 = vld [vmem:[%s5978_s1 + $0x10] sm:$0xf] }
  0xce   : > { %1914 = vmatpush.bf16.xpose.msra.mxu0 %v1048_v58  ;;  %3801 = vmatpush.bf16.xpose.msra.mxu2 %v1048_v58  ;;  %v3535_v49 = vor.u32 %v3763_v53, %v3532_v32  ;;  %v1136_v53 = vld [vmem:[%s5979_s2 + $0x80] sm:$0xff]  ;;  %v3769_v32 = vld [vmem:[%s5978_s1 + $0x174] sm:$0xf] }
  0xcf   : > { %v776_v51 = vpop.permute.xlu0 %775 }
  0xd0   : > { %v936_v0 = vsel %vm921_vm6, %v4275_v55, %v776_v51  ;;  %v1904_v55 = vsel %vm921_vm6, %v4116_v39, 0 }
  0xd2   : > { %v814_v61 = vpop.permute.xlu2 %813 }
  0xd3   : > { %v816_v56 = vpop.permute.xlu1 %815  ;;  %2083 = vmatpush.bf16.xpose.msra.mxu1 %v1904_v55  ;;  %3809 = vmatpush.bf16.xpose.msra.mxu3 %v1904_v55 }
  0xd4   : > { %v956_v59 = vsel %vm946_vm7, %v936_v0, %v816_v56  ;;  %v3725_v56 = vld [vmem:[%s5978_s1 + $0x14] sm:$0xf] }
  0xd5   : > { %v973_v1 = vsel %vm963_vm8, %v956_v59, %v835_v37  ;;  %v1892_v37 = vsel %vm921_vm6, %v4282_v6, 0  ;;  %v3380_v59 = vld [vmem:[%s5978_s1 + $0x18] sm:$0xf0] }
  0xd7   : > { %v854_v63 = vpop.permute.xlu0 %853 }
  0xd8   : > { %v990_v60 = vsel %vm980_vm9, %v973_v1, %v854_v63  ;;  %v3383_v63 = vor.u32 %v3725_v56, %v3380_v59  ;;  %v3959_v1 = vmov 0   ;;  %v1151_v59 = vld [vmem:[%s5979_s2 + $0xf8] sm:$0xff] }
  0xd9   : > { %3886 = vset.pattern.permute.xlu0 %v3959_v1  ;;  %3887 = vset.pattern.permute.xlu1 %v3959_v1 }
  0xda   : > { %v871_v9 = vpop.permute.xlu2 %870  ;;  %3885 = vset.pattern.permute.xlu2 %v3959_v1  ;;  %v3728_v1 = vld [vmem:[%s5978_s1 + $0x24] sm:$0xf0] }
  0xdb   : > { %v873_v2 = vpop.permute.xlu1 %872  ;;  %2084 = vmatpush.bf16.xpose.msra.mxu1 %v1901_v14  ;;  %3810 = vmatpush.bf16.xpose.msra.mxu3 %v1901_v14  ;;  %v3765_v14 = vld [vmem:[%s5978_s1 + $0x154] sm:$0xf] }
  0xdc   : > { %v1007_v3 = vsel %vm997_vm10, %v990_v60, %v873_v2  ;;  %v1122_v60 = vld [vmem:[%s5979_s2 + $0x10] sm:$0xff] }
  0xdd   : > { %v1024_v5 = vsel %vm1014_vm11, %v1007_v3, %v892_v38  ;;  %1196 = vperm.xlu1 %3887, %v1122_v60   ;;  %v3546_v60 = vld [vmem:[%s5978_s1 + $0x160] sm:$0xf] }
  0xdf   : > { %v911_v8 = vpop.permute.xlu0 %910 }
  0xe0   : > { %v1045_v54 = vsel %vm1031_vm12, %v1024_v5, %v911_v8 }
  0xe1   : > { %1915 = vmatpush.bf16.xpose.msra.mxu0 %v1045_v54  ;;  %3802 = vmatpush.bf16.xpose.msra.mxu2 %v1045_v54  ;;  %v1121_v54 = vld [vmem:[%s5979_s2 + $0x8] sm:$0xff] }
  0xe2   : > { %v772_v15 = vpop.permute.xlu2 %771  ;;  %1191 = vperm.xlu0 %3886, %v1121_v54   ;;  %v3771_v54 = vld [vmem:[%s5978_s1 + $0x184] sm:$0xf] }
  0xe3   : > { %v774_v10 = vpop.permute.xlu1 %773  ;;  %2085 = vmatpush.bf16.xpose.msra.mxu1 %v1898_v21  ;;  %3811 = vmatpush.bf16.xpose.msra.mxu3 %v1898_v21  ;;  %v930_v29 = vsel %vm921_vm6, %v4358_v41, %v772_v15  ;;  %v3388_v21 = vld [vmem:[%s5978_s1 + $0x28] sm:$0xf0] }
  0xe4   : > { %v933_v11 = vsel %vm921_vm6, %v4314_v22, %v774_v10  ;;  %v1124_v10 = vld [vmem:[%s5979_s2 + $0x20] sm:$0xff] }
  0xe5   : > { %v954_v39 = vsel %vm946_vm7, %v933_v11, %v814_v61  ;;  %1206 = vperm.xlu1 %3887, %v1124_v10   ;;  %v3564_v10 = vld [vmem:[%s5978_s1 + $0x188] sm:$0xf0] }
  0xe7   : > { %v833_v57 = vpop.permute.xlu0 %832 }
  0xe8   : > { %v971_v18 = vsel %vm963_vm8, %v954_v39, %v833_v57  ;;  %v3540_v57 = vld [vmem:[%s5978_s1 + $0x158] sm:$0xf0] }
  0xe9   : > { %v3543_v39 = vor.u32 %v3765_v14, %v3540_v57  ;;  %v3733_v14 = vld [vmem:[%s5978_s1 + $0x54] sm:$0xf]  ;;  %v3412_v57 = vld [vmem:[%s5978_s1 + $0x58] sm:$0xf0] }
  0xea   : > { %v850_v52 = vpop.permute.xlu2 %849 }
  0xeb   : > { %v852_v19 = vpop.permute.xlu1 %851  ;;  %2086 = vmatpush.bf16.xpose.msra.mxu1 %v1895_v28  ;;  %3812 = vmatpush.bf16.xpose.msra.mxu3 %v1895_v28 }
  0xec   : > { %v988_v20 = vsel %vm980_vm9, %v971_v18, %v852_v19 }
  0xed   : > { %v1005_v22 = vsel %vm997_vm10, %v988_v20, %v871_v9  ;;  %v3727_v20 = vld [vmem:[%s5978_s1 + $0x24] sm:$0xf] }
  0xef   : > { %v890_v23 = vpop.permute.xlu0 %889 }
  0xf0   : > { %v1022_v4 = vsel %vm1014_vm11, %v1005_v22, %v890_v23 }
  0xf2   : > { %v907_v36 = vpop.permute.xlu2 %906 }
  0xf3   : > { %v909_v25 = vpop.permute.xlu1 %908  ;;  %2087 = vmatpush.bf16.xpose.msra.mxu1 %v1892_v37  ;;  %3813 = vmatpush.bf16.xpose.msra.mxu3 %v1892_v37 }
  0xf4   : > { %v1042_v12 = vsel %vm1031_vm12, %v1022_v4, %v909_v25  ;;  %v3391_v4 = vor.u32 %v3727_v20, %v3388_v21  ;;  %v1120_v25 = vld [vmem:[%s5979_s2] sm:$0xff]  ;;  %v3394_v20 = vld [vmem:[%s5978_s1 + $0x30] sm:$0xf]  ;;  %v3730_v21 = vld [vmem:[%s5978_s1 + $0x34] sm:$0xf0] }
  0xf5   : > { %1916 = vmatpush.bf16.xpose.msra.mxu0 %v1042_v12  ;;  %3803 = vmatpush.bf16.xpose.msra.mxu2 %v1042_v12  ;;  %v1127_v12 = vld [vmem:[%s5979_s2 + $0x38] sm:$0xff] }
  0xf6   : > { %1186 = vperm.xlu2 %3885, %v1120_v25   ;;  %1221 = vperm.xlu1 %3887, %v1127_v12   ;;  %v1149_v12 = vld [vmem:[%s5979_s2 + $0xe8] sm:$0xff] }
  0xf7   : > { %v812_v17 = vpop.permute.xlu0 %811 }
  0xf8   : > { %v952_v30 = vsel %vm946_vm7, %v930_v29, %v812_v17  ;;  %v3370_v17 = vld [vmem:[%s5978_s1] sm:$0xf] }
  0xfa   : > { %v829_v16 = vpop.permute.xlu2 %828 }
  0xfb   : > { %v831_v31 = vpop.permute.xlu1 %830  ;;  %2088 = vmatpush.bf16.xpose.msra.mxu1 %v1889_v13  ;;  %3814 = vmatpush.bf16.xpose.msra.mxu3 %v1889_v13  ;;  %v3729_v13 = vld [vmem:[%s5978_s1 + $0x34] sm:$0xf] }
  0xfc   : > { %v969_v34 = vsel %vm963_vm8, %v952_v30, %v831_v31  ;;  %v3724_v30 = vld [vmem:[%s5978_s1 + $0x4] sm:$0xf0]  ;;  %v3530_v31 = vld [vmem:[%s5978_s1 + $0x140] sm:$0xf] }
  0xfd   : > { %v986_v26 = vsel %vm980_vm9, %v969_v34, %v850_v52  ;;  %v1126_v52 = vld [vmem:[%s5979_s2 + $0x30] sm:$0xff]  ;;  %v3764_v34 = vld [vmem:[%s5978_s1 + $0x144] sm:$0xf0] }
  0xfe   : > { %1216 = vperm.xlu0 %3886, %v1126_v52   ;;  %v3531_v37 = vor.u32 %v3764_v34, %v3530_v31  ;;  %v1140_v52 = vld [vmem:[%s5979_s2 + $0xa0] sm:$0xff]  ;;  %v3420_v34 = vld [vmem:[%s5978_s1 + $0x68] sm:$0xf0] }
  0xff   : > { %v869_v62 = vpop.permute.xlu0 %868  ;;  %v3735_v31 = vld [vmem:[%s5978_s1 + $0x64] sm:$0xf] }
 0x100   : > { %v1003_v27 = vsel %vm997_vm10, %v986_v26, %v869_v62  ;;  %v1129_v62 = vld [vmem:[%s5979_s2 + $0x48] sm:$0xff]  ;;  %v1123_v26 = vld [vmem:[%s5979_s2 + $0x18] sm:$0xff] }
 0x101   : > { %1201 = vperm.xlu2 %3885, %v1123_v26   ;;  %v1137_v26 = vld [vmem:[%s5979_s2 + $0x88] sm:$0xff] }
 0x102   : > { %3624 = vmatmul.msk.bf16.vlgmr.msra.gmra.mxu1 %vm921_vm6, %v3375_v47  ;;  %v886_v50 = vpop.permute.xlu2 %885  ;;  %3644 = vmatmul.msk.bf16.vlgmr.msra.gmra.mxu3 %vm921_vm6, %v3535_v49  ;;  %v3726_v47 = vld [vmem:[%s5978_s1 + $0x14] sm:$0xf0] }
 0x103   : > { %v888_v41 = vpop.permute.xlu1 %887 }
 0x104   : > { %v1020_v7 = vsel %vm1014_vm11, %v1003_v27, %v888_v41  ;;  %v1130_v27 = vld [vmem:[%s5979_s2 + $0x50] sm:$0xff]  ;;  %v3767_v41 = vld [vmem:[%s5978_s1 + $0x164] sm:$0xf] }
 0x105   : > { %v1039_v40 = vsel %vm1031_vm12, %v1020_v7, %v907_v36  ;;  %v3371_v36 = vor.u32 %v3724_v30, %v3370_v17  ;;  %v3548_v7 = vld [vmem:[%s5978_s1 + $0x168] sm:$0xf0]  ;;  %1236 = vperm.xlu1 %3887, %v1130_v27   ;;  %v3572_v17 = vld [vmem:[%s5978_s1 + $0x198] sm:$0xf0]  ;;  %v3402_v27 = vld [vmem:[%s5978_s1 + $0x40] sm:$0xf] }
 0x106   : > { %1917 = vmatpush.bf16.xpose.msra.mxu0 %v1039_v40  ;;  %3804 = vmatpush.bf16.xpose.msra.mxu2 %v1039_v40  ;;  %v3551_v40 = vor.u32 %v3767_v41, %v3548_v7  ;;  %v3732_v41 = vld [vmem:[%s5978_s1 + $0x44] sm:$0xf0]  ;;  %v3562_v7 = vld [vmem:[%s5978_s1 + $0x180] sm:$0xf] }
 0x107   : > { %v770_v43 = vpop.permute.xlu0 %769  ;;  %1231 = vperm.xlu0 %3886, %v1129_v62   ;;  %v1144_v62 = vld [vmem:[%s5979_s2 + $0xc0] sm:$0xff] }
 0x108   : > { %v927_v6 = vsel %vm921_vm6, %v4391_v44, %v770_v43  ;;  %v3396_v43 = vld [vmem:[%s5978_s1 + $0x38] sm:$0xf0] }
 0x10a   : > { %v808_v3 = vpop.permute.xlu2 %807 }
 0x10b   : > { %v810_v45 = vpop.permute.xlu1 %809 }
 0x10c   : > { %v950_v42 = vsel %vm946_vm7, %v927_v6, %v810_v45  ;;  %v1132_v6 = vld [vmem:[%s5979_s2 + $0x60] sm:$0xff]  ;;  %v1125_v45 = vld [vmem:[%s5979_s2 + $0x28] sm:$0xff] }
 0x10d   : > { %v967_v33 = vsel %vm963_vm8, %v950_v42, %v829_v16  ;;  %v3399_v16 = vor.u32 %v3729_v13, %v3396_v43  ;;  %1211 = vperm.xlu2 %3885, %v1125_v45   ;;  %v3538_v42 = vld [vmem:[%s5978_s1 + $0x150] sm:$0xf]  ;;  %1251 = vperm.xlu1 %3887, %v1133_v46   ;;  %v3403_v13 = vor.u32 %v3732_v41, %v3402_v27  ;;  %v3775_v46 = vld [vmem:[%s5978_s1 + $0x1a4] sm:$0xf]  ;;  %v3738_v41 = vld [vmem:[%s5978_s1 + $0x74] sm:$0xf0] }
 0x10e   : > { %v1182_v45 = vld [vmem:[%s5979_s2 + $0x1f0] sm:$0xff] }
 0x10f   : > { %v848_v48 = vpop.permute.xlu0 %847  ;;  %1246 = vperm.xlu0 %3886, %v1132_v6   ;;  %v1143_v6 = vld [vmem:[%s5979_s2 + $0xb8] sm:$0xff] }
 0x110   : > { %v984_v44 = vsel %vm980_vm9, %v967_v33, %v848_v48  ;;  %v3766_v48 = vld [vmem:[%s5978_s1 + $0x154] sm:$0xf0]  ;;  %v3379_v33 = vor.u32 %v3726_v47, %v3378_v35  ;;  %v3580_v35 = vld [vmem:[%s5978_s1 + $0x1a8] sm:$0xf0] }
 0x111   : > { %v3583_v47 = vor.u32 %v3775_v46, %v3580_v35  ;;  %v1175_v35 = vld [vmem:[%s5979_s2 + $0x1b8] sm:$0xff] }
 0x112   : > { %3625 = vmatmul.msk.bf16.gmra.mxu1 %vm921_vm6, %v3383_v63  ;;  %v865_v18 = vpop.permute.xlu2 %864  ;;  %3645 = vmatmul.msk.bf16.gmra.mxu3 %vm921_vm6, %v3543_v39  ;;  %v3386_v63 = vld [vmem:[%s5978_s1 + $0x20] sm:$0xf]  ;;  %v3415_v39 = vor.u32 %v3733_v14, %v3412_v57  ;;  %v3776_v57 = vld [vmem:[%s5978_s1 + $0x1a4] sm:$0xf0] }
 0x113   : > { %v867_v38 = vpop.permute.xlu1 %866  ;;  %v3578_v14 = vld [vmem:[%s5978_s1 + $0x1a0] sm:$0xf] }
 0x114   : > { %v1001_v58 = vsel %vm997_vm10, %v984_v44, %v867_v38  ;;  %v3539_v44 = vor.u32 %v3766_v48, %v3538_v42  ;;  %v1128_v38 = vld [vmem:[%s5979_s2 + $0x40] sm:$0xff]  ;;  %v3737_v42 = vld [vmem:[%s5978_s1 + $0x74] sm:$0xf]  ;;  %v3428_v48 = vld [vmem:[%s5978_s1 + $0x78] sm:$0xf0] }
 0x115   : > { %v1018_v51 = vsel %vm1014_vm11, %v1001_v58, %v886_v50  ;;  %v1135_v50 = vld [vmem:[%s5979_s2 + $0x78] sm:$0xff]  ;;  %1226 = vperm.xlu2 %3885, %v1128_v38   ;;  %1266 = vperm.xlu1 %3887, %v1136_v53   ;;  %v1165_v38 = vld [vmem:[%s5979_s2 + $0x168] sm:$0xff]  ;;  %v3410_v53 = vld [vmem:[%s5978_s1 + $0x50] sm:$0xf] }
 0x116   : > { %v3556_v58 = vld [vmem:[%s5978_s1 + $0x178] sm:$0xf0] }
 0x117   : > { %v905_v0 = vpop.permute.xlu0 %904  ;;  %1261 = vperm.xlu0 %3886, %v1135_v50   ;;  %v3559_v49 = vor.u32 %v3769_v32, %v3556_v58  ;;  %v1138_v50 = vld [vmem:[%s5979_s2 + $0x90] sm:$0xff]  ;;  %v3734_v32 = vld [vmem:[%s5978_s1 + $0x54] sm:$0xf0] }
 0x118   : > { %v1036_v61 = vsel %vm1031_vm12, %v1018_v51, %v905_v0  ;;  %v3731_v51 = vld [vmem:[%s5978_s1 + $0x44] sm:$0xf]  ;;  %v3404_v0 = vld [vmem:[%s5978_s1 + $0x48] sm:$0xf0]  ;;  %v3570_v58 = vld [vmem:[%s5978_s1 + $0x190] sm:$0xf] }
 0x119   : > { %1918 = vmatpush.bf16.xpose.msra.mxu0 %v1036_v61  ;;  %3805 = vmatpush.bf16.xpose.msra.mxu2 %v1036_v61  ;;  %v3407_v56 = vor.u32 %v3731_v51, %v3404_v0  ;;  %v1131_v61 = vld [vmem:[%s5979_s2 + $0x58] sm:$0xff]  ;;  %v3411_v51 = vor.u32 %v3734_v32, %v3410_v53 }
 0x11b   : > { %v768_v2 = vpop.permute.xlu1 %767 }
 0x11c   : > { %v924_v55 = vsel %vm921_vm6, %v3713_v24, %v768_v2  ;;  %v1148_v24 = vld [vmem:[%s5979_s2 + $0xe0] sm:$0xff]  ;;  %v3768_v2 = vld [vmem:[%s5978_s1 + $0x164] sm:$0xf0] }
 0x11d   : > { %v948_v8 = vsel %vm946_vm7, %v924_v55, %v808_v3  ;;  %1241 = vperm.xlu2 %3885, %v1131_v61   ;;  %1326 = vperm.xlu1 %3887, %v1148_v24   ;;  %v3387_v3 = vor.u32 %v3728_v1, %v3386_v63  ;;  %v3547_v55 = vor.u32 %v3768_v2, %v3546_v60  ;;  %v1162_v61 = vld [vmem:[%s5979_s2 + $0x150] sm:$0xff]  ;;  %v3588_v63 = vld [vmem:[%s5978_s1 + $0x1b8] sm:$0xf0]  ;;  %v3739_v2 = vld [vmem:[%s5978_s1 + $0x84] sm:$0xf] }
 0x11e   : > { %v3777_v24 = vld [vmem:[%s5978_s1 + $0x1b4] sm:$0xf] }
 0x11f   : > { %v827_v5 = vpop.permute.xlu0 %826  ;;  %1341 = vperm.xlu0 %3886, %v1151_v59   ;;  %v1166_v59 = vld [vmem:[%s5979_s2 + $0x170] sm:$0xff]  ;;  %v3591_v1 = vor.u32 %v3777_v24, %v3588_v63  ;;  %v3434_v24 = vld [vmem:[%s5978_s1 + $0x80] sm:$0xf] }
 0x120   : > { %v965_v9 = vsel %vm963_vm8, %v948_v8, %v827_v5  ;;  %v1146_v5 = vld [vmem:[%s5979_s2 + $0xd0] sm:$0xff] }
 0x121   : > { %v1134_v8 = vld [vmem:[%s5979_s2 + $0x70] sm:$0xff] }
 0x122   : > { %3626 = vmatmul.msk.bf16.gmra.mxu1 %vm921_vm6, %v3391_v4  ;;  %3646 = vmatmul.msk.bf16.gmra.mxu3 %vm921_vm6, %v3551_v40  ;;  %v3395_v4 = vor.u32 %v3730_v21, %v3394_v20  ;;  %v3772_v40 = vld [vmem:[%s5978_s1 + $0x184] sm:$0xf0]  ;;  %v1180_v21 = vld [vmem:[%s5979_s2 + $0x1e0] sm:$0xff] }
 0x123   : > { %v846_v11 = vpop.permute.xlu1 %845  ;;  %v3563_v43 = vor.u32 %v3772_v40, %v3562_v7  ;;  %v1161_v20 = vld [vmem:[%s5979_s2 + $0x148] sm:$0xff]  ;;  %v3586_v7 = vld [vmem:[%s5978_s1 + $0x1b0] sm:$0xf]  ;;  %v3778_v40 = vld [vmem:[%s5978_s1 + $0x1b4] sm:$0xf0] }
 0x124   : > { %v982_v15 = vsel %vm980_vm9, %v965_v9, %v846_v11  ;;  %v1147_v9 = vld [vmem:[%s5979_s2 + $0xd8] sm:$0xff]  ;;  %v3567_v11 = vor.u32 %v3771_v54, %v3564_v10  ;;  %v3418_v10 = vld [vmem:[%s5978_s1 + $0x60] sm:$0xf] }
 0x125   : > { %v999_v23 = vsel %vm997_vm10, %v982_v15, %v865_v18  ;;  %1256 = vperm.xlu2 %3885, %v1134_v8   ;;  %1321 = vperm.xlu1 %3887, %v1147_v9   ;;  %v1145_v15 = vld [vmem:[%s5979_s2 + $0xc8] sm:$0xff]  ;;  %v1150_v18 = vld [vmem:[%s5979_s2 + $0xf0] sm:$0xff]  ;;  %v1183_v8 = vld [vmem:[%s5979_s2 + $0x1f8] sm:$0xff] }
 0x126   : > { %v1179_v9 = vld [vmem:[%s5979_s2 + $0x1d8] sm:$0xff] }
 0x127   : > { %v884_v19 = vpop.permute.xlu0 %883  ;;  %1316 = vperm.xlu0 %3886, %v1146_v5   ;;  %v1178_v5 = vld [vmem:[%s5979_s2 + $0x1d0] sm:$0xff] }
 0x128   : > { %v1016_v22 = vsel %vm1014_vm11, %v999_v23, %v884_v19  ;;  %v1142_v19 = vld [vmem:[%s5979_s2 + $0xb0] sm:$0xff] }
 0x129   : > { %v3554_v23 = vld [vmem:[%s5978_s1 + $0x170] sm:$0xf] }
 0x12b   : > { %v903_v28 = vpop.permute.xlu1 %902 }
 0x12c   : > { %v1033_v29 = vsel %vm1031_vm12, %v1016_v22, %v903_v28  ;;  %v3770_v22 = vld [vmem:[%s5978_s1 + $0x174] sm:$0xf0]  ;;  %v1141_v28 = vld [vmem:[%s5979_s2 + $0xa8] sm:$0xff] }
 0x12d   : > { %1919 = vmatpush.bf16.xpose.msra.mxu0 %v1033_v29  ;;  %3806 = vmatpush.bf16.xpose.msra.mxu2 %v1033_v29  ;;  %v3555_v25 = vor.u32 %v3770_v22, %v3554_v23  ;;  %v3773_v29 = vld [vmem:[%s5978_s1 + $0x194] sm:$0xf]  ;;  %v3779_v22 = vld [vmem:[%s5978_s1 + $0x1c4] sm:$0xf] }
 0x12e   : > { %1336 = vperm.xlu2 %3885, %v1150_v18   ;;  %1296 = vperm.xlu1 %3887, %v1142_v19   ;;  %v3575_v30 = vor.u32 %v3773_v29, %v3572_v17  ;;  %v3579_v19 = vor.u32 %v3776_v57, %v3578_v14 }
 0x12f   : > { %1311 = vperm.xlu0 %3886, %v1145_v15  }
 0x132   : > { %3627 = vmatmul.msk.bf16.gmra.mxu1 %vm921_vm6, %v3399_v16  ;;  %3647 = vmatmul.msk.bf16.gmra.mxu3 %vm921_vm6, %v3559_v49  ;;  %v1167_v16 = vld [vmem:[%s5979_s2 + $0x178] sm:$0xff] }
 0x133   : > { %v3774_v49 = vld [vmem:[%s5978_s1 + $0x194] sm:$0xf0] }
 0x134   : > { %1920 = vmatmul.bf16.vlgmr.msra.gmra.mxu0 %v3371_v36  ;;  %2020 = vmatmul.bf16.vlgmr.msra.gmra.mxu2 %v3531_v37  ;;  %v3423_v36 = vor.u32 %v3735_v31, %v3420_v34  ;;  %v1139_v37 = vld [vmem:[%s5979_s2 + $0x98] sm:$0xff]  ;;  %v3571_v0 = vor.u32 %v3774_v49, %v3570_v58  ;;  %v1172_v49 = vld [vmem:[%s5979_s2 + $0x1a0] sm:$0xff] }
 0x135   : > { %v1163_v31 = vld [vmem:[%s5979_s2 + $0x158] sm:$0xff] }
 0x136   : > { %1331 = vperm.xlu2 %3885, %v1149_v12   ;;  %1291 = vperm.xlu1 %3887, %v1141_v28   ;;  %v1159_v34 = vld [vmem:[%s5979_s2 + $0x138] sm:$0xff] }
 0x137   : > { %1286 = vperm.xlu0 %3886, %v1140_v52  }
 0x13e   : > { %1306 = vperm.xlu2 %3885, %v1144_v62   ;;  %1271 = vperm.xlu1 %3887, %v1137_v26   ;;  %v3444_v62 = vld [vmem:[%s5978_s1 + $0x98] sm:$0xf0]  ;;  %v3426_v26 = vld [vmem:[%s5978_s1 + $0x70] sm:$0xf] }
 0x13f   : > { %1281 = vperm.xlu0 %3886, %v1139_v37   ;;  %v3741_v37 = vld [vmem:[%s5978_s1 + $0x94] sm:$0xf] }
 0x140   : > { %v3447_v27 = vor.u32 %v3741_v37, %v3444_v62 }
 0x142   : > { %3628 = vmatmul.msk.bf16.gmra.mxu1 %vm921_vm6, %v3407_v56  ;;  %3648 = vmatmul.msk.bf16.gmra.mxu3 %vm921_vm6, %v3567_v11  ;;  %v1181_v56 = vld [vmem:[%s5979_s2 + $0x1e8] sm:$0xff] }
 0x143   : > { %v3736_v11 = vld [vmem:[%s5978_s1 + $0x64] sm:$0xf0] }
 0x144   : > { %1925 = vmatmul.bf16.gmra.mxu0 %v3379_v33  ;;  %2025 = vmatmul.bf16.gmra.mxu2 %v3539_v44  ;;  %v3431_v33 = vor.u32 %v3737_v42, %v3428_v48  ;;  %v1164_v44 = vld [vmem:[%s5979_s2 + $0x160] sm:$0xff]  ;;  %v3419_v18 = vor.u32 %v3736_v11, %v3418_v10  ;;  %v3781_v48 = vld [vmem:[%s5978_s1 + $0x1d4] sm:$0xf] }
 0x146   : > { %1301 = vperm.xlu2 %3885, %v1143_v6   ;;  %1496 = vperm.xlu1 %3887, %v1182_v45   ;;  %v3427_v6 = vor.u32 %v3738_v41, %v3426_v26  ;;  %v3587_v45 = vor.u32 %v3778_v40, %v3586_v7  ;;  %v1157_v41 = vld [vmem:[%s5979_s2 + $0x128] sm:$0xff] }
 0x147   : > { %1421 = vperm.xlu0 %3886, %v1167_v16   ;;  %v1153_v7 = vld [vmem:[%s5979_s2 + $0x108] sm:$0xff] }
 0x14e   : > { %1276 = vperm.xlu2 %3885, %v1138_v50   ;;  %1411 = vperm.xlu1 %3887, %v1165_v38  }
 0x14f   : > { %1406 = vperm.xlu0 %3886, %v1164_v44   ;;  %v1156_v44 = vld [vmem:[%s5979_s2 + $0x120] sm:$0xff] }
 0x150   : > { %v4782_v60 = vpop.permute.xlu2 %1186 }
 0x152   : > { %3629 = vmatmul.msk.bf16.gmra.mxu1 %vm921_vm6, %v3415_v39  ;;  %3649 = vmatmul.msk.bf16.gmra.mxu3 %vm921_vm6, %v3575_v30  ;;  %v4814_v39 = vpop.permute.xlu1 %1196  ;;  %v1158_v30 = vld [vmem:[%s5979_s2 + $0x130] sm:$0xff] }
 0x154   : > { %1930 = vmatmul.bf16.gmra.mxu0 %v3387_v3  ;;  %2030 = vmatmul.bf16.gmra.mxu2 %v3547_v55  ;;  %v3436_v3 = vld [vmem:[%s5978_s1 + $0x88] sm:$0xf0]  ;;  %v4836_v12 = vpop.permute.xlu0 %1191 }
 0x155   : > { %v3439_v55 = vor.u32 %v3739_v2, %v3436_v3  ;;  %v3594_v2 = vld [vmem:[%s5978_s1 + $0x1c0] sm:$0xf]  ;;  %v3780_v3 = vld [vmem:[%s5978_s1 + $0x1c4] sm:$0xf0] }
 0x156   : > { %1416 = vperm.xlu2 %3885, %v1166_v59   ;;  %1396 = vperm.xlu1 %3887, %v1162_v61   ;;  %v3743_v59 = vld [vmem:[%s5978_s1 + $0xa4] sm:$0xf]  ;;  %v3452_v61 = vld [vmem:[%s5978_s1 + $0xa8] sm:$0xf0]  ;;  %v3595_v10 = vor.u32 %v3780_v3, %v3594_v2 }
 0x157   : > { %1491 = vperm.xlu0 %3886, %v1181_v56   ;;  %v3455_v63 = vor.u32 %v3743_v59, %v3452_v61  ;;  %v1169_v3 = vld [vmem:[%s5979_s2 + $0x188] sm:$0xff] }
 0x15a   : > { %v4841_v29 = vpop.permute.xlu1 %1206 }
 0x15b   : > { %v4816_v15 = vpop.permute.xlu2 %1201 }
 0x15e   : > { %1501 = vperm.xlu2 %3885, %v1183_v8   ;;  %1481 = vperm.xlu1 %3887, %v1179_v9  }
 0x15f   : > { %1476 = vperm.xlu0 %3886, %v1178_v5  }
 0x162   : > { %3630 = vmatmul.msk.bf16.gmra.mxu1 %vm921_vm6, %v3423_v36  ;;  %3650 = vmatmul.msk.bf16.gmra.mxu3 %vm921_vm6, %v3583_v47  ;;  %v1160_v47 = vld [vmem:[%s5979_s2 + $0x140] sm:$0xff] }
 0x164   : > { %1935 = vmatmul.bf16.gmra.mxu0 %v3395_v4  ;;  %2035 = vmatmul.bf16.gmra.mxu2 %v3555_v25  ;;  %v3596_v4 = vld [vmem:[%s5978_s1 + $0x1c8] sm:$0xf0]  ;;  %v1176_v25 = vld [vmem:[%s5979_s2 + $0x1c0] sm:$0xff] }
 0x165   : > { %v3599_v52 = vor.u32 %v3779_v22, %v3596_v4  ;;  %v3612_v22 = vld [vmem:[%s5978_s1 + $0x1e8] sm:$0xf0] }
 0x166   : > { %1486 = vperm.xlu2 %3885, %v1180_v21   ;;  %1466 = vperm.xlu1 %3887, %v1176_v25   ;;  %v3783_v21 = vld [vmem:[%s5978_s1 + $0x1e4] sm:$0xf] }
 0x167   : > { %1391 = vperm.xlu0 %3886, %v1161_v20   ;;  %v4838_v28 = vpop.permute.xlu2 %1211  ;;  %v3615_v25 = vor.u32 %v3783_v21, %v3612_v22 }
 0x168   : > { %v4879_v16 = vpop.permute.xlu1 %1221 }
 0x16e   : > { %1401 = vperm.xlu2 %3885, %v1163_v31   ;;  %1381 = vperm.xlu1 %3887, %v1159_v34  }
 0x16f   : > { %1376 = vperm.xlu0 %3886, %v1158_v30  }
 0x172   : > { %3631 = vmatmul.msk.bf16.gmra.mxu1 %vm921_vm6, %v3431_v33  ;;  %3651 = vmatmul.msk.bf16.gmra.mxu3 %vm921_vm6, %v3591_v1  ;;  %v3604_v33 = vld [vmem:[%s5978_s1 + $0x1d8] sm:$0xf0]  ;;  %v3740_v1 = vld [vmem:[%s5978_s1 + $0x84] sm:$0xf0] }
 0x173   : > { %v3607_v50 = vor.u32 %v3781_v48, %v3604_v33  ;;  %v3435_v9 = vor.u32 %v3740_v1, %v3434_v24  ;;  %v3742_v48 = vld [vmem:[%s5978_s1 + $0x94] sm:$0xf0]  ;;  %v3602_v33 = vld [vmem:[%s5978_s1 + $0x1d0] sm:$0xf] }
 0x174   : > { %1940 = vmatmul.bf16.gmra.mxu0 %v3403_v13  ;;  %2040 = vmatmul.bf16.gmra.mxu2 %v3563_v43  ;;  %v4874_v13 = vpop.permute.xlu0 %1216  ;;  %v4876_v43 = vpop.permute.xlu2 %1226 }
 0x176   : > { %1386 = vperm.xlu2 %3885, %v1160_v47   ;;  %1366 = vperm.xlu1 %3887, %v1156_v44   ;;  %v3782_v44 = vld [vmem:[%s5978_s1 + $0x1d4] sm:$0xf0] }
 0x177   : > { %1461 = vperm.xlu0 %3886, %v1175_v35   ;;  %v4905_v32 = vpop.permute.xlu1 %1236  ;;  %v3442_v35 = vld [vmem:[%s5978_s1 + $0x90] sm:$0xf]  ;;  %v3603_v61 = vor.u32 %v3782_v44, %v3602_v33  ;;  %v3784_v33 = vld [vmem:[%s5978_s1 + $0x1e4] sm:$0xf0] }
 0x178   : > { %v3443_v59 = vor.u32 %v3742_v48, %v3442_v35  ;;  %v3610_v48 = vld [vmem:[%s5978_s1 + $0x1e0] sm:$0xf] }
 0x17c   : > { %v4900_v38 = vpop.permute.xlu0 %1231  ;;  %v4902_v53 = vpop.permute.xlu2 %1241 }
 0x17f   : > { %v4800_v54 = vpop.f32.mrf.mxu1  ;;  %1446 = vperm.xlu0 %3886, %v1172_v49   ;;  %v4946_v8 = vpop.permute.xlu1 %1251 }
 0x182   : > { %3632 = vmatmul.msk.bf16.gmra.mxu1 %vm921_vm6, %v3439_v55  ;;  %3652 = vmatmul.msk.bf16.gmra.mxu3 %vm921_vm6, %v3599_v52 }
 0x184   : > { %1945 = vmatmul.bf16.gmra.mxu0 %v3411_v51  ;;  %2045 = vmatmul.bf16.gmra.mxu2 %v3571_v0  ;;  %v1177_v51 = vld [vmem:[%s5979_s2 + $0x1c8] sm:$0xff]  ;;  %v4938_v55 = vpop.permute.xlu0 %1246  ;;  %v4940_v5 = vpop.permute.xlu2 %1256 }
 0x185   : > { %v4843_v17 = vpop.f32.mrf.mxu3  ;;  %v1173_v0 = vld [vmem:[%s5979_s2 + $0x1a8] sm:$0xff]  ;;  %1471 = vperm.xlu2 %3885, %v1177_v51  }
 0x186   : > { %1451 = vperm.xlu1 %3887, %v1173_v0  }
 0x187   : > { %v4825_v23 = vpop.f32.mrf.mxu1  ;;  %v4977_v37 = vpop.permute.xlu1 %1266 }
 0x18c   : > { %v4970_v52 = vpop.permute.xlu0 %1261  ;;  %v4972_v30 = vpop.permute.xlu2 %1336 }
 0x18d   : > { %v4881_v46 = vpop.f32.mrf.mxu3  ;;  %6001 = vst [vmem:[#allocation6_spill] sm:$0xff] %v4972_v30 }
 0x18f   : > { %v4854_v36 = vpop.f32.mrf.mxu1  ;;  %v5022_v0 = vpop.permute.xlu1 %1326 }
 0x190   : > { %6004 = vst [vmem:[#allocation9_spill] sm:$0xff] %v5022_v0 }
 0x192   : > { %3633 = vmatmul.msk.bf16.gmra.mxu1 %vm921_vm6, %v3447_v27  ;;  %3653 = vmatmul.msk.bf16.gmra.mxu3 %vm921_vm6, %v3607_v50  ;;  %v1152_v27 = vld [vmem:[%s5979_s2 + $0x100] sm:$0xff] }
 0x194   : > { %1950 = vmatmul.bf16.gmra.mxu0 %v3419_v18  ;;  %2050 = vmatmul.bf16.gmra.mxu2 %v3579_v19  ;;  %v1155_v18 = vld [vmem:[%s5979_s2 + $0x118] sm:$0xff]  ;;  %v1174_v19 = vld [vmem:[%s5979_s2 + $0x1b0] sm:$0xff]  ;;  %v5015_v50 = vpop.permute.xlu0 %1341 }
 0x195   : > { %v4907_v58 = vpop.f32.mrf.mxu3  ;;  %1361 = vperm.xlu0 %3886, %v1155_v18   ;;  %1456 = vperm.xlu2 %3885, %v1174_v19   ;;  %6002 = vst [vmem:[#allocation7_spill] sm:$0xff] %v5015_v50 }
 0x197   : > { %v4889_v42 = vpop.f32.mrf.mxu1 }
 0x19c   : > { %v5048_v21 = vpop.permute.xlu0 %1316 }
 0x19d   : > { %v4948_v14 = vpop.f32.mrf.mxu3  ;;  %1346 = vperm.xlu0 %3886, %v1152_v27   ;;  %1371 = vperm.xlu2 %3885, %v1157_v41   ;;  %6005 = vst [vmem:[#allocation10_spill] sm:$0xff] %v5048_v21  ;;  %v1171_v27 = vld [vmem:[%s5979_s2 + $0x198] sm:$0xff] }
 0x19e   : > { %v2427_v41 = vld [vmem:[%s5981_s4 + $0x18] sm:$0xff] }
 0x19f   : > { %v4918_v56 = vpop.f32.mrf.mxu1 }
 0x1a2   : > { %3634 = vmatmul.msk.bf16.gmra.mxu1 %vm921_vm6, %v3455_v63  ;;  %3654 = vmatmul.msk.bf16.gmra.mxu3 %vm921_vm6, %v3615_v25  ;;  %v5055_v25 = vpop.permute.xlu1 %1321 }
 0x1a3   : > { %6007 = vst [vmem:[#allocation12_spill] sm:$0xff] %v5055_v25 }
 0x1a4   : > { %1955 = vmatmul.bf16.gmra.mxu0 %v3427_v6  ;;  %2055 = vmatmul.bf16.gmra.mxu2 %v3587_v45  ;;  %v3745_v6 = vld [vmem:[%s5978_s1 + $0xb4] sm:$0xf]  ;;  %v5091_v44 = vpop.permute.xlu0 %1311 }
 0x1a5   : > { %v4982_v62 = vpop.f32.mrf.mxu3  ;;  %1431 = vperm.xlu0 %3886, %v1169_v3   ;;  %6008 = vst [vmem:[#allocation13_spill] sm:$0xff] %v5091_v44 }
 0x1a7   : > { %v4958_v20 = vpop.f32.mrf.mxu1 }
 0x1ad   : > { %v5027_v1 = vpop.f32.mrf.mxu3 }
 0x1af   : > { %v4994_v40 = vpop.f32.mrf.mxu1 }
 0x1b1   : > { %v1921_v11 = vpop.f32.mrf.mxu0 }
 0x1b2   : > { %v1922_v57 = vadd.f32 %v1921_v11, %v4782_v60  ;;  %v1170_v60 = vld [vmem:[%s5979_s2 + $0x190] sm:$0xff] }
 0x1b3   : > { %1436 = vperm.xlu1 %3887, %v1170_v60   ;;  %v3785_v11 = vld [vmem:[%s5978_s1 + $0x1f4] sm:$0xf] }
 0x1b4   : > { %v2091_v4 = vadd.f32 %v4800_v54, %v1922_v57  ;;  %1960 = vmatmul.bf16.gmra.mxu0 %v3435_v9  ;;  %2060 = vmatmul.bf16.gmra.mxu2 %v3595_v10  ;;  %v1154_v9 = vld [vmem:[%s5979_s2 + $0x110] sm:$0xff]  ;;  %v3620_v57 = vld [vmem:[%s5978_s1 + $0x1f8] sm:$0xf0] }
 0x1b5   : > { %1356 = vperm.xlu2 %3885, %v1154_v9   ;;  %v3623_v19 = vor.u32 %v3785_v11, %v3620_v57 }
 0x1b6   : > { %v2250_v31 = vmax.f32 %v2091_v4, 0.0 }
 0x1b7   : > { %v4975_v34 = vpop.f32.mrf.mxu2  ;;  %v5036_v10 = vpop.f32.mrf.mxu1  ;;  %3655 = vmatmul.msk.bf16.gmra.mxu3 %vm921_vm6, %v3623_v19  ;;  %v2430_v19 = vld [vmem:[%s5981_s4 + $0x30] sm:$0x3f] }
 0x1b8   : > { %2314 = vst [vmem:[%s4979_s15] sm:$0xff] %v2250_v31 }
 0x1b9   : > { %v1923_v54 = vpop.f32.mrf.mxu0 }
 0x1ba   : > { %v1924_v26 = vadd.f32 %v1923_v54, %v4836_v12  ;;  %v3460_v12 = vld [vmem:[%s5978_s1 + $0xb8] sm:$0xf0]  ;;  %v5058_v54 = vpop.f32.mrf.mxu3 }
 0x1bb   : > { %v3463_v47 = vor.u32 %v3745_v6, %v3460_v12  ;;  %1351 = vperm.xlu1 %3887, %v1153_v7   ;;  %v3747_v6 = vld [vmem:[%s5978_s1 + $0xc4] sm:$0xf] }
 0x1bc   : > { %v2093_v45 = vadd.f32 %v4825_v23, %v1924_v26  ;;  %v5017_v23 = vpop.permute.xlu2 %1331  ;;  %v2424_v26 = vld [vmem:[%s5981_s4] sm:$0xff] }
 0x1bd   : > { %6003 = vst [vmem:[#allocation8_spill] sm:$0xff] %v5017_v23  ;;  %3635 = vmatmul.msk.bf16.gmra.mxu1 %vm921_vm6, %v3463_v47  ;;  %2433 = vperm.xlu0 %3886, %v2424_v26   ;;  %v3744_v47 = vld [vmem:[%s5978_s1 + $0xa4] sm:$0xf0] }
 0x1be   : > { %v2251_v49 = vmax.f32 %v2093_v45, 0.0  ;;  %1441 = vperm.xlu2 %3885, %v1171_v27   ;;  %v3450_v45 = vld [vmem:[%s5978_s1 + $0xa0] sm:$0xf] }
 0x1bf   : > { %v5020_v51 = vpop.f32.mrf.mxu2  ;;  %v5070_v7 = vpop.f32.mrf.mxu1 }
 0x1c0   : > { %2315 = vst [vmem:[%s4979_s15 + $0x8] sm:$0xff] %v2251_v49  ;;  %v5025_v24 = vpack.c.bf16 %v2251_v49, %v2250_v31 }
 0x1c1   : > { %v1926_v63 = vpop.f32.mrf.mxu0 }
 0x1c2   : > { %v1927_v2 = vadd.f32 %v1926_v63, %v4814_v39  ;;  %v2425_v39 = vld [vmem:[%s5981_s4 + $0x8] sm:$0xff]  ;;  %v3611_v63 = vor.u32 %v3784_v33, %v3610_v48  ;;  %v5103_v11 = vpop.f32.mrf.mxu3  ;;  %v3458_v48 = vld [vmem:[%s5978_s1 + $0xb0] sm:$0xf] }
 0x1c3   : > { %2438 = vperm.xlu1 %3887, %v2425_v39   ;;  %v2429_v39 = vld [vmem:[%s5981_s4 + $0x28] sm:$0xff] }
 0x1c4   : > { %v2096_v18 = vadd.f32 %v4854_v36, %v1927_v2  ;;  %1965 = vmatmul.bf16.gmra.mxu0 %v3443_v59  ;;  %2065 = vmatmul.bf16.gmra.mxu2 %v3603_v61  ;;  %v5050_v22 = vpop.permute.xlu2 %1306  ;;  %v3451_v61 = vor.u32 %v3744_v47, %v3450_v45  ;;  %v5098_v2 = vpop.permute.xlu1 %1296  ;;  %v3476_v47 = vld [vmem:[%s5978_s1 + $0xd8] sm:$0xf0] }
 0x1c5   : > { %6006 = vst [vmem:[#allocation11_spill] sm:$0xff] %v5050_v22  ;;  %2458 = vperm.xlu0 %3886, %v2429_v39  }
 0x1c6   : > { %v2252_v60 = vmax.f32 %v2096_v18, 0.0  ;;  %6010 = vst [vmem:[#allocation15_spill] sm:$0xff] %v5098_v2  ;;  %v1168_v18 = vld [vmem:[%s5979_s2 + $0x180] sm:$0xff] }
 0x1c7   : > { %v5053_v4 = vpop.f32.mrf.mxu2  ;;  %1426 = vperm.xlu2 %3885, %v1168_v18  }
 0x1c8   : > { %2316 = vst [vmem:[%s4979_s15 + $0x10] sm:$0xff] %v2252_v60 }
 0x1c9   : > { %v1928_v31 = vpop.f32.mrf.mxu0 }
 0x1ca   : > { %v1929_v36 = vadd.f32 %v1928_v31, %v4816_v15  ;;  %v3468_v15 = vld [vmem:[%s5978_s1 + $0xc8] sm:$0xf0] }
 0x1cb   : > { %v3471_v35 = vor.u32 %v3747_v6, %v3468_v15  ;;  %2448 = vperm.xlu1 %3887, %v2427_v41   ;;  %v5125_v6 = vpop.f32.mrf.mxu3 }
 0x1cc   : > { %v2098_v12 = vadd.f32 %v4889_v42, %v1929_v36  ;;  %v5093_v42 = vpop.permute.xlu2 %1301 }
 0x1cd   : > { %6009 = vst [vmem:[#allocation14_spill] sm:$0xff] %v5093_v42  ;;  %3636 = vmatmul.msk.bf16.gmra.mxu1 %vm921_vm6, %v3471_v35  ;;  %v3749_v35 = vld [vmem:[%s5978_s1 + $0xd4] sm:$0xf] }
 0x1ce   : > { %v2253_v49 = vmax.f32 %v2098_v12, 0.0  ;;  %v5131_v12 = vpop.permute.xlu1 %1291  ;;  %v3479_v33 = vor.u32 %v3749_v35, %v3476_v47  ;;  %v2428_v35 = vld [vmem:[%s5981_s4 + $0x20] sm:$0xff] }
 0x1cf   : > { %v5096_v59 = vpop.f32.mrf.mxu2 }
 0x1d0   : > { %2317 = vst [vmem:[%s4979_s15 + $0x18] sm:$0xff] %v2253_v49  ;;  %v5101_v3 = vpack.c.bf16 %v2253_v49, %v2252_v60  ;;  %v5115_v60 = vpop.f32.mrf.mxu1  ;;  %v3746_v49 = vld [vmem:[%s5978_s1 + $0xb4] sm:$0xf0] }
 0x1d1   : > { %v1931_v9 = vpop.f32.mrf.mxu0  ;;  %v3459_v18 = vor.u32 %v3746_v49, %v3458_v48 }
 0x1d2   : > { %v1932_v57 = vadd.f32 %v1931_v9, %v4841_v29  ;;  %v5118_v29 = vpop.permute.xlu0 %1286 }
 0x1d3   : > { %2463 = vperm.xlu1 %3887, %v2430_v19  }
 0x1d4   : > { %v2101_v31 = vadd.f32 %v4918_v56, %v1932_v57  ;;  %1970 = vmatmul.bf16.gmra.mxu0 %v3451_v61  ;;  %2070 = vmatmul.bf16.gmra.mxu2 %v3611_v63  ;;  %v5120_v36 = vpop.permute.xlu2 %1276  ;;  %v2426_v56 = vld [vmem:[%s5981_s4 + $0x10] sm:$0xff]  ;;  %v3786_v63 = vld [vmem:[%s5978_s1 + $0x1f4] sm:$0xf0] }
 0x1d5   : > { %2443 = vperm.xlu2 %3885, %v2426_v56   ;;  %v3618_v61 = vld [vmem:[%s5978_s1 + $0x1f0] sm:$0xf]  ;;  %v5163_v56 = vpop.f32.mrf.mxu3 }
 0x1d6   : > { %v2254_v26 = vmax.f32 %v2101_v31, 0.0  ;;  %v3619_v19 = vor.u32 %v3786_v63, %v3618_v61  ;;  %v5171_v48 = vpop.permute.xlu1 %1271 }
 0x1d7   : > { %v5122_v27 = vpop.f32.mrf.mxu2 }
 0x1d8   : > { %2318 = vst [vmem:[%s4979_s15 + $0x20] sm:$0xff] %v2254_v26  ;;  %v5133_v45 = vpop.f32.mrf.mxu1 }
 0x1d9   : > { %v1933_v41 = vpop.f32.mrf.mxu0 }
 0x1da   : > { %v1934_v15 = vadd.f32 %v1933_v41, %v4838_v28  ;;  %v5154_v9 = vpop.permute.xlu0 %1281 }
 0x1dc   : > { %v2103_v28 = vadd.f32 %v4958_v20, %v1934_v15  ;;  %v1417_v20 = vpop.permute.xlu2 %1416 }
 0x1dd   : > { %3637 = vmatmul.msk.bf16.gmra.mxu1 %vm921_vm6, %v3479_v33  ;;  %2453 = vperm.xlu2 %3885, %v2428_v35   ;;  %v3466_v35 = vld [vmem:[%s5978_s1 + $0xc0] sm:$0xf] }
 0x1de   : > { %v2255_v57 = vmax.f32 %v2103_v28, 0.0  ;;  %v5197_v30 = vpop.permute.xlu1 %1496 }
 0x1df   : > { %v5157_v39 = vpop.f32.mrf.mxu2  ;;  %6012 = vst [vmem:[#allocation17_spill] sm:$0xff] %v5197_v30 }
 0x1e0   : > { %2319 = vst [vmem:[%s4979_s15 + $0x28] sm:$0xff] %v2255_v57  ;;  %v5160_v31 = vpack.c.bf16 %v2255_v57, %v2254_v26  ;;  %v5168_v47 = vpop.f32.mrf.mxu1 }
 0x1e1   : > { %v1936_v41 = vpop.f32.mrf.mxu0 }
 0x1e2   : > { %v1937_v15 = vadd.f32 %v1936_v41, %v4874_v13  ;;  %v1422_v26 = vpop.permute.xlu0 %1421 }
 0x1e4   : > { %v2106_v28 = vadd.f32 %v4994_v40, %v1937_v15  ;;  %1975 = vmatmul.bf16.gmra.mxu0 %v3459_v18  ;;  %2075 = vmatmul.bf16.gmra.mxu2 %v3619_v19  ;;  %v5173_v33 = vpop.permute.xlu2 %1501  ;;  %v3751_v40 = vld [vmem:[%s5978_s1 + $0xe4] sm:$0xf]  ;;  %v3484_v18 = vld [vmem:[%s5978_s1 + $0xe8] sm:$0xf0]  ;;  %v5186_v15 = vpop.f32.mrf.mxu3 }
 0x1e5   : > { %6011 = vst [vmem:[#allocation16_spill] sm:$0xff] %v5173_v33  ;;  %v3487_v41 = vor.u32 %v3751_v40, %v3484_v18 }
 0x1e6   : > { %v2256_v49 = vmax.f32 %v2106_v28, 0.0 }
 0x1e7   : > { %v2036_v13 = vpop.f32.mrf.mxu2 }
 0x1e8   : > { %2320 = vst [vmem:[%s4979_s15 + $0x30] sm:$0xff] %v2256_v49  ;;  %v5177_v57 = vpop.f32.mrf.mxu1 }
 0x1e9   : > { %v1938_v61 = vpop.f32.mrf.mxu0 }
 0x1ea   : > { %v1939_v63 = vadd.f32 %v1938_v61, %v4879_v16  ;;  %v3748_v16 = vld [vmem:[%s5978_s1 + $0xc4] sm:$0xf0]  ;;  %v1407_v28 = vpop.permute.xlu0 %1406 }
 0x1ec   : > { %v2108_v19 = vadd.f32 %v5036_v10, %v1939_v63  ;;  %v5194_v61 = vpop.permute.xlu2 %1486  ;;  %v3467_v63 = vor.u32 %v3748_v16, %v3466_v35  ;;  %v5211_v21 = vpop.f32.mrf.mxu3  ;;  %v3753_v16 = vld [vmem:[%s5978_s1 + $0xf4] sm:$0xf] }
 0x1ed   : > { %3638 = vmatmul.msk.bf16.gmra.mxu1 %vm921_vm6, %v3487_v41 }
 0x1ee   : > { %v2257_v50 = vmax.f32 %v2108_v19, 0.0 }
 0x1ef   : > { %v2038_v10 = vpop.f32.mrf.mxu2 }
 0x1f0   : > { %2321 = vst [vmem:[%s4979_s15 + $0x38] sm:$0xff] %v2257_v50  ;;  %v5200_v40 = vpack.c.bf16 %v2257_v50, %v2256_v49  ;;  %v5203_v0 = vpop.f32.mrf.mxu1  ;;  %v5218_v50 = vpop.permute.xlu1 %1411 }
 0x1f1   : > { %v1941_v18 = vpop.f32.mrf.mxu0 }
 0x1f2   : > { %v1942_v23 = vadd.f32 %v1941_v18, %v4876_v43  ;;  %v5208_v19 = vpop.permute.xlu0 %1491  ;;  %v2037_v43 = vadd.f32 %v2036_v13, %v1417_v20 }
 0x1f3   : > { %6013 = vst [vmem:[#allocation18_spill] sm:$0xff] %v5208_v19 }
 0x1f4   : > { %v5206_v25 = vadd.f32 %v5070_v7, %v1942_v23  ;;  %1980 = vmatmul.bf16.gmra.mxu0 %v3467_v63  ;;  %v1402_v44 = vpop.permute.xlu2 %1401  ;;  %v2206_v7 = vadd.f32 %v5058_v54, %v2037_v43  ;;  %v3492_v63 = vld [vmem:[%s5978_s1 + $0xf8] sm:$0xf0]  ;;  %v3750_v54 = vld [vmem:[%s5978_s1 + $0xd4] sm:$0xf0] }
 0x1f5   : > { %v3495_v13 = vor.u32 %v3753_v16, %v3492_v63 }
 0x1f6   : > { %v5986_v41 = vmax.f32 %v5206_v25, 0.0  ;;  %v2296_v20 = vmax.f32 %v2206_v7, 0.0  ;;  %v5247_v7 = vpop.f32.mrf.mxu3 }
 0x1f7   : > { %v5213_v22 = vpop.f32.mrf.mxu2 }
 0x1f8   : > { %2322 = vst [vmem:[%s4979_s15 + $0x40] sm:$0xff] %v5986_v41  ;;  %v5222_v35 = vpop.f32.mrf.mxu1  ;;  %v2039_v41 = vadd.f32 %v2038_v10, %v1422_v26 }
 0x1f9   : > { %v1943_v49 = vpop.f32.mrf.mxu0  ;;  %2360 = vst [vmem:[%s4979_s15 + $0x170] sm:$0xff] %v2296_v20 }
 0x1fa   : > { %v1944_v23 = vadd.f32 %v1943_v49, %v4900_v38  ;;  %v3474_v38 = vld [vmem:[%s5978_s1 + $0xd0] sm:$0xf]  ;;  %v5239_v43 = vpop.permute.xlu0 %1476 }
 0x1fb   : > { %v3475_v26 = vor.u32 %v3750_v54, %v3474_v38 }
 0x1fc   : > { %v5231_v18 = vadd.f32 %v5115_v60, %v1944_v23  ;;  %v2208_v60 = vadd.f32 %v5103_v11, %v2039_v41  ;;  %v1387_v16 = vpop.permute.xlu2 %1386  ;;  %v5256_v11 = vpop.permute.xlu1 %1396 }
 0x1fd   : > { %3639 = vmatmul.msk.bf16.gmra.mxu1 %vm921_vm6, %v3495_v13 }
 0x1fe   : > { %v5987_v49 = vmax.f32 %v5231_v18, 0.0  ;;  %v2297_v10 = vmax.f32 %v2208_v60, 0.0 }
 0x1ff   : > { %v5245_v23 = vpop.f32.mrf.mxu2 }
 0x200   : > { %2323 = vst [vmem:[%s4979_s15 + $0x48] sm:$0xff] %v5987_v49  ;;  %v5254_v13 = vpack.c.bf16 %v2297_v10, %v2296_v20  ;;  %v5258_v41 = vpop.f32.mrf.mxu1 }
 0x201   : > { %v1946_v63 = vpop.f32.mrf.mxu0  ;;  %2361 = vst [vmem:[%s4979_s15 + $0x178] sm:$0xff] %v2297_v10 }
 0x202   : > { %v1947_v33 = vadd.f32 %v1946_v63, %v4905_v32  ;;  %v1392_v54 = vpop.permute.xlu0 %1391  ;;  %v2032_v32 = vadd.f32 %v5122_v27, %v1407_v28  ;;  %v2029_v27 = vadd.f32 %v5096_v59, %v1402_v44 }
 0x204   : > { %v5261_v38 = vadd.f32 %v5133_v45, %v1947_v33  ;;  %1985 = vmatmul.bf16.gmra.mxu0 %v3475_v26  ;;  %v5272_v63 = vadd.f32 %v4982_v62, %v2032_v32  ;;  %v5274_v45 = vpop.f32.mrf.mxu3  ;;  %v5276_v33 = vpop.permute.xlu2 %1471  ;;  %v3752_v62 = vld [vmem:[%s5978_s1 + $0xe4] sm:$0xf0] }
 0x205   : > { %v5285_v28 = vpop.permute.xlu1 %1481 }
 0x206   : > { %v5988_v60 = vmax.f32 %v5261_v38, 0.0 }
 0x207   : > { %v5264_v42 = vpop.f32.mrf.mxu2 }
 0x208   : > { %2324 = vst [vmem:[%s4979_s15 + $0x50] sm:$0xff] %v5988_v60  ;;  %v5278_v26 = vpop.f32.mrf.mxu1  ;;  %v5989_v60 = vmax.f32 %v5272_v63, 0.0 }
 0x209   : > { %v1948_v20 = vpop.f32.mrf.mxu0 }
 0x20a   : > { %v1949_v10 = vadd.f32 %v1948_v20, %v4902_v53  ;;  %v3482_v53 = vld [vmem:[%s5978_s1 + $0xe0] sm:$0xf]  ;;  %v5293_v32 = vpop.permute.xlu0 %1376  ;;  %2358 = vst [vmem:[%s4979_s15 + $0x160] sm:$0xff] %v5989_v60  ;;  %v2022_v60 = vadd.f32 %v4975_v34, %v1387_v16 }
 0x20b   : > { %6014 = vst [vmem:[#allocation19_spill] sm:$0xff] %v5293_v32  ;;  %v3483_v20 = vor.u32 %v3752_v62, %v3482_v53  ;;  %v3755_v53 = vld [vmem:[%s5978_s1 + $0x104] sm:$0xf]  ;;  %v3500_v62 = vld [vmem:[%s5978_s1 + $0x108] sm:$0xf0] }
 0x20c   : > { %v5281_v49 = vadd.f32 %v5168_v47, %v1949_v10  ;;  %v5299_v47 = vadd.f32 %v4948_v14, %v2029_v27  ;;  %v2024_v14 = vadd.f32 %v5020_v51, %v1392_v54  ;;  %v3503_v34 = vor.u32 %v3755_v53, %v3500_v62  ;;  %v1457_v54 = vpop.permute.xlu2 %1456  ;;  %v3490_v53 = vld [vmem:[%s5978_s1 + $0xf0] sm:$0xf]  ;;  %v3754_v62 = vld [vmem:[%s5978_s1 + $0xf4] sm:$0xf0] }
 0x20d   : > { %v2191_v51 = vadd.f32 %v4843_v17, %v2022_v60 }
 0x20e   : > { %v5991_v44 = vmax.f32 %v5281_v49, 0.0  ;;  %v5990_v10 = vmax.f32 %v5299_v47, 0.0  ;;  %v2193_v16 = vadd.f32 %v4881_v46, %v2024_v14  ;;  %3640 = vmatmul.msk.bf16.gmra.mxu1 %vm921_vm6, %v3503_v34 }
 0x20f   : > { %v5302_v59 = vpop.f32.mrf.mxu2  ;;  %v2290_v32 = vmax.f32 %v2191_v51, 0.0 }
 0x210   : > { %2325 = vst [vmem:[%s4979_s15 + $0x58] sm:$0xff] %v5991_v44  ;;  %v5314_v27 = vpop.f32.mrf.mxu1  ;;  %v2291_v19 = vmax.f32 %v2193_v16, 0.0  ;;  %v3491_v16 = vor.u32 %v3754_v62, %v3490_v53  ;;  %v3757_v53 = vld [vmem:[%s5978_s1 + $0x114] sm:$0xf] }
 0x211   : > { %v1951_v30 = vpop.f32.mrf.mxu0  ;;  %2357 = vst [vmem:[%s4979_s15 + $0x158] sm:$0xff] %v5990_v10 }
 0x212   : > { %v1952_v2 = vadd.f32 %v1951_v30, %v4938_v55  ;;  %v2225_v30 = vpop.f32.mrf.mxu3  ;;  %v5327_v10 = vpop.permute.xlu0 %1461  ;;  %v5338_v17 = vpack.c.bf16 %v2291_v19, %v2290_v32  ;;  %2354 = vst [vmem:[%s4979_s15 + $0x140] sm:$0xff] %v2290_v32 }
 0x213   : > { %2355 = vst [vmem:[%s4979_s15 + $0x148] sm:$0xff] %v2291_v19 }
 0x214   : > { %v5323_v55 = vadd.f32 %v5177_v57, %v1952_v2  ;;  %1990 = vmatmul.bf16.gmra.mxu0 %v3483_v20  ;;  %v5331_v2 = vpop.permute.xlu1 %1466  ;;  %6015 = vst [vmem:[#allocation20_spill] sm:$0xff] %v5338_v17  ;;  %v5355_v32 = vpop.permute.xlu2 %1371 }
 0x215   : > { %6016 = vst [vmem:[#allocation21_spill] sm:$0xff] %v5355_v32  ;;  %v2027_v32 = vadd.f32 %v5053_v4, %v5256_v11 }
 0x216   : > { %v5992_v44 = vmax.f32 %v5323_v55, 0.0 }
 0x217   : > { %v5333_v57 = vpop.f32.mrf.mxu2 }
 0x218   : > { %2326 = vst [vmem:[%s4979_s15 + $0x60] sm:$0xff] %v5992_v44  ;;  %v5343_v20 = vpop.f32.mrf.mxu1 }
 0x219   : > { %v1953_v46 = vpop.f32.mrf.mxu0 }
 0x21a   : > { %v1954_v60 = vadd.f32 %v1953_v46, %v4946_v8  ;;  %v2227_v51 = vpop.f32.mrf.mxu3  ;;  %v5359_v19 = vpop.permute.xlu0 %1446 }
 0x21c   : > { %v5346_v14 = vadd.f32 %v5203_v0, %v1954_v60  ;;  %v2034_v0 = vadd.f32 %v5157_v39, %v5218_v50  ;;  %v5364_v46 = vpop.permute.xlu1 %1381  ;;  %v3508_v39 = vld [vmem:[%s5978_s1 + $0x118] sm:$0xf0]  ;;  %v5383_v50 = vadd.f32 %v4907_v58, %v2027_v32 }
 0x21d   : > { %6017 = vst [vmem:[#allocation22_spill] sm:$0xff] %v5364_v46  ;;  %v3511_v4 = vor.u32 %v3757_v53, %v3508_v39 }
 0x21e   : > { %v2263_v34 = vmax.f32 %v5346_v14, 0.0  ;;  %v5368_v14 = vadd.f32 %v5027_v1, %v2034_v0  ;;  %v5993_v62 = vmax.f32 %v5383_v50, 0.0 }
 0x21f   : > { %v5357_v8 = vpop.f32.mrf.mxu2  ;;  %3641 = vmatmul.msk.bf16.gmra.mxu1 %vm921_vm6, %v3511_v4 }
 0x220   : > { %2327 = vst [vmem:[%s4979_s15 + $0x68] sm:$0xff] %v2263_v34  ;;  %v5372_v17 = vpop.f32.mrf.mxu1  ;;  %v5994_v1 = vmax.f32 %v5368_v14, 0.0 }
 0x221   : > { %v1956_v60 = vpop.f32.mrf.mxu0  ;;  %2356 = vst [vmem:[%s4979_s15 + $0x150] sm:$0xff] %v5993_v62 }
 0x222   : > { %v1957_v44 = vadd.f32 %v1956_v60, %v4940_v5  ;;  %2359 = vst [vmem:[%s4979_s15 + $0x168] sm:$0xff] %v5994_v1  ;;  %v2230_v60 = vpop.f32.mrf.mxu3  ;;  %v5396_v58 = vpop.permute.xlu0 %1361 }
 0x224   : > { %v2126_v5 = vadd.f32 %v5222_v35, %v1957_v44  ;;  %1995 = vmatmul.bf16.gmra.mxu0 %v3491_v16  ;;  %v5391_v44 = vpop.permute.xlu2 %1356  ;;  %v5401_v39 = vpop.permute.xlu1 %1366 }
 0x225   : > { %6018 = vst [vmem:[#allocation23_spill] sm:$0xff] %v5401_v39 }
 0x226   : > { %v2264_v11 = vmax.f32 %v2126_v5, 0.0 }
 0x227   : > { %v2056_v0 = vpop.f32.mrf.mxu2 }
 0x228   : > { %2328 = vst [vmem:[%s4979_s15 + $0x70] sm:$0xff] %v2264_v11  ;;  %v2057_v35 = vadd.f32 %v2056_v0, %v1457_v54  ;;  %v3498_v54 = vld [vmem:[%s5978_s1 + $0x100] sm:$0xf]  ;;  %v3756_v0 = vld [vmem:[%s5978_s1 + $0x104] sm:$0xf0]  ;;  %v5411_v62 = vpop.f32.mrf.mxu1 }
 0x229   : > { %v1958_v16 = vpop.f32.mrf.mxu0 }
 0x22a   : > { %v1959_v32 = vadd.f32 %v1958_v16, %v4970_v52  ;;  %v5399_v53 = vadd.f32 %v2225_v30, %v2057_v35  ;;  %v2232_v46 = vpop.f32.mrf.mxu3 }
 0x22c   : > { %v2128_v5 = vadd.f32 %v5258_v41, %v1959_v32  ;;  %v5995_v4 = vmax.f32 %v5399_v53, 0.0  ;;  %v3499_v41 = vor.u32 %v3756_v0, %v3498_v54  ;;  %v5427_v54 = vpop.permute.xlu0 %1346 }
 0x22e   : > { %v2265_v1 = vmax.f32 %v2128_v5, 0.0  ;;  %2368 = vst [vmem:[%s4979_s15 + $0x1b0] sm:$0xff] %v5995_v4  ;;  %v3759_v5 = vld [vmem:[%s5978_s1 + $0x124] sm:$0xf] }
 0x22f   : > { %v2058_v52 = vpop.f32.mrf.mxu2 }
 0x230   : > { %2329 = vst [vmem:[%s4979_s15 + $0x78] sm:$0xff] %v2265_v1  ;;  %v2399_v30 = vpack.c.bf16 %v2265_v1, %v2264_v11  ;;  %v2059_v35 = vadd.f32 %v2058_v52, %v5327_v10  ;;  %v3516_v1 = vld [vmem:[%s5978_s1 + $0x128] sm:$0xf0]  ;;  %v1442_v11 = vpop.permute.xlu2 %1441  ;;  %v5437_v4 = vpop.f32.mrf.mxu1 }
 0x231   : > { %v1961_v16 = vpop.f32.mrf.mxu0  ;;  %v3519_v52 = vor.u32 %v3759_v5, %v3516_v1 }
 0x232   : > { %v1962_v32 = vadd.f32 %v1961_v16, %v4977_v37  ;;  %2540 = vmatpush.bf16.msrb.mxu2 %v2399_v30  ;;  %v5419_v39 = vadd.f32 %v2227_v51, %v2059_v35  ;;  %v6019_v37 = vmax.f32 %v5323_v55, 0.0  ;;  %v5433_v30 = vpop.permute.xlu1 %1451 }
 0x233   : > { %3642 = vmatmul.msk.bf16.gmra.mxu1 %vm921_vm6, %v3519_v52 }
 0x234   : > { %v2131_v10 = vadd.f32 %v5278_v26, %v1962_v32  ;;  %2000 = vmatmul.bf16.gmra.mxu0 %v3499_v41  ;;  %v2398_v0 = vpack.c.bf16 %v2263_v34, %v6019_v37  ;;  %v2305_v51 = vmax.f32 %v5419_v39, 0.0  ;;  %v6020_v26 = vmax.f32 %v5261_v38, 0.0 }
 0x235   : > { %v6021_v41 = vmax.f32 %v5281_v49, 0.0  ;;  %v2052_v39 = vadd.f32 %v5333_v57, %v5359_v19  ;;  %v6022_v38 = vmax.f32 %v5206_v25, 0.0  ;;  %v6023_v49 = vmax.f32 %v5231_v18, 0.0 }
 0x236   : > { %v2266_v35 = vmax.f32 %v2131_v10, 0.0  ;;  %2541 = vmatpush.bf16.msrb.mxu2 %v2398_v0  ;;  %2369 = vst [vmem:[%s4979_s15 + $0x1b8] sm:$0xff] %v2305_v51  ;;  %v2049_v18 = vadd.f32 %v5302_v59, %v1442_v11 }
 0x237   : > { %v2061_v16 = vpop.f32.mrf.mxu2  ;;  %v2397_v55 = vpack.c.bf16 %v6021_v41, %v6020_v26  ;;  %v5449_v10 = vadd.f32 %v5247_v7, %v2052_v39  ;;  %v2396_v0 = vpack.c.bf16 %v6023_v49, %v6022_v38  ;;  %v2235_v7 = vpop.f32.mrf.mxu3  ;;  %v6024_v38 = vmax.f32 %v5399_v53, 0.0 }
 0x238   : > { %2330 = vst [vmem:[%s4979_s15 + $0x80] sm:$0xff] %v2266_v35  ;;  %v2062_v34 = vadd.f32 %v2061_v16, %v5331_v2  ;;  %v3506_v2 = vld [vmem:[%s5978_s1 + $0x110] sm:$0xf] }
 0x239   : > { %v1963_v32 = vpop.f32.mrf.mxu0  ;;  %v2302_v19 = vmax.f32 %v5449_v10, 0.0  ;;  %v5494_v49 = vpack.c.bf16 %v2305_v51, %v6024_v38 }
 0x23a   : > { %v1964_v5 = vadd.f32 %v1963_v32, %v5171_v48  ;;  %2542 = vmatpush.bf16.msrb.mxu2 %v2397_v55  ;;  %v2231_v1 = vadd.f32 %v2230_v60, %v2062_v34  ;;  %v3758_v48 = vld [vmem:[%s5978_s1 + $0x114] sm:$0xf0]  ;;  %v1432_v60 = vpop.permute.xlu0 %1431  ;;  %v1437_v26 = vpop.permute.xlu1 %1436  ;;  %v2218_v32 = vadd.f32 %v5211_v21, %v2049_v18  ;;  %v3761_v21 = vld [vmem:[%s5978_s1 + $0x134] sm:$0xf] }
 0x23b   : > { %v2044_v16 = vadd.f32 %v5245_v23, %v1432_v60  ;;  %v3507_v41 = vor.u32 %v3758_v48, %v3506_v2  ;;  %2366 = vst [vmem:[%s4979_s15 + $0x1a0] sm:$0xff] %v2302_v19  ;;  %v2047_v34 = vadd.f32 %v5264_v42, %v1437_v26  ;;  %v5476_v23 = vpop.f32.mrf.mxu1  ;;  %v3760_v26 = vld [vmem:[%s5978_s1 + $0x124] sm:$0xf0] }
 0x23c   : > { %v2133_v37 = vadd.f32 %v5314_v27, %v1964_v5  ;;  %v2306_v57 = vmax.f32 %v2231_v1, 0.0  ;;  %v1427_v27 = vpop.permute.xlu2 %1426 }
 0x23d   : > { %v2042_v52 = vadd.f32 %v5213_v22, %v1427_v27  ;;  %v2213_v59 = vadd.f32 %v5163_v56, %v2044_v16  ;;  %v2216_v11 = vadd.f32 %v5186_v15, %v2047_v34  ;;  %v6026_v34 = vmax.f32 %v5368_v14, 0.0 }
 0x23e   : > { %v2267_v25 = vmax.f32 %v2133_v37, 0.0  ;;  %2543 = vmatpush.bf16.msrb.mxu2 %v2396_v0  ;;  %2370 = vst [vmem:[%s4979_s15 + $0x1c0] sm:$0xff] %v2306_v57  ;;  %v2301_v37 = vmax.f32 %v2218_v32, 0.0 }
 0x23f   : > { %v2063_v55 = vpop.f32.mrf.mxu2  ;;  %v2211_v5 = vadd.f32 %v5125_v6, %v2042_v52  ;;  %v3524_v6 = vld [vmem:[%s5978_s1 + $0x138] sm:$0xf0]  ;;  %v2299_v15 = vmax.f32 %v2213_v59, 0.0  ;;  %v2237_v60 = vpop.f32.mrf.mxu3 }
 0x240   : > { %2331 = vst [vmem:[%s4979_s15 + $0x88] sm:$0xff] %v2267_v25  ;;  %v2064_v39 = vadd.f32 %v2063_v55, %v5276_v33  ;;  %v5479_v1 = vpack.c.bf16 %v2267_v25, %v2266_v35  ;;  %v6025_v55 = vmax.f32 %v5272_v63, 0.0 }
 0x241   : > { %v1966_v22 = vpop.f32.mrf.mxu0  ;;  %v2298_v56 = vmax.f32 %v2211_v5, 0.0  ;;  %2365 = vst [vmem:[%s4979_s15 + $0x198] sm:$0xff] %v2301_v37 }
 0x242   : > { %v1967_v42 = vadd.f32 %v1966_v22, %v5120_v36  ;;  %2544 = vmatpush.bf16.msrb.mxu2 %v5200_v40  ;;  %v2233_v33 = vadd.f32 %v2232_v46, %v2064_v39  ;;  %v3527_v40 = vor.u32 %v3761_v21, %v3524_v6  ;;  %v2300_v46 = vmax.f32 %v2216_v11, 0.0  ;;  %2363 = vst [vmem:[%s4979_s15 + $0x188] sm:$0xff] %v2299_v15 }
 0x243   : > { %2362 = vst [vmem:[%s4979_s15 + $0x180] sm:$0xff] %v2298_v56  ;;  %v5496_v0 = vpack.c.bf16 %v2299_v15, %v2298_v56  ;;  %v5520_v52 = vpop.f32.mrf.mxu1  ;;  %v2414_v39 = vpack.c.bf16 %v6026_v34, %v6025_v55  ;;  %v6027_v11 = vmax.f32 %v5383_v50, 0.0  ;;  %v3674_v50 = vld [vmem:[%s5980_s3 + $0x20] sm:$0xf]  ;;  %v6033_v55 = vld [vmem:[#allocation14_spill] sm:$0xff] }
 0x244   : > { %v2136_v35 = vadd.f32 %v5343_v20, %v1967_v42  ;;  %2005 = vmatmul.bf16.gmra.mxu0 %v3507_v41  ;;  %v2307_v36 = vmax.f32 %v2233_v33, 0.0  ;;  %3643 = vmatmul.msk.bf16.gmra.mxu1 %vm921_vm6, %v3527_v40  ;;  %v2054_v20 = vadd.f32 %v5357_v8, %v5433_v30  ;;  %v5506_v53 = vpack.c.bf16 %v2301_v37, %v2300_v46  ;;  %v3658_v8 = vld [vmem:[%s5980_s3] sm:$0xf]  ;;  %v3789_v30 = vld [vmem:[%s5980_s3 + $0xc] sm:$0xf0] }
 0x245   : > { %2364 = vst [vmem:[%s4979_s15 + $0x190] sm:$0xff] %v2300_v46  ;;  %v3762_v46 = vld [vmem:[%s5978_s1 + $0x134] sm:$0xf0] }
 0x246   : > { %v2268_v2 = vmax.f32 %v2136_v35, 0.0  ;;  %2545 = vmatpush.bf16.msrb.mxu2 %v5160_v31  ;;  %2371 = vst [vmem:[%s4979_s15 + $0x1c8] sm:$0xff] %v2307_v36  ;;  %v5503_v48 = vpack.c.bf16 %v2307_v36, %v2306_v57  ;;  %v2223_v25 = vadd.f32 %v5274_v45, %v2054_v20  ;;  %v6029_v35 = vld [vmem:[#allocation20_spill] sm:$0xff] }
 0x247   : > { %v2066_v27 = vpop.f32.mrf.mxu2 }
 0x248   : > { %2332 = vst [vmem:[%s4979_s15 + $0x90] sm:$0xff] %v2268_v2  ;;  %v2067_v51 = vadd.f32 %v2066_v27, %v5239_v43  ;;  %v2303_v43 = vmax.f32 %v2223_v25, 0.0 }
 0x249   : > { %v1968_v31 = vpop.f32.mrf.mxu0 }
 0x24a   : > { %v1969_v18 = vadd.f32 %v1968_v31, %v5154_v9  ;;  %2546 = vmatpush.bf16.msrb.mxu2 %v5101_v3  ;;  %v2236_v57 = vadd.f32 %v2235_v7, %v2067_v51  ;;  %2367 = vst [vmem:[%s4979_s15 + $0x1a8] sm:$0xff] %v2303_v43  ;;  %v3659_v9 = vor.u32 %v3789_v30, %v3658_v8  ;;  %v3514_v3 = vld [vmem:[%s5978_s1 + $0x120] sm:$0xf]  ;;  %v6031_v31 = vld [vmem:[#allocation15_spill] sm:$0xff] }
 0x24b   : > { %v5532_v7 = vpack.c.bf16 %v2303_v43, %v2302_v19  ;;  %v3515_v32 = vor.u32 %v3760_v26, %v3514_v3  ;;  %v5547_v14 = vpop.f32.mrf.mxu1  ;;  %v6032_v3 = vld [vmem:[#allocation17_spill] sm:$0xff] }
 0x24c   : > { %v2138_v45 = vadd.f32 %v5372_v17, %v1969_v18  ;;  %v2308_v16 = vmax.f32 %v2236_v57, 0.0 }
 0x24e   : > { %v2269_v41 = vmax.f32 %v2138_v45, 0.0  ;;  %2547 = vmatpush.bf16.msrb.mxu2 %v5025_v24  ;;  %2372 = vst [vmem:[%s4979_s15 + $0x1d0] sm:$0xff] %v2308_v16  ;;  %v2240_v24 = vpop.f32.mrf.mxu3 }
 0x24f   : > { %v2068_v17 = vpop.f32.mrf.mxu2 }
 0x250   : > { %2333 = vst [vmem:[%s4979_s15 + $0x98] sm:$0xff] %v2269_v41  ;;  %v2069_v5 = vadd.f32 %v2068_v17, %v5285_v28  ;;  %v5543_v10 = vpack.c.bf16 %v2269_v41, %v2268_v2  ;;  %v6028_v28 = vmax.f32 %v5299_v47, 0.0  ;;  %v3793_v47 = vld [vmem:[%s5980_s3 + $0x2c] sm:$0xf0] }
 0x251   : > { %v1971_v19 = vpop.f32.mrf.mxu0  ;;  %2548 = vmatmul.bf16.vlgmr.msrb.gmra.mxu2 %v3659_v9 }
 0x252   : > { %2596 = vmatpush.bf16.msra.mxu2 %v5254_v13  ;;  %v1972_v59 = vadd.f32 %v1971_v19, %v5118_v29  ;;  %v2238_v22 = vadd.f32 %v2237_v60, %v2069_v5  ;;  %v2413_v42 = vpack.c.bf16 %v6028_v28, %v6027_v11  ;;  %v6030_v60 = vld [vmem:[#allocation18_spill] sm:$0xff] }
 0x253   : > { %v2152_v20 = vpop.f32.mrf.mxu1 }
 0x254   : > { %v2141_v13 = vadd.f32 %v5411_v62, %v1972_v59  ;;  %2010 = vmatmul.bf16.gmra.mxu0 %v3515_v32  ;;  %v2309_v63 = vmax.f32 %v2238_v22, 0.0 }
 0x256   : > { %2597 = vmatpush.bf16.msra.mxu2 %v2414_v39  ;;  %v2270_v33 = vmax.f32 %v2141_v13, 0.0  ;;  %2373 = vst [vmem:[%s4979_s15 + $0x1d8] sm:$0xff] %v2309_v63  ;;  %v5554_v37 = vpack.c.bf16 %v2309_v63, %v2308_v16  ;;  %v2242_v15 = vpop.f32.mrf.mxu3  ;;  %v3797_v39 = vld [vmem:[%s5980_s3 + $0x4c] sm:$0xf0]  ;;  %v6034_v63 = vld [vmem:[#allocation16_spill] sm:$0xff] }
 0x257   : > { %v2071_v21 = vpop.f32.mrf.mxu2 }
 0x258   : > { %2334 = vst [vmem:[%s4979_s15 + $0xa0] sm:$0xff] %v2270_v33  ;;  %v2072_v29 = vadd.f32 %v2071_v21, %v5194_v61  ;;  %v3675_v61 = vor.u32 %v3793_v47, %v3674_v50 }
 0x259   : > { %v1973_v62 = vpop.f32.mrf.mxu0 }
 0x25a   : > { %2598 = vmatpush.bf16.msra.mxu2 %v2413_v42  ;;  %v1974_v6 = vadd.f32 %v1973_v62, %v5131_v12  ;;  %v2241_v56 = vadd.f32 %v2240_v24, %v2072_v29  ;;  %v3522_v12 = vld [vmem:[%s5978_s1 + $0x130] sm:$0xf] }
 0x25b   : > { %v3523_v27 = vor.u32 %v3762_v46, %v3522_v12  ;;  %v2155_v17 = vpop.f32.mrf.mxu1 }
 0x25c   : > { %v2143_v36 = vadd.f32 %v5437_v4, %v1974_v6  ;;  %v2310_v40 = vmax.f32 %v2241_v56, 0.0  ;;  %v5609_v56 = vld [vmem:[%s5980_s3 + $0x60] sm:$0x77] }
 0x25e   : > { %2599 = vmatpush.bf16.msra.mxu2 %v6029_v35  ;;  %v2271_v38 = vmax.f32 %v2143_v36, 0.0  ;;  %2374 = vst [vmem:[%s4979_s15 + $0x1e0] sm:$0xff] %v2310_v40  ;;  %v2245_v43 = vpop.f32.mrf.mxu3  ;;  %v2504_v35 = vunpack.c.l.b16 %v5609_v56 }
 0x25f   : > { %v2073_v2 = vpop.f32.mrf.mxu2 }
 0x260   : > { %2335 = vst [vmem:[%s4979_s15 + $0xa8] sm:$0xff] %v2271_v38  ;;  %v2074_v4 = vadd.f32 %v2073_v2, %v6030_v60  ;;  %v5576_v51 = vpack.c.bf16 %v2271_v38, %v2270_v33  ;;  %v6035_v33 = vld [vmem:[#allocation11_spill] sm:$0xff]  ;;  %v6037_v2 = vld [vmem:[#allocation10_spill] sm:$0xff] }
 0x261   : > { %v1976_v25 = vpop.f32.mrf.mxu0  ;;  %2553 = vmatmul.bf16.gmra.mxu2 %v3675_v61  ;;  %v2520_v61 = vpack.c.b16 %v2504_v35, %v2504_v35 }
 0x262   : > { %v1977_v18 = vadd.f32 %v1976_v25, %v6031_v31  ;;  %v2243_v8 = vadd.f32 %v2242_v15, %v2074_v4 }
 0x264   : > { %v2146_v30 = vadd.f32 %v5476_v23, %v1977_v18  ;;  %2015 = vmatmul.bf16.gmra.mxu0 %v3523_v27  ;;  %v2311_v57 = vmax.f32 %v2243_v8, 0.0  ;;  %v3690_v23 = vld [vmem:[%s5980_s3 + $0x40] sm:$0xf] }
 0x265   : > { %v3691_v24 = vor.u32 %v3797_v39, %v3690_v23  ;;  %v6038_v18 = vld [vmem:[#allocation12_spill] sm:$0xff] }
 0x266   : > { %v2272_v45 = vmax.f32 %v2146_v30, 0.0  ;;  %2375 = vst [vmem:[%s4979_s15 + $0x1e8] sm:$0xff] %v2311_v57  ;;  %v5581_v16 = vpack.c.bf16 %v2311_v57, %v2310_v40  ;;  %v2247_v13 = vpop.f32.mrf.mxu3 }
 0x267   : > { %v2076_v9 = vpop.f32.mrf.mxu2 }
 0x268   : > { %2336 = vst [vmem:[%s4979_s15 + $0xb0] sm:$0xff] %v2272_v45  ;;  %v2077_v26 = vadd.f32 %v2076_v9, %v6032_v3 }
 0x269   : > { %v1978_v41 = vpop.f32.mrf.mxu0 }
 0x26a   : > { %v1979_v34 = vadd.f32 %v1978_v41, %v6033_v55  ;;  %v2246_v32 = vadd.f32 %v2245_v43, %v2077_v26 }
 0x26c   : > { %v2148_v5 = vadd.f32 %v5520_v52, %v1979_v34  ;;  %v2312_v19 = vmax.f32 %v2246_v32, 0.0  ;;  %v2157_v52 = vpop.f32.mrf.mxu1 }
 0x26e   : > { %v2273_v59 = vmax.f32 %v2148_v5, 0.0  ;;  %2376 = vst [vmem:[%s4979_s15 + $0x1f0] sm:$0xff] %v2312_v19  ;;  %v6041_v5 = vld [vmem:[#allocation6_spill] sm:$0xff] }
 0x26f   : > { %v2078_v22 = vpop.f32.mrf.mxu2 }
 0x270   : > { %2337 = vst [vmem:[%s4979_s15 + $0xb8] sm:$0xff] %v2273_v59  ;;  %v2079_v11 = vadd.f32 %v2078_v22, %v6034_v63  ;;  %v5596_v28 = vpack.c.bf16 %v2273_v59, %v2272_v45  ;;  %v6039_v45 = vld [vmem:[#allocation9_spill] sm:$0xff]  ;;  %v6042_v63 = vld [vmem:[#allocation7_spill] sm:$0xff] }
 0x271   : > { %v1981_v42 = vpop.f32.mrf.mxu0  ;;  %2558 = vmatmul.bf16.gmra.mxu2 %v3691_v24 }
 0x272   : > { %v1982_v21 = vadd.f32 %v1981_v42, %v6035_v33  ;;  %v2248_v29 = vadd.f32 %v2247_v13, %v2079_v11 }
 0x274   : > { %v5600_v62 = vadd.f32 %v5547_v14, %v1982_v21  ;;  %v2313_v6 = vmax.f32 %v2248_v29, 0.0  ;;  %v6036_v14 = vld [vmem:[#allocation13_spill] sm:$0xff]  ;;  %v2160_v12 = vpop.f32.mrf.mxu1 }
 0x276   : > { %v2274_v50 = vmax.f32 %v5600_v62, 0.0  ;;  %2377 = vst [vmem:[%s4979_s15 + $0x1f8] sm:$0xff] %v2313_v6  ;;  %v5604_v47 = vpack.c.bf16 %v2313_v6, %v2312_v19 }
 0x278   : > { %2338 = vst [vmem:[%s4979_s15 + $0xc0] sm:$0xff] %v2274_v50 }
 0x279   : > { %v1983_v15 = vpop.f32.mrf.mxu0 }
 0x27a   : > { %v1984_v36 = vadd.f32 %v1983_v15, %v6036_v14 }
 0x27c   : > { %v2153_v40 = vadd.f32 %v2152_v20, %v1984_v36  ;;  %v2162_v25 = vpop.f32.mrf.mxu1 }
 0x27e   : > { %v2275_v46 = vmax.f32 %v2153_v40, 0.0 }
 0x280   : > { %2339 = vst [vmem:[%s4979_s15 + $0xc8] sm:$0xff] %v2275_v46 }
 0x281   : > { %v1986_v38 = vpop.f32.mrf.mxu0  ;;  %2563 = vmatmul.bf16.gmra.mxu2 %v2520_v61  ;;  %v1352_v61 = vpop.permute.xlu1 %1351 }
 0x282   : > { %v1987_v27 = vadd.f32 %v1986_v38, %v6037_v2 }
 0x284   : > { %v2156_v60 = vadd.f32 %v2155_v17, %v1987_v27  ;;  %v2165_v43 = vpop.f32.mrf.mxu1  ;;  %v6040_v17 = vld [vmem:[#allocation8_spill] sm:$0xff] }
 0x286   : > { %v2276_v4 = vmax.f32 %v2156_v60, 0.0 }
 0x288   : > { %2340 = vst [vmem:[%s4979_s15 + $0xd0] sm:$0xff] %v2276_v4 }
 0x289   : > { %v1988_v31 = vpop.f32.mrf.mxu0 }
 0x28a   : > { %v1989_v8 = vadd.f32 %v1988_v31, %v6038_v18 }
 0x28c   : > { %v2158_v30 = vadd.f32 %v2157_v52, %v1989_v8  ;;  %v2167_v34 = vpop.f32.mrf.mxu1 }
 0x28e   : > { %v2277_v20 = vmax.f32 %v2158_v30, 0.0 }
 0x290   : > { %2341 = vst [vmem:[%s4979_s15 + $0xd8] sm:$0xff] %v2277_v20  ;;  %v2405_v40 = vpack.c.bf16 %v2277_v20, %v2276_v4 }
 0x291   : > { %v1991_v57 = vpop.f32.mrf.mxu0 }
 0x292   : > { %v1992_v9 = vadd.f32 %v1991_v57, %v6039_v45 }
 0x294   : > { %v2161_v3 = vadd.f32 %v2160_v12, %v1992_v9  ;;  %v2170_v24 = vpop.f32.mrf.mxu1 }
 0x296   : > { %v2278_v26 = vmax.f32 %v2161_v3, 0.0 }
 0x298   : > { %2342 = vst [vmem:[%s4979_s15 + $0xe0] sm:$0xff] %v2278_v26 }
 0x299   : > { %v1993_v41 = vpop.f32.mrf.mxu0 }
 0x29a   : > { %v1994_v55 = vadd.f32 %v1993_v41, %v6040_v17 }
 0x29c   : > { %v2163_v23 = vadd.f32 %v2162_v25, %v1994_v55  ;;  %v2172_v33 = vpop.f32.mrf.mxu1 }
 0x29e   : > { %v2279_v39 = vmax.f32 %v2163_v23, 0.0 }
 0x2a0   : > { %2343 = vst [vmem:[%s4979_s15 + $0xe8] sm:$0xff] %v2279_v39  ;;  %v2406_v35 = vpack.c.bf16 %v2279_v39, %v2278_v26  ;;  %v6045_v39 = vld [vmem:[#allocation19_spill] sm:$0xff] }
 0x2a1   : > { %v1996_v32 = vpop.f32.mrf.mxu0 }
 0x2a2   : > { %v1997_v19 = vadd.f32 %v1996_v32, %v6041_v5 }
 0x2a4   : > { %v2166_v59 = vadd.f32 %v2165_v43, %v1997_v19  ;;  %v2175_v36 = vpop.f32.mrf.mxu1 }
 0x2a6   : > { %v2280_v22 = vmax.f32 %v2166_v59, 0.0 }
 0x2a8   : > { %2344 = vst [vmem:[%s4979_s15 + $0xf0] sm:$0xff] %v2280_v22 }
 0x2a9   : > { %v1998_v13 = vpop.f32.mrf.mxu0 }
 0x2aa   : > { %v1999_v11 = vadd.f32 %v1998_v13, %v6042_v63  ;;  %v3795_v13 = vld [vmem:[%s5980_s3 + $0x44] sm:$0xf] }
 0x2ac   : > { %v2168_v42 = vadd.f32 %v2167_v34, %v1999_v11  ;;  %v2177_v25 = vpop.f32.mrf.mxu1 }
 0x2ae   : > { %v2281_v21 = vmax.f32 %v2168_v42, 0.0 }
 0x2b0   : > { %2345 = vst [vmem:[%s4979_s15 + $0xf8] sm:$0xff] %v2281_v21  ;;  %v2407_v29 = vpack.c.bf16 %v2281_v21, %v2280_v22  ;;  %v6046_v22 = vld [vmem:[#allocation22_spill] sm:$0xff] }
 0x2b1   : > { %v2001_v52 = vpop.f32.mrf.mxu0 }
 0x2b2   : > { %v2002_v6 = vadd.f32 %v2001_v52, %v5427_v54  ;;  %2568 = vmatpush.bf16.msrb.mxu3 %v2407_v29  ;;  %v2404_v54 = vpack.c.bf16 %v2275_v46, %v2274_v50 }
 0x2b4   : > { %v5630_v15 = vadd.f32 %v2170_v24, %v2002_v6  ;;  %v2180_v46 = vpop.f32.mrf.mxu1  ;;  %v2505_v6 = vunpack.c.h.b16 %v5609_v56 }
 0x2b6   : > { %v2282_v14 = vmax.f32 %v5630_v15, 0.0  ;;  %2569 = vmatpush.bf16.msrb.mxu3 %v2406_v35  ;;  %v3790_v35 = vld [vmem:[%s5980_s3 + $0x14] sm:$0xf0] }
 0x2b7   : > { %v3794_v15 = vld [vmem:[%s5980_s3 + $0x34] sm:$0xf0] }
 0x2b8   : > { %2346 = vst [vmem:[%s4979_s15 + $0x100] sm:$0xff] %v2282_v14 }
 0x2b9   : > { %v2003_v12 = vpop.f32.mrf.mxu0 }
 0x2ba   : > { %v2004_v38 = vadd.f32 %v2003_v12, %v1352_v61  ;;  %2570 = vmatpush.bf16.msrb.mxu3 %v2405_v40  ;;  %v2521_v61 = vpack.c.b16 %v2505_v6, %v2505_v6 }
 0x2bc   : > { %v5636_v2 = vadd.f32 %v2172_v33, %v2004_v38  ;;  %v2182_v45 = vpop.f32.mrf.mxu1  ;;  %v3682_v38 = vld [vmem:[%s5980_s3 + $0x28] sm:$0xf] }
 0x2be   : > { %v2283_v27 = vmax.f32 %v5636_v2, 0.0  ;;  %2571 = vmatpush.bf16.msrb.mxu3 %v2404_v54  ;;  %v3668_v2 = vld [vmem:[%s5980_s3 + $0x18] sm:$0xf0] }
 0x2c0   : > { %2347 = vst [vmem:[%s4979_s15 + $0x108] sm:$0xff] %v2283_v27 }
 0x2c1   : > { %v2006_v60 = vpop.f32.mrf.mxu0 }
 0x2c2   : > { %v2007_v4 = vadd.f32 %v2006_v60, %v5391_v44  ;;  %2572 = vmatpush.bf16.msrb.mxu3 %v5596_v28  ;;  %v3787_v44 = vld [vmem:[%s5980_s3 + $0x4] sm:$0xf]  ;;  %v3660_v28 = vld [vmem:[%s5980_s3 + $0x10] sm:$0xf0] }
 0x2c4   : > { %v5646_v31 = vadd.f32 %v2175_v36, %v2007_v4  ;;  %v2185_v34 = vpop.f32.mrf.mxu1  ;;  %v2408_v36 = vpack.c.bf16 %v2283_v27, %v2282_v14  ;;  %v3788_v14 = vld [vmem:[%s5980_s3 + $0xc] sm:$0xf]  ;;  %v3683_v27 = vor.u32 %v3794_v15, %v3682_v38  ;;  %v3798_v4 = vld [vmem:[%s5980_s3 + $0x54] sm:$0xf0] }
 0x2c5   : > { %v3671_v60 = vor.u32 %v3788_v14, %v3668_v2 }
 0x2c6   : > { %v2284_v18 = vmax.f32 %v5646_v31, 0.0  ;;  %2573 = vmatpush.bf16.msrb.mxu3 %v5576_v51  ;;  %v3663_v51 = vor.u32 %v3787_v44, %v3660_v28  ;;  %v3792_v31 = vld [vmem:[%s5980_s3 + $0x2c] sm:$0xf] }
 0x2c7   : > { %v2391_v44 = vld [vmem:[%s5980_s3 + $0x68] sm:$0x77] }
 0x2c8   : > { %2348 = vst [vmem:[%s4979_s15 + $0x110] sm:$0xff] %v2284_v18  ;;  %v2506_v28 = vunpack.c.l.b16 %v2391_v44 }
 0x2c9   : > { %v2008_v62 = vpop.f32.mrf.mxu0 }
 0x2ca   : > { %v2009_v50 = vadd.f32 %v2008_v62, %v5396_v58  ;;  %2574 = vmatpush.bf16.msrb.mxu3 %v5543_v10  ;;  %v6043_v10 = vld [vmem:[#allocation23_spill] sm:$0xff] }
 0x2cc   : > { %v2178_v8 = vadd.f32 %v2177_v25, %v2009_v50  ;;  %v2187_v59 = vpop.f32.mrf.mxu1  ;;  %v3698_v25 = vld [vmem:[%s5980_s3 + $0x48] sm:$0xf] }
 0x2cd   : > { %v3699_v62 = vor.u32 %v3798_v4, %v3698_v25 }
 0x2ce   : > { %v2285_v30 = vmax.f32 %v2178_v8, 0.0  ;;  %2575 = vmatpush.bf16.msrb.mxu3 %v5479_v1  ;;  %v6044_v1 = vld [vmem:[#allocation21_spill] sm:$0xff]  ;;  %v3700_v8 = vld [vmem:[%s5980_s3 + $0x58] sm:$0xf0] }
 0x2d0   : > { %2349 = vst [vmem:[%s4979_s15 + $0x118] sm:$0xff] %v2285_v30  ;;  %v2409_v52 = vpack.c.bf16 %v2285_v30, %v2284_v18  ;;  %v3684_v18 = vld [vmem:[%s5980_s3 + $0x38] sm:$0xf0] }
 0x2d1   : > { %v2011_v58 = vpop.f32.mrf.mxu0  ;;  %2576 = vmatmul.bf16.vlgmr.msrb.gmra.mxu3 %v3663_v51  ;;  %v3687_v50 = vor.u32 %v3792_v31, %v3684_v18  ;;  %v2522_v51 = vpack.c.b16 %v2506_v28, %v2506_v28 }
 0x2d2   : > { %2624 = vmatpush.bf16.msra.mxu3 %v5604_v47  ;;  %v2012_v20 = vadd.f32 %v2011_v58, %v6043_v10  ;;  %v3791_v47 = vld [vmem:[%s5980_s3 + $0x24] sm:$0xf]  ;;  %v2507_v58 = vunpack.c.h.b16 %v2391_v44 }
 0x2d4   : > { %v2181_v57 = vadd.f32 %v2180_v46, %v2012_v20  ;;  %v5666_v43 = vpop.f32.mrf.mxu2  ;;  %v3796_v46 = vld [vmem:[%s5980_s3 + $0x4c] sm:$0xf]  ;;  %v2523_v10 = vpack.c.b16 %v2507_v58, %v2507_v58 }
 0x2d5   : > { %v3703_v30 = vor.u32 %v3796_v46, %v3700_v8 }
 0x2d6   : > { %2625 = vmatpush.bf16.msra.mxu3 %v5581_v16  ;;  %v2286_v9 = vmax.f32 %v2181_v57, 0.0  ;;  %v3676_v16 = vld [vmem:[%s5980_s3 + $0x30] sm:$0xf0] }
 0x2d7   : > { %v3679_v55 = vor.u32 %v3791_v47, %v3676_v16 }
 0x2d8   : > { %2350 = vst [vmem:[%s4979_s15 + $0x120] sm:$0xff] %v2286_v9 }
 0x2d9   : > { %v2013_v3 = vpop.f32.mrf.mxu0 }
 0x2da   : > { %2626 = vmatpush.bf16.msra.mxu3 %v5554_v37  ;;  %v2014_v26 = vadd.f32 %v2013_v3, %v6044_v1 }
 0x2dc   : > { %v2183_v41 = vadd.f32 %v2182_v45, %v2014_v26  ;;  %v5678_v17 = vpop.f32.mrf.mxu2 }
 0x2de   : > { %2627 = vmatpush.bf16.msra.mxu3 %v5503_v48  ;;  %v2287_v37 = vmax.f32 %v2183_v41, 0.0 }
 0x2e0   : > { %2351 = vst [vmem:[%s4979_s15 + $0x128] sm:$0xff] %v2287_v37  ;;  %v2410_v21 = vpack.c.bf16 %v2287_v37, %v2286_v9 }
 0x2e1   : > { %v2016_v23 = vpop.f32.mrf.mxu0  ;;  %2581 = vmatmul.bf16.gmra.mxu3 %v3679_v55  ;;  %v2434_v55 = vpop.permute.xlu0 %2433 }
 0x2e2   : > { %2628 = vmatpush.bf16.msra.mxu3 %v5494_v49  ;;  %v2017_v32 = vadd.f32 %v2016_v23, %v6045_v39  ;;  %v2550_v37 = vadd.f32 %v5666_v43, %v2434_v55 }
 0x2e4   : > { %v2186_v5 = vadd.f32 %v2185_v34, %v2017_v32  ;;  %v5684_v19 = vpop.f32.mrf.mxu2 }
 0x2e6   : > { %2629 = vmatpush.bf16.msra.mxu3 %v5532_v7  ;;  %v2288_v48 = vmax.f32 %v2186_v5, 0.0  ;;  %v3692_v7 = vld [vmem:[%s5980_s3 + $0x50] sm:$0xf0] }
 0x2e7   : > { %v3695_v42 = vor.u32 %v3795_v13, %v3692_v7  ;;  %v2444_v7 = vpop.permute.xlu2 %2443 }
 0x2e8   : > { %2352 = vst [vmem:[%s4979_s15 + $0x130] sm:$0xff] %v2288_v48 }
 0x2e9   : > { %v2018_v24 = vpop.f32.mrf.mxu0  ;;  %v2459_v8 = vpop.permute.xlu0 %2458 }
 0x2ea   : > { %2630 = vmatpush.bf16.msra.mxu3 %v5506_v53  ;;  %v2019_v49 = vadd.f32 %v2018_v24, %v6046_v22 }
 0x2ec   : > { %v2188_v63 = vadd.f32 %v2187_v59, %v2019_v49  ;;  %v5696_v11 = vpop.f32.mrf.mxu2 }
 0x2ee   : > { %2631 = vmatpush.bf16.msra.mxu3 %v5496_v0  ;;  %v2289_v53 = vmax.f32 %v2188_v63, 0.0  ;;  %v3666_v0 = vld [vmem:[%s5980_s3 + $0x8] sm:$0xf]  ;;  %v2555_v63 = vadd.f32 %v5684_v19, %v2444_v7  ;;  %v2889_v7 = vld [vmem:[%s4979_s15 + $0x50] sm:$0xff] (%p4051_p5) }
 0x2ef   : > { %v3667_v12 = vor.u32 %v3790_v35, %v3666_v0  ;;  %2890 = vst [vmem:[%s5796_s21 + $0xa0] sm:$0xff] (%p4051_p5), %v2889_v7 }
 0x2f0   : > { %2353 = vst [vmem:[%s4979_s15 + $0x138] sm:$0xff] %v2289_v53  ;;  %v2411_v33 = vpack.c.bf16 %v2289_v53, %v2288_v48  ;;  %v2439_v48 = vpop.permute.xlu1 %2438 }
 0x2f1   : > { %2586 = vmatmul.bf16.gmra.mxu3 %v3695_v42  ;;  %v2552_v24 = vadd.f32 %v5678_v17, %v2439_v48  ;;  %v2875_v48 = vld [vmem:[%s4979_s15 + $0x18] sm:$0xff] (%p4051_p5) }
 0x2f2   : > { %2600 = vmatpush.bf16.msra.mxu2 %v2411_v33  ;;  %2876 = vst [vmem:[%s5796_s21 + $0x30] sm:$0xff] (%p4051_p5), %v2875_v48 }
 0x2f4   : > { %v5699_v29 = vpop.f32.mrf.mxu2 }
 0x2f6   : > { %2601 = vmatpush.bf16.msra.mxu2 %v2410_v21 }
 0x2fa   : > { %2602 = vmatpush.bf16.msra.mxu2 %v2409_v52  ;;  %v2449_v52 = vpop.permute.xlu1 %2448 }
 0x2fb   : > { %v2557_v6 = vadd.f32 %v5696_v11, %v2449_v52  ;;  %v2454_v11 = vpop.permute.xlu2 %2453  ;;  %v2903_v52 = vld [vmem:[%s4979_s15 + $0x88] sm:$0xff] (%p4051_p5) }
 0x2fc   : > { %v5714_v40 = vpop.f32.mrf.mxu2  ;;  %2904 = vst [vmem:[%s5796_s21 + $0x110] sm:$0xff] (%p4051_p5), %v2903_v52 }
 0x2fe   : > { %2603 = vmatpush.bf16.msra.mxu2 %v2408_v36 }
 0x301   : > { %2591 = vmatmul.bf16.gmra.mxu3 %v2521_v61  ;;  %2604 = vmatmul.bf16.vlgmr.msra.gmra.mxu2 %v3667_v12 }
 0x304   : > { %v5716_v56 = vpop.f32.mrf.mxu2 }
 0x30c   : > { %v2566_v54 = vpop.f32.mrf.mxu2 }
 0x311   : > { %2609 = vmatmul.bf16.gmra.mxu2 %v3683_v27  ;;  %2632 = vmatmul.bf16.vlgmr.msra.gmra.mxu3 %v3671_v60  ;;  %v2560_v60 = vadd.f32 %v5699_v29, %v2454_v11  ;;  %v2931_v11 = vld [vmem:[%s4979_s15 + $0xf8] sm:$0xff] (%p4051_p5) }
 0x312   : > { %2932 = vst [vmem:[%s5796_s21 + $0x1f0] sm:$0xff] (%p4051_p5), %v2931_v11 }
 0x321   : > { %2614 = vmatmul.bf16.gmra.mxu2 %v3699_v62  ;;  %2637 = vmatmul.bf16.gmra.mxu3 %v3687_v50 }
 0x331   : > { %2619 = vmatmul.bf16.gmra.mxu2 %v2522_v51  ;;  %2642 = vmatmul.bf16.gmra.mxu3 %v3703_v30  ;;  %v2562_v51 = vadd.f32 %v5714_v40, %v2459_v8  ;;  %v2953_v8 = vld [vmem:[%s4979_s15 + $0x150] sm:$0xff] (%p4051_p5) }
 0x332   : > { %2954 = vst [vmem:[%s5796_s21 + $0x2a0] sm:$0xff] (%p4051_p5), %v2953_v8 }
 0x341   : > { %2647 = vmatmul.bf16.gmra.mxu3 %v2523_v10 }
 0x354   : > { %v2577_v20 = vpop.f32.mrf.mxu3 }
 0x355   : > { %v2578_v34 = vadd.f32 %v2577_v20, %v2550_v37 }
 0x35c   : > { %v2579_v57 = vpop.f32.mrf.mxu3 }
 0x35d   : > { %v2580_v59 = vadd.f32 %v2579_v57, %v2552_v24  ;;  %v2877_v24 = vld [vmem:[%s4979_s15 + $0x20] sm:$0xff] (%p4051_p5) }
 0x35e   : > { %2878 = vst [vmem:[%s5796_s21 + $0x40] sm:$0xff] (%p4051_p5), %v2877_v24 }
 0x364   : > { %v2582_v45 = vpop.f32.mrf.mxu3 }
 0x365   : > { %v2583_v42 = vadd.f32 %v2582_v45, %v2555_v63  ;;  %v2891_v63 = vld [vmem:[%s4979_s15 + $0x58] sm:$0xff] (%p4051_p5) }
 0x366   : > { %2892 = vst [vmem:[%s5796_s21 + $0xb0] sm:$0xff] (%p4051_p5), %v2891_v63 }
 0x36c   : > { %v2584_v9 = vpop.f32.mrf.mxu3 }
 0x36d   : > { %v2585_v19 = vadd.f32 %v2584_v9, %v2557_v6  ;;  %v2905_v6 = vld [vmem:[%s4979_s15 + $0x90] sm:$0xff] (%p4051_p5) }
 0x36e   : > { %2906 = vst [vmem:[%s5796_s21 + $0x120] sm:$0xff] (%p4051_p5), %v2905_v6 }
 0x374   : > { %v2587_v3 = vpop.f32.mrf.mxu3 }
 0x375   : > { %v2588_v25 = vadd.f32 %v2587_v3, %v2560_v60  ;;  %v2933_v60 = vld [vmem:[%s4979_s15 + $0x100] sm:$0xff] (%p4051_p5) }
 0x376   : > { %2934 = vst [vmem:[%s5796_s21 + $0x200] sm:$0xff] (%p4051_p5), %v2933_v60 }
 0x37c   : > { %v5751_v1 = vpop.f32.mrf.mxu3 }
 0x37d   : > { %v2590_v30 = vadd.f32 %v5751_v1, %v2562_v51  ;;  %v2955_v51 = vld [vmem:[%s4979_s15 + $0x158] sm:$0xff] (%p4051_p5) }
 0x37e   : > { %2956 = vst [vmem:[%s5796_s21 + $0x2b0] sm:$0xff] (%p4051_p5), %v2955_v51 }
 0x384   : > { %v5753_v26 = vpop.f32.mrf.mxu3  ;;  %v2605_v47 = vpop.f32.mrf.mxu2 }
 0x385   : > { %v2606_v23 = vadd.f32 %v2605_v47, %v2578_v34  ;;  %v2464_v47 = vpop.permute.xlu1 %2463 }
 0x386   : > { %v2565_v40 = vadd.f32 %v5716_v56, %v2464_v47  ;;  %v2869_v56 = vld [vmem:[%s4979_s15] sm:$0xff] (%p4051_p5)  ;;  %v2975_v47 = vld [vmem:[%s4979_s15 + $0x1a8] sm:$0xff] (%p4051_p5) }
 0x387   : > { %2870 = vst [vmem:[%s5796_s21] sm:$0xff] (%p4051_p5), %v2869_v56 }
 0x388   : > { %v2593_v1 = vadd.f32 %v5753_v26, %v2565_v40  ;;  %v2871_v26 = vld [vmem:[%s4979_s15 + $0x8] sm:$0xff] (%p4051_p5)  ;;  %2976 = vst [vmem:[%s5796_s21 + $0x350] sm:$0xff] (%p4051_p5), %v2975_v47  ;;  %v2981_v40 = vld [vmem:[%s4979_s15 + $0x1c0] sm:$0xff] (%p4051_p5) }
 0x389   : > { %2872 = vst [vmem:[%s5796_s21 + $0x10] sm:$0xff] (%p4051_p5), %v2871_v26 }
 0x38a   : > { %2982 = vst [vmem:[%s5796_s21 + $0x380] sm:$0xff] (%p4051_p5), %v2981_v40 }
 0x38c   : > { %v2594_v16 = vpop.f32.mrf.mxu3  ;;  %v2607_v41 = vpop.f32.mrf.mxu2 }
 0x38d   : > { %v2608_v22 = vadd.f32 %v2607_v41, %v2580_v59  ;;  %v2879_v59 = vld [vmem:[%s4979_s15 + $0x28] sm:$0xff] (%p4051_p5) }
 0x38e   : > { %2880 = vst [vmem:[%s5796_s21 + $0x50] sm:$0xff] (%p4051_p5), %v2879_v59 }
 0x394   : > { %v2610_v39 = vpop.f32.mrf.mxu2  ;;  %v2633_v32 = vpop.f32.mrf.mxu3 }
 0x395   : > { %v2634_v5 = vadd.f32 %v2633_v32, %v2606_v23  ;;  %v2611_v53 = vadd.f32 %v2610_v39, %v2583_v42  ;;  %v2893_v42 = vld [vmem:[%s4979_s15 + $0x60] sm:$0xff] (%p4051_p5) }
 0x396   : > { %2894 = vst [vmem:[%s5796_s21 + $0xc0] sm:$0xff] (%p4051_p5), %v2893_v42 }
 0x397   : > { %2652 = vst [vmem:[%s5760_s22] sm:$0xff] %v2634_v5 }
 0x39c   : > { %v2612_v49 = vpop.f32.mrf.mxu2  ;;  %v2635_v43 = vpop.f32.mrf.mxu3 }
 0x39d   : > { %v2636_v13 = vadd.f32 %v2635_v43, %v2608_v22  ;;  %v2613_v38 = vadd.f32 %v2612_v49, %v2585_v19  ;;  %v2881_v22 = vld [vmem:[%s4979_s15 + $0x30] sm:$0xff] (%p4051_p5)  ;;  %v2883_v49 = vld [vmem:[%s4979_s15 + $0x38] sm:$0xff] (%p4051_p5)  ;;  %v2885_v43 = vld [vmem:[%s4979_s15 + $0x40] sm:$0xff] (%p4051_p5) }
 0x39e   : > { %2882 = vst [vmem:[%s5796_s21 + $0x60] sm:$0xff] (%p4051_p5), %v2881_v22  ;;  %v2911_v19 = vld [vmem:[%s4979_s15 + $0xa8] sm:$0xff] (%p4051_p5) }
 0x39f   : > { %2653 = vst [vmem:[%s5760_s22 + $0x8] sm:$0xff] %v2636_v13  ;;  %v2663_v0 = vrot.slane %v2636_v13, 1 }
 0x3a0   : > { %2884 = vst [vmem:[%s5796_s21 + $0x70] sm:$0xff] (%p4051_p5), %v2883_v49 }
 0x3a1   : > { %2886 = vst [vmem:[%s5796_s21 + $0x80] sm:$0xff] (%p4051_p5), %v2885_v43 }
 0x3a2   : > { %2912 = vst [vmem:[%s5796_s21 + $0x150] sm:$0xff] (%p4051_p5), %v2911_v19 }
 0x3a4   : > { %v2615_v17 = vpop.f32.mrf.mxu2  ;;  %v2638_v33 = vpop.f32.mrf.mxu3 }
 0x3a5   : > { %v2639_v21 = vadd.f32 %v2638_v33, %v2611_v53  ;;  %v2616_v31 = vadd.f32 %v2615_v17, %v2588_v25  ;;  %v2895_v53 = vld [vmem:[%s4979_s15 + $0x68] sm:$0xff] (%p4051_p5)  ;;  %v2897_v17 = vld [vmem:[%s4979_s15 + $0x70] sm:$0xff] (%p4051_p5)  ;;  %v2899_v33 = vld [vmem:[%s4979_s15 + $0x78] sm:$0xff] (%p4051_p5) }
 0x3a6   : > { %2896 = vst [vmem:[%s5796_s21 + $0xd0] sm:$0xff] (%p4051_p5), %v2895_v53  ;;  %v2935_v25 = vld [vmem:[%s4979_s15 + $0x108] sm:$0xff] (%p4051_p5) }
 0x3a7   : > { %2654 = vst [vmem:[%s5760_s22 + $0x10] sm:$0x3] %v2639_v21  ;;  %v2664_v35 = vrot.slane %v2639_v21, 1 }
 0x3a8   : > { %2655 = vst [vmem:[%s5768_s24 - $0x2] sm:$0xfc] %v2639_v21  ;;  %v2901_v21 = vld [vmem:[%s4979_s15 + $0x80] sm:$0xff] (%p4051_p5) }
 0x3a9   : > { %v2665_v36 = vsel %vm2662_vm13, %v2663_v0, %v2664_v35  ;;  %v2669_v61 = vsub.f32 %v2636_v13, %v2664_v35  ;;  %v2887_v13 = vld [vmem:[%s4979_s15 + $0x48] sm:$0xff] (%p4051_p5)  ;;  %2898 = vst [vmem:[%s5796_s21 + $0xe0] sm:$0xff] (%p4051_p5), %v2897_v17  ;;  %v2907_v0 = vld [vmem:[%s4979_s15 + $0x98] sm:$0xff] (%p4051_p5)  ;;  %v2909_v35 = vld [vmem:[%s4979_s15 + $0xa0] sm:$0xff] (%p4051_p5) }
 0x3aa   : > { %v2668_v12 = vsub.f32 %v2634_v5, %v2665_v36  ;;  %v2873_v5 = vld [vmem:[%s4979_s15 + $0x10] sm:$0xff] (%p4051_p5)  ;;  %2888 = vst [vmem:[%s5796_s21 + $0x90] sm:$0xff] (%p4051_p5), %v2887_v13 }
 0x3ab   : > { %v2672_v15 = vmul.f32 1.442695, %v2669_v61  ;;  %2874 = vst [vmem:[%s5796_s21 + $0x20] sm:$0xff] (%p4051_p5), %v2873_v5  ;;  %v2913_v36 = vld [vmem:[%s4979_s15 + $0xb0] sm:$0xff] (%p4051_p5)  ;;  %v2915_v61 = vld [vmem:[%s4979_s15 + $0xb8] sm:$0xff] (%p4051_p5) }
 0x3ac   : > { %v2670_v14 = vmul.f32 1.442695, %v2668_v12  ;;  %v2617_v2 = vpop.f32.mrf.mxu2  ;;  %v2640_v54 = vpop.f32.mrf.mxu3  ;;  %2900 = vst [vmem:[%s5796_s21 + $0xf0] sm:$0xff] (%p4051_p5), %v2899_v33  ;;  %v2917_v12 = vld [vmem:[%s4979_s15 + $0xc0] sm:$0xff] (%p4051_p5) }
 0x3ad   : > { %3888 = vpow2.f32 %v2672_v15  ;;  %v2641_v27 = vadd.f32 %v2640_v54, %v2613_v38  ;;  %v2618_v29 = vadd.f32 %v2617_v2, %v2590_v30  ;;  %2902 = vst [vmem:[%s5796_s21 + $0x100] sm:$0xff] (%p4051_p5), %v2901_v21  ;;  %v2919_v38 = vld [vmem:[%s4979_s15 + $0xc8] sm:$0xff] (%p4051_p5)  ;;  %v2921_v15 = vld [vmem:[%s4979_s15 + $0xd0] sm:$0xff] (%p4051_p5)  ;;  %v2925_v2 = vld [vmem:[%s4979_s15 + $0xe0] sm:$0xff] (%p4051_p5) }
 0x3ae   : > { %3890 = vpow2.f32 %v2670_v14  ;;  %2908 = vst [vmem:[%s5796_s21 + $0x130] sm:$0xff] (%p4051_p5), %v2907_v0  ;;  %v2923_v14 = vld [vmem:[%s4979_s15 + $0xd8] sm:$0xff] (%p4051_p5)  ;;  %v2927_v54 = vld [vmem:[%s4979_s15 + $0xe8] sm:$0xff] (%p4051_p5)  ;;  %v2957_v30 = vld [vmem:[%s4979_s15 + $0x160] sm:$0xff] (%p4051_p5) }
 0x3af   : > { %2656 = vst [vmem:[%s5768_s24 + $0x6] sm:$0xff] %v2641_v27  ;;  %v2929_v27 = vld [vmem:[%s4979_s15 + $0xf0] sm:$0xff] (%p4051_p5) }
 0x3b0   : > { %2910 = vst [vmem:[%s5796_s21 + $0x140] sm:$0xff] (%p4051_p5), %v2909_v35 }
 0x3b1   : > { %2914 = vst [vmem:[%s5796_s21 + $0x160] sm:$0xff] (%p4051_p5), %v2913_v36 }
 0x3b2   : > { %2916 = vst [vmem:[%s5796_s21 + $0x170] sm:$0xff] (%p4051_p5), %v2915_v61 }
 0x3b3   : > { %v3889_v4 = vpop.eup %3888  ;;  %2918 = vst [vmem:[%s5796_s21 + $0x180] sm:$0xff] (%p4051_p5), %v2917_v12 }
 0x3b4   : > { %v3891_v18 = vpop.eup %3890  ;;  %v2675_v62 = vadd.f32 1.0, %v3889_v4  ;;  %v2620_v50 = vpop.f32.mrf.mxu2  ;;  %2920 = vst [vmem:[%s5796_s21 + $0x190] sm:$0xff] (%p4051_p5), %v2919_v38  ;;  %v2937_v4 = vld [vmem:[%s4979_s15 + $0x110] sm:$0xff] (%p4051_p5) }
 0x3b5   : > { %v2643_v44 = vpop.f32.mrf.mxu3  ;;  %v2674_v28 = vadd.f32 1.0, %v3891_v18  ;;  %v2621_v34 = vadd.f32 %v2620_v50, %v2593_v1  ;;  %2922 = vst [vmem:[%s5796_s21 + $0x1a0] sm:$0xff] (%p4051_p5), %v2921_v15  ;;  %v2941_v18 = vld [vmem:[%s4979_s15 + $0x120] sm:$0xff] (%p4051_p5)  ;;  %v2945_v50 = vld [vmem:[%s4979_s15 + $0x130] sm:$0xff] (%p4051_p5)  ;;  %v2987_v1 = vld [vmem:[%s4979_s15 + $0x1d8] sm:$0xff] (%p4051_p5) }
 0x3b6   : > { %v2644_v46 = vadd.f32 %v2643_v44, %v2616_v31  ;;  %3892 = vrcp.f32 %v2675_v62  ;;  %2924 = vst [vmem:[%s5796_s21 + $0x1b0] sm:$0xff] (%p4051_p5), %v2923_v14  ;;  %v2939_v31 = vld [vmem:[%s4979_s15 + $0x118] sm:$0xff] (%p4051_p5)  ;;  %v2943_v62 = vld [vmem:[%s4979_s15 + $0x128] sm:$0xff] (%p4051_p5) }
 0x3b7   : > { %3894 = vrcp.f32 %v2674_v28  ;;  %2926 = vst [vmem:[%s5796_s21 + $0x1c0] sm:$0xff] (%p4051_p5), %v2925_v2  ;;  %v2947_v44 = vld [vmem:[%s4979_s15 + $0x138] sm:$0xff] (%p4051_p5)  ;;  %v2949_v28 = vld [vmem:[%s4979_s15 + $0x140] sm:$0xff] (%p4051_p5) }
 0x3b8   : > { %2657 = vst [vmem:[%s5768_s24 + $0xe] sm:$0xff] %v2644_v46  ;;  %v2951_v46 = vld [vmem:[%s4979_s15 + $0x148] sm:$0xff] (%p4051_p5) }
 0x3b9   : > { %2928 = vst [vmem:[%s5796_s21 + $0x1d0] sm:$0xff] (%p4051_p5), %v2927_v54 }
 0x3ba   : > { %2930 = vst [vmem:[%s5796_s21 + $0x1e0] sm:$0xff] (%p4051_p5), %v2929_v27 }
 0x3bb   : > { %2936 = vst [vmem:[%s5796_s21 + $0x210] sm:$0xff] (%p4051_p5), %v2935_v25 }
 0x3bc   : > { %v3893_v58 = vpop.eup %3892  ;;  %v2622_v20 = vpop.f32.mrf.mxu2  ;;  %2938 = vst [vmem:[%s5796_s21 + $0x220] sm:$0xff] (%p4051_p5), %v2937_v4 }
 0x3bd   : > { %v2645_v10 = vpop.f32.mrf.mxu3  ;;  %v3895_v57 = vpop.eup %3894  ;;  %v2679_v45 = vsub.f32 1.0, %v3893_v58  ;;  %v2684_v9 = vrot.slane %v3893_v58, 7  ;;  %2940 = vst [vmem:[%s5796_s21 + $0x230] sm:$0xff] (%p4051_p5), %v2939_v31  ;;  %v2961_v58 = vld [vmem:[%s4979_s15 + $0x170] sm:$0xff] (%p4051_p5)  ;;  %v2965_v20 = vld [vmem:[%s4979_s15 + $0x180] sm:$0xff] (%p4051_p5) }
 0x3be   : > { %v2646_v3 = vadd.f32 %v2645_v10, %v2618_v29  ;;  %v2678_v16 = vsub.f32 1.0, %v3895_v57  ;;  %v2683_v41 = vrot.slane %v3895_v57, 7  ;;  %2942 = vst [vmem:[%s5796_s21 + $0x240] sm:$0xff] (%p4051_p5), %v2941_v18  ;;  %v2959_v29 = vld [vmem:[%s4979_s15 + $0x168] sm:$0xff] (%p4051_p5)  ;;  %v2963_v10 = vld [vmem:[%s4979_s15 + $0x178] sm:$0xff] (%p4051_p5) }
 0x3bf   : > { %2944 = vst [vmem:[%s5796_s21 + $0x250] sm:$0xff] (%p4051_p5), %v2943_v62  ;;  %v2967_v57 = vld [vmem:[%s4979_s15 + $0x188] sm:$0xff] (%p4051_p5) }
 0x3c0   : > { %2658 = vst [vmem:[%s5768_s24 + $0x16] sm:$0xff] %v2646_v3  ;;  %v2685_v55 = vsel %vm2682_vm14, %v2683_v41, %v2684_v9  ;;  %v2688_v37 = vsel %vm2682_vm14, %v2679_v45, %v2683_v41  ;;  %v2969_v45 = vld [vmem:[%s4979_s15 + $0x190] sm:$0xff] (%p4051_p5)  ;;  %v2971_v9 = vld [vmem:[%s4979_s15 + $0x198] sm:$0xff] (%p4051_p5)  ;;  %v2973_v3 = vld [vmem:[%s4979_s15 + $0x1a0] sm:$0xff] (%p4051_p5) }
 0x3c1   : > { %2689 = vst [vmem:[%s5780_s14] sm:$0xff] %v2678_v16  ;;  %v2977_v16 = vld [vmem:[%s4979_s15 + $0x1b0] sm:$0xff] (%p4051_p5)  ;;  %v2979_v41 = vld [vmem:[%s4979_s15 + $0x1b8] sm:$0xff] (%p4051_p5) }
 0x3c2   : > { %2690 = vst [vmem:[%s5780_s14 + $0x8] sm:$0xff] %v2688_v37  ;;  %v2985_v37 = vld [vmem:[%s4979_s15 + $0x1d0] sm:$0xff] (%p4051_p5) }
 0x3c3   : > { %2691 = vst [vmem:[%s5780_s14 + $0x10] sm:$0x3] %v2685_v55  ;;  %v2983_v55 = vld [vmem:[%s4979_s15 + $0x1c8] sm:$0xff] (%p4051_p5) }
 0x3c4   : > { %2946 = vst [vmem:[%s5796_s21 + $0x260] sm:$0xff] (%p4051_p5), %v2945_v50 }
 0x3c5   : > { %v2648_v23 = vpop.f32.mrf.mxu3  ;;  %2948 = vst [vmem:[%s5796_s21 + $0x270] sm:$0xff] (%p4051_p5), %v2947_v44 }
 0x3c6   : > { %v2649_v39 = vadd.f32 %v2648_v23, %v2621_v34  ;;  %2950 = vst [vmem:[%s5796_s21 + $0x280] sm:$0xff] (%p4051_p5), %v2949_v28  ;;  %v2989_v34 = vld [vmem:[%s4979_s15 + $0x1e0] sm:$0xff] (%p4051_p5)  ;;  %v2991_v23 = vld [vmem:[%s4979_s15 + $0x1e8] sm:$0xff] (%p4051_p5) }
 0x3c7   : > { %2952 = vst [vmem:[%s5796_s21 + $0x290] sm:$0xff] (%p4051_p5), %v2951_v46 }
 0x3c8   : > { %2659 = vst [vmem:[%s5768_s24 + $0x1e] sm:$0x3f] %v2649_v39  ;;  %v2993_v39 = vld [vmem:[%s4979_s15 + $0x1f0] sm:$0xff] (%p4051_p5) }
 0x3c9   : > { %2710 = sbr.rel (!%p4051_p5) target bundleno = 987 (0x3db), region = 44  ;;  %2958 = vst [vmem:[%s5796_s21 + $0x2c0] sm:$0xff] (%p4051_p5), %v2957_v30 }
 0x3ca   : > { %2960 = vst [vmem:[%s5796_s21 + $0x2d0] sm:$0xff] (%p4051_p5), %v2959_v29 }
 0x3cb   : > { %2962 = vst [vmem:[%s5796_s21 + $0x2e0] sm:$0xff] (%p4051_p5), %v2961_v58 }
 0x3cc   : > { %2964 = vst [vmem:[%s5796_s21 + $0x2f0] sm:$0xff] (%p4051_p5), %v2963_v10 }
 0x3cd   : > { %v2650_v32 = vpop.f32.mrf.mxu3  ;;  %2966 = vst [vmem:[%s5796_s21 + $0x300] sm:$0xff] (%p4051_p5), %v2965_v20 }
 0x3ce   : > { %2968 = vst [vmem:[%s5796_s21 + $0x310] sm:$0xff] %v2967_v57  ;;  %v2995_v32 = vld [vmem:[%s4979_s15 + $0x1f8] sm:$0xff] }
 0x3cf   : > { %2970 = vst [vmem:[%s5796_s21 + $0x320] sm:$0xff] %v2969_v45 }
 0x3d0   : > { %2972 = vst [vmem:[%s5796_s21 + $0x330] sm:$0xff] %v2971_v9 }
 0x3d1   : > { %2974 = vst [vmem:[%s5796_s21 + $0x340] sm:$0xff] %v2973_v3 }
 0x3d2   : > { %2978 = vst [vmem:[%s5796_s21 + $0x360] sm:$0xff] %v2977_v16 }
 0x3d3   : > { %2980 = vst [vmem:[%s5796_s21 + $0x370] sm:$0xff] %v2979_v41 }
 0x3d4   : > { %2984 = vst [vmem:[%s5796_s21 + $0x390] sm:$0xff] %v2983_v55 }
 0x3d5   : > { %2986 = vst [vmem:[%s5796_s21 + $0x3a0] sm:$0xff] %v2985_v37 }
 0x3d6   : > { %2988 = vst [vmem:[%s5796_s21 + $0x3b0] sm:$0xff] %v2987_v1 }
 0x3d7   : > { %2990 = vst [vmem:[%s5796_s21 + $0x3c0] sm:$0xff] %v2989_v34 }
 0x3d8   : > { %2992 = vst [vmem:[%s5796_s21 + $0x3d0] sm:$0xff] %v2991_v23 }
 0x3d9   : > { %2994 = vst [vmem:[%s5796_s21 + $0x3e0] sm:$0xff] %v2993_v39 }
 0x3da   : > { %2996 = vst [vmem:[%s5796_s21 + $0x3f0] sm:$0xff] %v2995_v32 }
 0x3db PF: > { %3002 = sbr.rel (!%p4051_p5) target bundleno = 996 (0x3e4), region = 82  ;;  %v3039_v56 = vld [vmem:[%s5760_s22] sm:$0xff] (%p4051_p5)  ;;  %v3041_v26 = vld [vmem:[%s5760_s22 + $0x8] sm:$0xff] (%p4051_p5)  ;;  %v3043_v5 = vld [vmem:[%s5760_s22 + $0x10] sm:$0xff] (%p4051_p5) }
 0x3dc   : > { %s3818_s26 = smul.u32 (%p4051_p5), 6, %s3938_s30 }
 0x3de   : > { %s3004_s23 = sadd.s32 (%p4051_p5), %s3934_s29, %s3818_s26 }
 0x3df   : > { %s3707_s25 = sshll.u32 (%p4051_p5), %s3004_s23, 3 }
 0x3e0   : > { %s3006_s15 = scalar_lea.vmem %s5983_s6, %s3707_s25 }
 0x3e1   : > { %3040 = vst [vmem:[%s3006_s15] sm:$0xff] %v3039_v56 }
 0x3e2   : > { %3042 = vst [vmem:[%s3006_s15 + $0x10] sm:$0xff] %v3041_v26 }
 0x3e3   : > { %3044 = vst [vmem:[%s3006_s15 + $0x20] sm:$0xff] %v3043_v5 }
 0x3e4 PF: > { %3050 = sbr.rel (!%p4051_p5) target bundleno = 1005 (0x3ed), region = 120  ;;  %v3087_v48 = vld [vmem:[%s5780_s14] sm:$0xff] (%p4051_p5)  ;;  %v3089_v24 = vld [vmem:[%s5780_s14 + $0x8] sm:$0xff] (%p4051_p5)  ;;  %v3091_v59 = vld [vmem:[%s5780_s14 + $0x10] sm:$0xff] (%p4051_p5) }
 0x3e5   : > { %s3819_s27 = smul.u32 (%p4051_p5), 6, %s3938_s30 }
 0x3e7   : > { %s3052_s19 = sadd.s32 (%p4051_p5), %s3934_s29, %s3819_s27 }
 0x3e8   : > { %s3708_s21 = sshll.u32 (%p4051_p5), %s3052_s19, 3 }
 0x3e9   : > { %s3054_s22 = scalar_lea.vmem %s5984_s7, %s3708_s21 }
 0x3ea   : > { %3088 = vst [vmem:[%s3054_s22] sm:$0xff] %v3087_v48 }
 0x3eb   : > { %3090 = vst [vmem:[%s3054_s22 + $0x10] sm:$0xff] %v3089_v24 }
 0x3ec   : > { %3092 = vst [vmem:[%s3054_s22 + $0x20] sm:$0xff] %v3091_v59 }
 0x3ed PF: > { %3098 = sbr.rel (!%p4051_p5) target bundleno = 1016 (0x3f8), region = 158  ;;  %v3139_v22 = vld [vmem:[%s5768_s24] sm:$0xff] (%p4051_p5)  ;;  %v3141_v49 = vld [vmem:[%s5768_s24 + $0x8] sm:$0xff] (%p4051_p5)  ;;  %v3143_v43 = vld [vmem:[%s5768_s24 + $0x10] sm:$0xff] (%p4051_p5) }
 0x3ee   : > { %s3820_s25 = smul.u32 (%p4051_p5), 10, %s3938_s30  ;;  %v3145_v13 = vld [vmem:[%s5768_s24 + $0x18] sm:$0xff] (%p4051_p5)  ;;  %v3147_v7 = vld [vmem:[%s5768_s24 + $0x20] sm:$0xff] (%p4051_p5) }
 0x3f0   : > { %s3100_s17 = sadd.s32 (%p4051_p5), %s3934_s29, %s3820_s25 }
 0x3f1   : > { %s3709_s18 = sshll.u32 (%p4051_p5), %s3100_s17, 3 }
 0x3f2   : > { %s3102_s27 = scalar_lea.vmem %s5985_s8, %s3709_s18 }
 0x3f3   : > { %3140 = vst [vmem:[%s3102_s27] sm:$0xff] %v3139_v22 }
 0x3f4   : > { %3142 = vst [vmem:[%s3102_s27 + $0x10] sm:$0xff] %v3141_v49 }
 0x3f5   : > { %3144 = vst [vmem:[%s3102_s27 + $0x20] sm:$0xff] %v3143_v43 }
 0x3f6   : > { %3146 = vst [vmem:[%s3102_s27 + $0x30] sm:$0xff] %v3145_v13 }
 0x3f7   : > { %3148 = vst [vmem:[%s3102_s27 + $0x40] sm:$0xff] %v3147_v7 }
 0x3f8 PF: > { %s19_s11 = sadd.s32 1, %s3950_s11   ;;  %s6047_s27 = smov %s3930_s28 }
 0x3f9   : > { %p16_p10 = scmp.ge.s32.totalorder %s19_s11, 6   ;;  %s6048_s28 = smov %s4062_s20 }
 0x3fa   : > { %s6049_s29 = smov %s3942_s9  ;;  %s6050_s30 = smov %s3946_s10 }
 0x3fb   : > { %s6051_s9 = smov %s6054_s12  ;;  %s6052_s10 = smov %s6058_s13 }
 0x3fc   :  { %18 = sbr.rel (!%p16_p10) target bundleno = 4 (0x4), region = 259 }

</bundles_post_ra>
